<compile_context>
chip_gen: v7x
topology: tpu7x:2x2x1
jax: 0.10.0
libtpu: 0.0.40
codegen_flags: <defaults>
</compile_context>

<pallas_src>
import functools

import jax
import jax.numpy as jnp
from jax.experimental import pallas as pl
from jax.experimental.pallas import tpu as pltpu

EPS = 1e-5          # BatchNorm2d default eps
NEG_SLOPE = 0.1     # LeakyReLU slope


def _pick_row_tile(Ho, Wo, cap_rows=8192):
    """Largest divisor TH of Ho whose (TH*Wo, C) f32 accumulator tile stays small.

    TH*Wo is kept a multiple of 8 (sublane-aligned output blocks) unless TH == Ho,
    in which case the block equals the full dim (always legal).
    """
    valid = [t for t in range(1, Ho + 1)
             if Ho % t == 0 and (t == Ho or (t * Wo) % 8 == 0)]
    fitting = [t for t in valid if t * Wo <= cap_rows]
    return max(fitting) if fitting else min(valid)


@functools.partial(jax.jit, static_argnames=("padding",))
def cnn_block_forward(x_nchw, w_oihw, gamma, beta, *, padding=1):
    """x_nchw: (N, Cin, H, W); w_oihw: (Cout, Cin, KH, KW). Returns NCHW fp32.

    Matches CNNBlock(kernel_size=3, stride=1, padding=1, bn_act=True) in training mode
    (batch statistics, biased variance for normalization).
    """
    N, Cin, H, W = x_nchw.shape
    Cout, _, KH, KW = w_oihw.shape
    Ho = H + 2 * padding - KH + 1
    Wo = W + 2 * padding - KW + 1
    HW = Ho * Wo
    M = N * HW
    Hp, Wp = H + 2 * padding, W + 2 * padding

    TH = _pick_row_tile(Ho, Wo)          # output rows per pass-1 grid step
    R = Ho // TH                         # row tiles per image

    # ---- wrapper layout plumbing (fused under jit): NCHW -> NHWC, bf16 cast, spatial pad ----
    xp = jnp.pad(jnp.transpose(x_nchw, (0, 2, 3, 1)).astype(jnp.bfloat16),
                 ((0, 0), (padding, padding), (padding, padding), (0, 0)))

    # PyTorch weight (Cout, Cin, KH, KW) -> (KH*KW, Cin, Cout), bf16 for the MXU.
    wm = jnp.transpose(w_oihw, (2, 3, 1, 0)).reshape(KH * KW, Cin, Cout).astype(jnp.bfloat16)

    # ------------- pass 1: conv (in-kernel im2col, row-tiled) + per-tile sum / sum_sq -------------
    def conv_stats_kernel(xp_ref, w_ref, conv_ref, stats_ref, acc_ref):
        # xp_ref:    (1, Hp, Wp, Cin)   bf16  whole padded image, resident across row tiles
        # w_ref:     (KH*KW, Cin, Cout) bf16  resident across all grid steps
        # conv_ref:  (1, TH*Wo, Cout)   bf16  conv output row tile
        # stats_ref: (1, 1, 2, Cout)    f32   per-(image, row-tile) [sum, sum_sq] partials
        # acc_ref:   (TH*Wo, Cout)      f32   VMEM scratch accumulator
        row0 = pl.program_id(1) * TH
        acc_ref[...] = jnp.zeros_like(acc_ref)
        for kh in range(KH):
            rows = xp_ref[0, pl.ds(row0 + kh, TH), :, :]          # (TH, Wp, Cin) bf16
            for kw in range(KW):
                patch = rows[:, kw:kw + Wo, :].reshape(TH * Wo, Cin)
                acc_ref[...] += jnp.dot(patch, w_ref[kh * KW + kw],
                                        preferred_element_type=jnp.float32)
        acc = acc_ref[...]                                        # fp32
        conv_ref[0] = acc.astype(conv_ref.dtype)                  # downcast only for HBM storage
        stats_ref[0, 0, 0:1, :] = jnp.sum(acc, axis=0, keepdims=True)
        stats_ref[0, 0, 1:2, :] = jnp.sum(acc * acc, axis=0, keepdims=True)

    conv, stats = pl.pallas_call(
        conv_stats_kernel,
        out_shape=(jax.ShapeDtypeStruct((N, HW, Cout), jnp.bfloat16),
                   jax.ShapeDtypeStruct((N, R, 2, Cout), jnp.float32)),
        grid=(N, R),
        in_specs=[
            pl.BlockSpec((1, Hp, Wp, Cin), lambda n, r: (n, 0, 0, 0)),      # resident per image
            pl.BlockSpec((KH * KW, Cin, Cout), lambda n, r: (0, 0, 0)),     # resident weights
        ],
        out_specs=(pl.BlockSpec((1, TH * Wo, Cout), lambda n, r: (n, r, 0)),
                   pl.BlockSpec((1, 1, 2, Cout), lambda n, r: (n, r, 0, 0))),
        scratch_shapes=[pltpu.VMEM((TH * Wo, Cout), jnp.float32)],
        compiler_params=pltpu.CompilerParams(
            dimension_semantics=("parallel", "parallel"),
            vmem_limit_bytes=32 * 1024 * 1024),
    )(xp, wm)

    # ---- fold BN batch stats into per-channel scale/shift once (tiny (C,)-sized jnp ops) ----
    # Note: E[x^2] - mean^2 in fp32; max(.,0) guards tiny negative values from cancellation.
    tot = jnp.sum(stats, axis=(0, 1))                       # (2, Cout)
    inv_count = 1.0 / float(M)
    mean = tot[0] * inv_count
    var = jnp.maximum(tot[1] * inv_count - mean * mean, 0.0)   # biased variance (training BN)
    scale = gamma.astype(jnp.float32) * jax.lax.rsqrt(var + EPS)
    shift = beta.astype(jnp.float32) - mean * scale
    scale = scale.reshape(1, Cout)
    shift = shift.reshape(1, Cout)

    # ------------- pass 2: elementwise scale+shift + LeakyReLU over (M, Cout) -------------
    conv_flat = conv.reshape(M, Cout)
    TM = M if M <= 4096 else 4096                           # large tiles; cdiv grid below

    def bn_act_kernel(scale_ref, shift_ref, conv_ref, out_ref):
        y = conv_ref[...].astype(jnp.float32) * scale_ref[...] + shift_ref[...]
        out_ref[...] = jnp.where(y > 0, y, NEG_SLOPE * y).astype(out_ref.dtype)

    out_flat = pl.pallas_call(
        bn_act_kernel,
        out_shape=jax.ShapeDtypeStruct((M, Cout), jnp.float32),
        grid=(pl.cdiv(M, TM),),
        in_specs=[
            pl.BlockSpec((1, Cout), lambda i: (0, 0)),       # resident scale
            pl.BlockSpec((1, Cout), lambda i: (0, 0)),       # resident shift
            pl.BlockSpec((TM, Cout), lambda i: (i, 0)),
        ],
        out_specs=pl.BlockSpec((TM, Cout), lambda i: (i, 0)),
        compiler_params=pltpu.CompilerParams(
            dimension_semantics=("parallel",),
            vmem_limit_bytes=32 * 1024 * 1024),
    )(scale, shift, conv_flat)

    # TODO(synk): running_mean / running_var buffer updates (training-only side effects that
    # do not change the forward output) are not reproduced.
    out = out_flat.reshape(N, Ho, Wo, Cout)
    # Final transpose back to NCHW to match the PyTorch module's output layout; drop it if the
    # downstream consumer accepts NHWC.
    return jnp.transpose(out, (0, 3, 1, 2))


def _reference(x, w, gamma, beta, *, padding=1):
    """Pure-JAX fp32 reference: Conv2d(bias=False) -> BatchNorm2d(train) -> LeakyReLU(0.1)."""
    conv = jax.lax.conv_general_dilated(
        x, w, window_strides=(1, 1), padding=[(padding, padding), (padding, padding)],
        dimension_numbers=("NCHW", "OIHW", "NCHW"))
    mean = jnp.mean(conv, axis=(0, 2, 3), keepdims=True)
    var = jnp.mean((conv - mean) ** 2, axis=(0, 2, 3), keepdims=True)
    y = (conv - mean) * jax.lax.rsqrt(var + EPS)
    y = y * gamma.reshape(1, -1, 1, 1) + beta.reshape(1, -1, 1, 1)
    return jnp.where(y > 0, y, NEG_SLOPE * y)


if __name__ == "__main__":
    key = jax.random.PRNGKey(0)
    k_x, k_w, k_g, k_b = jax.random.split(key, 4)

    N, Cin, H, W = 2, 4, 16, 16
    Cout, K = 8, 3

    x = jax.random.normal(k_x, (N, Cin, H, W), dtype=jnp.float32)
    # Deterministic parameter init (synthetic, not a checkpoint load).
    w = 0.1 * jax.random.normal(k_w, (Cout, Cin, K, K), dtype=jnp.float32)
    gamma = 1.0 + 0.05 * jax.random.normal(k_g, (Cout,), dtype=jnp.float32)
    beta = 0.05 * jax.random.normal(k_b, (Cout,), dtype=jnp.float32)

    out = cnn_block_forward(x, w, gamma, beta, padding=1)
    jax.block_until_ready(out)
    assert out.shape == (N, Cout, H, W)

    ref = _reference(x, w, gamma, beta, padding=1)
    assert bool(jnp.all(jnp.isfinite(out)))
    # bf16 MXU inputs + bf16 conv intermediate -> loose tolerance vs the fp32 reference.
    assert bool(jnp.allclose(out, ref, atol=8e-2, rtol=8e-2))

    print("KERNEL_OK")
</pallas_src>

<mosaic_0001>
module attributes {stable_mosaic.version = 11 : i64} {
  func.func @conv_stats_kernel(%arg0: i32, %arg1: i32, %arg2: memref<1x18x18x4xbf16, #tpu.memory_space<vmem>>, %arg3: memref<9x4x8xbf16, #tpu.memory_space<vmem>>, %arg4: memref<1x256x8xbf16, #tpu.memory_space<vmem>>, %arg5: memref<1x1x2x8xf32, #tpu.memory_space<vmem>>, %arg6: memref<256x8xf32, #tpu.memory_space<vmem>>) attributes {dimension_semantics = [#tpu.dimension_semantics<parallel>, #tpu.dimension_semantics<parallel>], iteration_bounds = array<i64: 2, 1>, scalar_prefetch = 0 : i64, scratch_operands = 1 : i64, tpu.core_type = #tpu.core_type<tc>, window_params = [{transform_indices = @transform_0, window_bounds = array<i64: 1, 18, 18, 4>}, {pipeline_mode = #tpu.pipeline_mode<synchronous>, transform_indices = @transform_1, window_bounds = array<i64: 9, 4, 8>}, {transform_indices = @transform_2, window_bounds = array<i64: 1, 256, 8>}, {transform_indices = @transform_3, window_bounds = array<i64: 1, 1, 2, 8>}]} {
    %c16_i32 = arith.constant 16 : i32
    %0 = arith.muli %arg1, %c16_i32 : i32
    %cst = arith.constant 0.000000e+00 : f32
    %1 = vector.broadcast %cst : f32 to vector<256x8xf32>
    %c0 = arith.constant 0 : index
    %c0_0 = arith.constant 0 : index
    %2 = vector.load %arg6[%c0, %c0_0] : memref<256x8xf32, #tpu.memory_space<vmem>>, vector<256x8xf32>
    tpu.vector_store %arg6[%c0, %c0_0], %1 {strides = array<i32>} : memref<256x8xf32, #tpu.memory_space<vmem>>, vector<256x8xf32>,
    %c0_i32 = arith.constant 0 : i32
    %3 = arith.addi %0, %c0_i32 : i32
    %c0_1 = arith.constant 0 : index
    %4 = arith.index_cast %3 : i32 to index
    %c0_2 = arith.constant 0 : index
    %c0_3 = arith.constant 0 : index
    %5 = vector.load %arg2[%c0_1, %4, %c0_2, %c0_3] : memref<1x18x18x4xbf16, #tpu.memory_space<vmem>>, vector<1x16x18x4xbf16>
    %6 = vector.shape_cast %5 : vector<1x16x18x4xbf16> to vector<16x18x4xbf16>
    %7 = vector.extract_strided_slice %6 {offsets = [0, 0, 0], sizes = [16, 16, 4], strides = [1, 1, 1]} : vector<16x18x4xbf16> to vector<16x16x4xbf16>
    %8 = vector.shape_cast %7 : vector<16x16x4xbf16> to vector<256x4xbf16>
    %c0_4 = arith.constant 0 : index
    %c0_5 = arith.constant 0 : index
    %9 = vector.load %arg6[%c0_4, %c0_5] : memref<256x8xf32, #tpu.memory_space<vmem>>, vector<256x8xf32>
    %c0_6 = arith.constant 0 : index
    %c0_7 = arith.constant 0 : index
    %c0_8 = arith.constant 0 : index
    %10 = vector.load %arg3[%c0_6, %c0_7, %c0_8] : memref<9x4x8xbf16, #tpu.memory_space<vmem>>, vector<1x4x8xbf16>
    %11 = vector.shape_cast %10 : vector<1x4x8xbf16> to vector<4x8xbf16>
    %cst_9 = arith.constant dense<0.000000e+00> : vector<256x8xf32>
    %12 = tpu.matmul %8, %11, %cst_9 {dimension_numbers = #tpu.dot_dimension_numbers<[1], [0], [0], [1], [0, 0, 1, 1], [], []>} : vector<256x4xbf16>, vector<4x8xbf16>, vector<256x8xf32> -> vector<256x8xf32>
    %13 = arith.addf %9, %12 : vector<256x8xf32>
    %c0_10 = arith.constant 0 : index
    %c0_11 = arith.constant 0 : index
    %14 = vector.load %arg6[%c0_10, %c0_11] : memref<256x8xf32, #tpu.memory_space<vmem>>, vector<256x8xf32>
    tpu.vector_store %arg6[%c0_10, %c0_11], %13 {strides = array<i32>} : memref<256x8xf32, #tpu.memory_space<vmem>>, vector<256x8xf32>,
    %15 = vector.extract_strided_slice %6 {offsets = [0, 1, 0], sizes = [16, 16, 4], strides = [1, 1, 1]} : vector<16x18x4xbf16> to vector<16x16x4xbf16>
    %16 = vector.shape_cast %15 : vector<16x16x4xbf16> to vector<256x4xbf16>
    %c0_12 = arith.constant 0 : index
    %c0_13 = arith.constant 0 : index
    %17 = vector.load %arg6[%c0_12, %c0_13] : memref<256x8xf32, #tpu.memory_space<vmem>>, vector<256x8xf32>
    %c1 = arith.constant 1 : index
    %c0_14 = arith.constant 0 : index
    %c0_15 = arith.constant 0 : index
    %18 = vector.load %arg3[%c1, %c0_14, %c0_15] : memref<9x4x8xbf16, #tpu.memory_space<vmem>>, vector<1x4x8xbf16>
    %19 = vector.shape_cast %18 : vector<1x4x8xbf16> to vector<4x8xbf16>
    %cst_16 = arith.constant dense<0.000000e+00> : vector<256x8xf32>
    %20 = tpu.matmul %16, %19, %cst_16 {dimension_numbers = #tpu.dot_dimension_numbers<[1], [0], [0], [1], [0, 0, 1, 1], [], []>} : vector<256x4xbf16>, vector<4x8xbf16>, vector<256x8xf32> -> vector<256x8xf32>
    %21 = arith.addf %17, %20 : vector<256x8xf32>
    %c0_17 = arith.constant 0 : index
    %c0_18 = arith.constant 0 : index
    %22 = vector.load %arg6[%c0_17, %c0_18] : memref<256x8xf32, #tpu.memory_space<vmem>>, vector<256x8xf32>
    tpu.vector_store %arg6[%c0_17, %c0_18], %21 {strides = array<i32>} : memref<256x8xf32, #tpu.memory_space<vmem>>, vector<256x8xf32>,
    %23 = vector.extract_strided_slice %6 {offsets = [0, 2, 0], sizes = [16, 16, 4], strides = [1, 1, 1]} : vector<16x18x4xbf16> to vector<16x16x4xbf16>
    %24 = vector.shape_cast %23 : vector<16x16x4xbf16> to vector<256x4xbf16>
    %c0_19 = arith.constant 0 : index
    %c0_20 = arith.constant 0 : index
    %25 = vector.load %arg6[%c0_19, %c0_20] : memref<256x8xf32, #tpu.memory_space<vmem>>, vector<256x8xf32>
    %c2 = arith.constant 2 : index
    %c0_21 = arith.constant 0 : index
    %c0_22 = arith.constant 0 : index
    %26 = vector.load %arg3[%c2, %c0_21, %c0_22] : memref<9x4x8xbf16, #tpu.memory_space<vmem>>, vector<1x4x8xbf16>
    %27 = vector.shape_cast %26 : vector<1x4x8xbf16> to vector<4x8xbf16>
    %cst_23 = arith.constant dense<0.000000e+00> : vector<256x8xf32>
    %28 = tpu.matmul %24, %27, %cst_23 {dimension_numbers = #tpu.dot_dimension_numbers<[1], [0], [0], [1], [0, 0, 1, 1], [], []>} : vector<256x4xbf16>, vector<4x8xbf16>, vector<256x8xf32> -> vector<256x8xf32>
    %29 = arith.addf %25, %28 : vector<256x8xf32>
    %c0_24 = arith.constant 0 : index
    %c0_25 = arith.constant 0 : index
    %30 = vector.load %arg6[%c0_24, %c0_25] : memref<256x8xf32, #tpu.memory_space<vmem>>, vector<256x8xf32>
    tpu.vector_store %arg6[%c0_24, %c0_25], %29 {strides = array<i32>} : memref<256x8xf32, #tpu.memory_space<vmem>>, vector<256x8xf32>,
    %c1_i32 = arith.constant 1 : i32
    %31 = arith.addi %0, %c1_i32 : i32
    %c0_26 = arith.constant 0 : index
    %32 = arith.index_cast %31 : i32 to index
    %c0_27 = arith.constant 0 : index
    %c0_28 = arith.constant 0 : index
    %33 = vector.load %arg2[%c0_26, %32, %c0_27, %c0_28] : memref<1x18x18x4xbf16, #tpu.memory_space<vmem>>, vector<1x16x18x4xbf16>
    %34 = vector.shape_cast %33 : vector<1x16x18x4xbf16> to vector<16x18x4xbf16>
    %35 = vector.extract_strided_slice %34 {offsets = [0, 0, 0], sizes = [16, 16, 4], strides = [1, 1, 1]} : vector<16x18x4xbf16> to vector<16x16x4xbf16>
    %36 = vector.shape_cast %35 : vector<16x16x4xbf16> to vector<256x4xbf16>
    %c0_29 = arith.constant 0 : index
    %c0_30 = arith.constant 0 : index
    %37 = vector.load %arg6[%c0_29, %c0_30] : memref<256x8xf32, #tpu.memory_space<vmem>>, vector<256x8xf32>
    %c3 = arith.constant 3 : index
    %c0_31 = arith.constant 0 : index
    %c0_32 = arith.constant 0 : index
    %38 = vector.load %arg3[%c3, %c0_31, %c0_32] : memref<9x4x8xbf16, #tpu.memory_space<vmem>>, vector<1x4x8xbf16>
    %39 = vector.shape_cast %38 : vector<1x4x8xbf16> to vector<4x8xbf16>
    %cst_33 = arith.constant dense<0.000000e+00> : vector<256x8xf32>
    %40 = tpu.matmul %36, %39, %cst_33 {dimension_numbers = #tpu.dot_dimension_numbers<[1], [0], [0], [1], [0, 0, 1, 1], [], []>} : vector<256x4xbf16>, vector<4x8xbf16>, vector<256x8xf32> -> vector<256x8xf32>
    %41 = arith.addf %37, %40 : vector<256x8xf32>
    %c0_34 = arith.constant 0 : index
    %c0_35 = arith.constant 0 : index
    %42 = vector.load %arg6[%c0_34, %c0_35] : memref<256x8xf32, #tpu.memory_space<vmem>>, vector<256x8xf32>
    tpu.vector_store %arg6[%c0_34, %c0_35], %41 {strides = array<i32>} : memref<256x8xf32, #tpu.memory_space<vmem>>, vector<256x8xf32>,
    %43 = vector.extract_strided_slice %34 {offsets = [0, 1, 0], sizes = [16, 16, 4], strides = [1, 1, 1]} : vector<16x18x4xbf16> to vector<16x16x4xbf16>
    %44 = vector.shape_cast %43 : vector<16x16x4xbf16> to vector<256x4xbf16>
    %c0_36 = arith.constant 0 : index
    %c0_37 = arith.constant 0 : index
    %45 = vector.load %arg6[%c0_36, %c0_37] : memref<256x8xf32, #tpu.memory_space<vmem>>, vector<256x8xf32>
    %c4 = arith.constant 4 : index
    %c0_38 = arith.constant 0 : index
    %c0_39 = arith.constant 0 : index
    %46 = vector.load %arg3[%c4, %c0_38, %c0_39] : memref<9x4x8xbf16, #tpu.memory_space<vmem>>, vector<1x4x8xbf16>
    %47 = vector.shape_cast %46 : vector<1x4x8xbf16> to vector<4x8xbf16>
    %cst_40 = arith.constant dense<0.000000e+00> : vector<256x8xf32>
    %48 = tpu.matmul %44, %47, %cst_40 {dimension_numbers = #tpu.dot_dimension_numbers<[1], [0], [0], [1], [0, 0, 1, 1], [], []>} : vector<256x4xbf16>, vector<4x8xbf16>, vector<256x8xf32> -> vector<256x8xf32>
    %49 = arith.addf %45, %48 : vector<256x8xf32>
    %c0_41 = arith.constant 0 : index
    %c0_42 = arith.constant 0 : index
    %50 = vector.load %arg6[%c0_41, %c0_42] : memref<256x8xf32, #tpu.memory_space<vmem>>, vector<256x8xf32>
    tpu.vector_store %arg6[%c0_41, %c0_42], %49 {strides = array<i32>} : memref<256x8xf32, #tpu.memory_space<vmem>>, vector<256x8xf32>,
    %51 = vector.extract_strided_slice %34 {offsets = [0, 2, 0], sizes = [16, 16, 4], strides = [1, 1, 1]} : vector<16x18x4xbf16> to vector<16x16x4xbf16>
    %52 = vector.shape_cast %51 : vector<16x16x4xbf16> to vector<256x4xbf16>
    %c0_43 = arith.constant 0 : index
    %c0_44 = arith.constant 0 : index
    %53 = vector.load %arg6[%c0_43, %c0_44] : memref<256x8xf32, #tpu.memory_space<vmem>>, vector<256x8xf32>
    %c5 = arith.constant 5 : index
    %c0_45 = arith.constant 0 : index
    %c0_46 = arith.constant 0 : index
    %54 = vector.load %arg3[%c5, %c0_45, %c0_46] : memref<9x4x8xbf16, #tpu.memory_space<vmem>>, vector<1x4x8xbf16>
    %55 = vector.shape_cast %54 : vector<1x4x8xbf16> to vector<4x8xbf16>
    %cst_47 = arith.constant dense<0.000000e+00> : vector<256x8xf32>
    %56 = tpu.matmul %52, %55, %cst_47 {dimension_numbers = #tpu.dot_dimension_numbers<[1], [0], [0], [1], [0, 0, 1, 1], [], []>} : vector<256x4xbf16>, vector<4x8xbf16>, vector<256x8xf32> -> vector<256x8xf32>
    %57 = arith.addf %53, %56 : vector<256x8xf32>
    %c0_48 = arith.constant 0 : index
    %c0_49 = arith.constant 0 : index
    %58 = vector.load %arg6[%c0_48, %c0_49] : memref<256x8xf32, #tpu.memory_space<vmem>>, vector<256x8xf32>
    tpu.vector_store %arg6[%c0_48, %c0_49], %57 {strides = array<i32>} : memref<256x8xf32, #tpu.memory_space<vmem>>, vector<256x8xf32>,
    %c2_i32 = arith.constant 2 : i32
    %59 = arith.addi %0, %c2_i32 : i32
    %c0_50 = arith.constant 0 : index
    %60 = arith.index_cast %59 : i32 to index
    %c0_51 = arith.constant 0 : index
    %c0_52 = arith.constant 0 : index
    %61 = vector.load %arg2[%c0_50, %60, %c0_51, %c0_52] : memref<1x18x18x4xbf16, #tpu.memory_space<vmem>>, vector<1x16x18x4xbf16>
    %62 = vector.shape_cast %61 : vector<1x16x18x4xbf16> to vector<16x18x4xbf16>
    %63 = vector.extract_strided_slice %62 {offsets = [0, 0, 0], sizes = [16, 16, 4], strides = [1, 1, 1]} : vector<16x18x4xbf16> to vector<16x16x4xbf16>
    %64 = vector.shape_cast %63 : vector<16x16x4xbf16> to vector<256x4xbf16>
    %c0_53 = arith.constant 0 : index
    %c0_54 = arith.constant 0 : index
    %65 = vector.load %arg6[%c0_53, %c0_54] : memref<256x8xf32, #tpu.memory_space<vmem>>, vector<256x8xf32>
    %c6 = arith.constant 6 : index
    %c0_55 = arith.constant 0 : index
    %c0_56 = arith.constant 0 : index
    %66 = vector.load %arg3[%c6, %c0_55, %c0_56] : memref<9x4x8xbf16, #tpu.memory_space<vmem>>, vector<1x4x8xbf16>
    %67 = vector.shape_cast %66 : vector<1x4x8xbf16> to vector<4x8xbf16>
    %cst_57 = arith.constant dense<0.000000e+00> : vector<256x8xf32>
    %68 = tpu.matmul %64, %67, %cst_57 {dimension_numbers = #tpu.dot_dimension_numbers<[1], [0], [0], [1], [0, 0, 1, 1], [], []>} : vector<256x4xbf16>, vector<4x8xbf16>, vector<256x8xf32> -> vector<256x8xf32>
    %69 = arith.addf %65, %68 : vector<256x8xf32>
    %c0_58 = arith.constant 0 : index
    %c0_59 = arith.constant 0 : index
    %70 = vector.load %arg6[%c0_58, %c0_59] : memref<256x8xf32, #tpu.memory_space<vmem>>, vector<256x8xf32>
    tpu.vector_store %arg6[%c0_58, %c0_59], %69 {strides = array<i32>} : memref<256x8xf32, #tpu.memory_space<vmem>>, vector<256x8xf32>,
    %71 = vector.extract_strided_slice %62 {offsets = [0, 1, 0], sizes = [16, 16, 4], strides = [1, 1, 1]} : vector<16x18x4xbf16> to vector<16x16x4xbf16>
    %72 = vector.shape_cast %71 : vector<16x16x4xbf16> to vector<256x4xbf16>
    %c0_60 = arith.constant 0 : index
    %c0_61 = arith.constant 0 : index
    %73 = vector.load %arg6[%c0_60, %c0_61] : memref<256x8xf32, #tpu.memory_space<vmem>>, vector<256x8xf32>
    %c7 = arith.constant 7 : index
    %c0_62 = arith.constant 0 : index
    %c0_63 = arith.constant 0 : index
    %74 = vector.load %arg3[%c7, %c0_62, %c0_63] : memref<9x4x8xbf16, #tpu.memory_space<vmem>>, vector<1x4x8xbf16>
    %75 = vector.shape_cast %74 : vector<1x4x8xbf16> to vector<4x8xbf16>
    %cst_64 = arith.constant dense<0.000000e+00> : vector<256x8xf32>
    %76 = tpu.matmul %72, %75, %cst_64 {dimension_numbers = #tpu.dot_dimension_numbers<[1], [0], [0], [1], [0, 0, 1, 1], [], []>} : vector<256x4xbf16>, vector<4x8xbf16>, vector<256x8xf32> -> vector<256x8xf32>
    %77 = arith.addf %73, %76 : vector<256x8xf32>
    %c0_65 = arith.constant 0 : index
    %c0_66 = arith.constant 0 : index
    %78 = vector.load %arg6[%c0_65, %c0_66] : memref<256x8xf32, #tpu.memory_space<vmem>>, vector<256x8xf32>
    tpu.vector_store %arg6[%c0_65, %c0_66], %77 {strides = array<i32>} : memref<256x8xf32, #tpu.memory_space<vmem>>, vector<256x8xf32>,
    %79 = vector.extract_strided_slice %62 {offsets = [0, 2, 0], sizes = [16, 16, 4], strides = [1, 1, 1]} : vector<16x18x4xbf16> to vector<16x16x4xbf16>
    %80 = vector.shape_cast %79 : vector<16x16x4xbf16> to vector<256x4xbf16>
    %c0_67 = arith.constant 0 : index
    %c0_68 = arith.constant 0 : index
    %81 = vector.load %arg6[%c0_67, %c0_68] : memref<256x8xf32, #tpu.memory_space<vmem>>, vector<256x8xf32>
    %c8 = arith.constant 8 : index
    %c0_69 = arith.constant 0 : index
    %c0_70 = arith.constant 0 : index
    %82 = vector.load %arg3[%c8, %c0_69, %c0_70] : memref<9x4x8xbf16, #tpu.memory_space<vmem>>, vector<1x4x8xbf16>
    %83 = vector.shape_cast %82 : vector<1x4x8xbf16> to vector<4x8xbf16>
    %cst_71 = arith.constant dense<0.000000e+00> : vector<256x8xf32>
    %84 = tpu.matmul %80, %83, %cst_71 {dimension_numbers = #tpu.dot_dimension_numbers<[1], [0], [0], [1], [0, 0, 1, 1], [], []>} : vector<256x4xbf16>, vector<4x8xbf16>, vector<256x8xf32> -> vector<256x8xf32>
    %85 = arith.addf %81, %84 : vector<256x8xf32>
    %c0_72 = arith.constant 0 : index
    %c0_73 = arith.constant 0 : index
    %86 = vector.load %arg6[%c0_72, %c0_73] : memref<256x8xf32, #tpu.memory_space<vmem>>, vector<256x8xf32>
    tpu.vector_store %arg6[%c0_72, %c0_73], %85 {strides = array<i32>} : memref<256x8xf32, #tpu.memory_space<vmem>>, vector<256x8xf32>,
    %c0_74 = arith.constant 0 : index
    %c0_75 = arith.constant 0 : index
    %87 = vector.load %arg6[%c0_74, %c0_75] : memref<256x8xf32, #tpu.memory_space<vmem>>, vector<256x8xf32>
    %88 = arith.truncf %87 : vector<256x8xf32> to vector<256x8xbf16>
    %c0_76 = arith.constant 0 : index
    %c0_77 = arith.constant 0 : index
    %c0_78 = arith.constant 0 : index
    %89 = vector.load %arg4[%c0_76, %c0_77, %c0_78] : memref<1x256x8xbf16, #tpu.memory_space<vmem>>, vector<1x256x8xbf16>
    %90 = vector.shape_cast %89 : vector<1x256x8xbf16> to vector<256x8xbf16>
    %91 = vector.shape_cast %88 : vector<256x8xbf16> to vector<1x256x8xbf16>
    tpu.vector_store %arg4[%c0_76, %c0_77, %c0_78], %91 {strides = array<i32>} : memref<1x256x8xbf16, #tpu.memory_space<vmem>>, vector<1x256x8xbf16>,
    %cst_79 = arith.constant dense<0.000000e+00> : vector<8xf32>
    %92 = vector.multi_reduction <add>, %87, %cst_79 [0] : vector<256x8xf32> to vector<8xf32>
    %93 = vector.shape_cast %92 : vector<8xf32> to vector<1x8xf32>
    %c0_80 = arith.constant 0 : index
    %c0_81 = arith.constant 0 : index
    %c0_82 = arith.constant 0 : index
    %c0_83 = arith.constant 0 : index
    %94 = vector.load %arg5[%c0_80, %c0_81, %c0_82, %c0_83] : memref<1x1x2x8xf32, #tpu.memory_space<vmem>>, vector<1x1x1x8xf32>
    %95 = vector.shape_cast %94 : vector<1x1x1x8xf32> to vector<1x8xf32>
    %96 = vector.shape_cast %93 : vector<1x8xf32> to vector<1x1x1x8xf32>
    tpu.vector_store %arg5[%c0_80, %c0_81, %c0_82, %c0_83], %96 {strides = array<i32>} : memref<1x1x2x8xf32, #tpu.memory_space<vmem>>, vector<1x1x1x8xf32>,
    %97 = arith.mulf %87, %87 : vector<256x8xf32>
    %cst_84 = arith.constant dense<0.000000e+00> : vector<8xf32>
    %98 = vector.multi_reduction <add>, %97, %cst_84 [0] : vector<256x8xf32> to vector<8xf32>
    %99 = vector.shape_cast %98 : vector<8xf32> to vector<1x8xf32>
    %c0_85 = arith.constant 0 : index
    %c0_86 = arith.constant 0 : index
    %c1_87 = arith.constant 1 : index
    %c0_88 = arith.constant 0 : index
    %100 = vector.load %arg5[%c0_85, %c0_86, %c1_87, %c0_88] : memref<1x1x2x8xf32, #tpu.memory_space<vmem>>, vector<1x1x1x8xf32>
    %101 = vector.shape_cast %100 : vector<1x1x1x8xf32> to vector<1x8xf32>
    %102 = vector.shape_cast %99 : vector<1x8xf32> to vector<1x1x1x8xf32>
    tpu.vector_store %arg5[%c0_85, %c0_86, %c1_87, %c0_88], %102 {strides = array<i32>} : memref<1x1x2x8xf32, #tpu.memory_space<vmem>>, vector<1x1x1x8xf32>,
    return
  }
  func.func @transform_0(%arg0: i32, %arg1: i32) -> (i32, i32, i32, i32) {
    %c0_i32 = arith.constant 0 : i32
    %c0_i32_0 = arith.constant 0 : i32
    %c0_i32_1 = arith.constant 0 : i32
    %c0_i32_2 = arith.constant 0 : i32
    return %arg0, %c0_i32, %c0_i32_0, %c0_i32_1 : i32, i32, i32, i32
  }
  func.func @transform_1(%arg0: i32, %arg1: i32) -> (i32, i32, i32) {
    %c0_i32 = arith.constant 0 : i32
    %c0_i32_0 = arith.constant 0 : i32
    %c0_i32_1 = arith.constant 0 : i32
    %c0_i32_2 = arith.constant 0 : i32
    return %c0_i32, %c0_i32_0, %c0_i32_1 : i32, i32, i32
  }
  func.func @transform_2(%arg0: i32, %arg1: i32) -> (i32, i32, i32) {
    %c0_i32 = arith.constant 0 : i32
    %c0_i32_0 = arith.constant 0 : i32
    return %arg0, %arg1, %c0_i32 : i32, i32, i32
  }
  func.func @transform_3(%arg0: i32, %arg1: i32) -> (i32, i32, i32, i32) {
    %c0_i32 = arith.constant 0 : i32
    %c0_i32_0 = arith.constant 0 : i32
    %c0_i32_1 = arith.constant 0 : i32
    return %arg0, %arg1, %c0_i32, %c0_i32_0 : i32, i32, i32, i32
  }
}

module attributes {stable_mosaic.version = 11 : i64} {
  func.func @bn_act_kernel(%arg0: i32, %arg1: memref<1x8xf32, #tpu.memory_space<vmem>>, %arg2: memref<1x8xf32, #tpu.memory_space<vmem>>, %arg3: memref<512x8xbf16, #tpu.memory_space<vmem>>, %arg4: memref<512x8xf32, #tpu.memory_space<vmem>>) attributes {dimension_semantics = [#tpu.dimension_semantics<parallel>], iteration_bounds = array<i64: 1>, scalar_prefetch = 0 : i64, scratch_operands = 0 : i64, tpu.core_type = #tpu.core_type<tc>, window_params = [{pipeline_mode = #tpu.pipeline_mode<synchronous>, transform_indices = @transform_0, window_bounds = array<i64: 1, 8>}, {pipeline_mode = #tpu.pipeline_mode<synchronous>, transform_indices = @transform_1, window_bounds = array<i64: 1, 8>}, {transform_indices = @transform_2, window_bounds = array<i64: 512, 8>}, {transform_indices = @transform_3, window_bounds = array<i64: 512, 8>}]} {
    %c0 = arith.constant 0 : index
    %c0_0 = arith.constant 0 : index
    %0 = vector.load %arg3[%c0, %c0_0] : memref<512x8xbf16, #tpu.memory_space<vmem>>, vector<512x8xbf16>
    %1 = arith.extf %0 : vector<512x8xbf16> to vector<512x8xf32>
    %c0_1 = arith.constant 0 : index
    %c0_2 = arith.constant 0 : index
    %2 = vector.load %arg1[%c0_1, %c0_2] : memref<1x8xf32, #tpu.memory_space<vmem>>, vector<1x8xf32>
    %3 = vector.broadcast %2 : vector<1x8xf32> to vector<512x8xf32>
    %4 = arith.mulf %1, %3 : vector<512x8xf32>
    %c0_3 = arith.constant 0 : index
    %c0_4 = arith.constant 0 : index
    %5 = vector.load %arg2[%c0_3, %c0_4] : memref<1x8xf32, #tpu.memory_space<vmem>>, vector<1x8xf32>
    %6 = vector.broadcast %5 : vector<1x8xf32> to vector<512x8xf32>
    %7 = arith.addf %4, %6 : vector<512x8xf32>
    %cst = arith.constant 0.000000e+00 : f32
    %8 = vector.broadcast %cst : f32 to vector<512x8xf32>
    %9 = arith.cmpf ogt, %7, %8 : vector<512x8xf32>
    %cst_5 = arith.constant 1.000000e-01 : f32
    %10 = vector.broadcast %cst_5 : f32 to vector<512x8xf32>
    %11 = arith.mulf %10, %7 : vector<512x8xf32>
    %12 = arith.select %9, %7, %11 : vector<512x8xi1>, vector<512x8xf32>
    %c0_6 = arith.constant 0 : index
    %c0_7 = arith.constant 0 : index
    %13 = vector.load %arg4[%c0_6, %c0_7] : memref<512x8xf32, #tpu.memory_space<vmem>>, vector<512x8xf32>
    tpu.vector_store %arg4[%c0_6, %c0_7], %12 {strides = array<i32>} : memref<512x8xf32, #tpu.memory_space<vmem>>, vector<512x8xf32>,
    return
  }
  func.func @transform_0(%arg0: i32) -> (i32, i32) {
    %c0_i32 = arith.constant 0 : i32
    %c0_i32_0 = arith.constant 0 : i32
    %c0_i32_1 = arith.constant 0 : i32
    return %c0_i32, %c0_i32_0 : i32, i32
  }
  func.func @transform_1(%arg0: i32) -> (i32, i32) {
    %c0_i32 = arith.constant 0 : i32
    %c0_i32_0 = arith.constant 0 : i32
    %c0_i32_1 = arith.constant 0 : i32
    return %c0_i32, %c0_i32_0 : i32, i32
  }
  func.func @transform_2(%arg0: i32) -> (i32, i32) {
    %c0_i32 = arith.constant 0 : i32
    %c0_i32_0 = arith.constant 0 : i32
    return %arg0, %c0_i32 : i32, i32
  }
  func.func @transform_3(%arg0: i32) -> (i32, i32) {
    %c0_i32 = arith.constant 0 : i32
    %c0_i32_0 = arith.constant 0 : i32
    return %arg0, %c0_i32 : i32, i32
  }
}

</mosaic_0001>

<bundles_post_ra>
// kernel: cnn_block_forward.3
= control target key start
LH: loop header
LB: loop body
LE: loop exit
PB: predicated region body
PF: predicated region fallthrough
CT: control target
= control target key end

     0   :  { %vm476_vm0 = vcmask 64512   ;;  %s1216_s0 = inlined_call_operand.vmem [shape: f32[1,8], index: 0, kind: input, shape index: {}]   ;;  %s1217_s1 = inlined_call_operand.vmem [shape: f32[1,8], index: 1, kind: input, shape index: {}]   ;;  %s1218_s2 = inlined_call_operand.vmem [shape: bf16[512,8], index: 2, kind: input, shape index: {}]   ;;  %s1219_s3 = inlined_call_operand.vmem [shape: f32[512,8], index: 3, kind: output, shape index: {}]  }
   0x1   :  { %v548_v0 = vld [vmem:[%s1218_s2] sm:$0xff]   ;;  %v675_v4 = vld [vmem:[%s1218_s2 + $0x8] sm:$0xff]   ;;  %v676_v5 = vld [vmem:[%s1218_s2 + $0x10] sm:$0xff]  }
   0x2   :  { %v732_v1 = vld [vmem:[%s1216_s0] ss:$0 sm:$0xff]  ;;  %v549_v2 = vunpack.c.l.bf16 %v548_v0  ;;  %v550_v3 = vunpack.c.h.bf16 %v548_v0  ;;  %v677_v6 = vld [vmem:[%s1218_s2 + $0x18] sm:$0xff]   ;;  %v553_v8 = vunpack.c.l.bf16 %v675_v4  ;;  %v554_v9 = vunpack.c.h.bf16 %v675_v4  ;;  %v679_v36 = vld [vmem:[%s1218_s2 + $0x28] sm:$0xff]  }
   0x3   :  { %v746_v7 = vld [vmem:[%s1217_s1] ss:$0 sm:$0xff]  ;;  %v557_v10 = vunpack.c.l.bf16 %v676_v5  ;;  %v558_v11 = vunpack.c.h.bf16 %v676_v5  ;;  %v561_v14 = vunpack.c.l.bf16 %v677_v6  ;;  %v562_v15 = vunpack.c.h.bf16 %v677_v6  ;;  %v680_v48 = vld [vmem:[%s1218_s2 + $0x30] sm:$0xff]   ;;  %v681_v55 = vld [vmem:[%s1218_s2 + $0x38] sm:$0xff]  }
   0x4   :  { %v149_v12 = vmul.f32 %v549_v2, %v732_v1  ;;  %v150_v13 = vmul.f32 %v550_v3, %v732_v1  ;;  %v151_v16 = vmul.f32 %v553_v8, %v732_v1  ;;  %v152_v17 = vmul.f32 %v554_v9, %v732_v1  ;;  %v678_v28 = vld [vmem:[%s1218_s2 + $0x20] sm:$0xff]  }
   0x5   :  { %v153_v18 = vmul.f32 %v557_v10, %v732_v1  ;;  %v154_v19 = vmul.f32 %v558_v11, %v732_v1  ;;  %v155_v22 = vmul.f32 %v561_v14, %v732_v1  ;;  %v156_v23 = vmul.f32 %v562_v15, %v732_v1  ;;  %v682_v14 = vld [vmem:[%s1218_s2 + $0x40] sm:$0xff]  }
   0x6   :  { %v220_v20 = vadd.f32 %v746_v7, %v149_v12  ;;  %v221_v21 = vadd.f32 %v746_v7, %v150_v13  ;;  %v222_v24 = vadd.f32 %v746_v7, %v151_v16  ;;  %v223_v25 = vadd.f32 %v746_v7, %v152_v17 }
   0x7   :  { %v224_v26 = vadd.f32 %v746_v7, %v153_v18  ;;  %v225_v27 = vadd.f32 %v746_v7, %v154_v19  ;;  %v226_v41 = vadd.f32 %v746_v7, %v155_v22  ;;  %v227_v42 = vadd.f32 %v746_v7, %v156_v23  ;;  %v683_v19 = vld [vmem:[%s1218_s2 + $0x48] sm:$0xff]  }
   0x8   :  { %vm284_vm1 = vcmp.gt.f32.partialorder %v220_v20, 0.0  ;;  %v348_v29 = vmul.f32 0.1, %v220_v20  ;;  %vm285_vm2 = vcmp.gt.f32.partialorder %v221_v21, 0.0  ;;  %v349_v30 = vmul.f32 0.1, %v221_v21 }
   0x9   :  { %vm286_vm3 = vcmp.gt.f32.partialorder %v222_v24, 0.0  ;;  %v350_v31 = vmul.f32 0.1, %v222_v24  ;;  %vm287_vm4 = vcmp.gt.f32.partialorder %v223_v25, 0.0  ;;  %v351_v32 = vmul.f32 0.1, %v223_v25 }
   0xa   :  { %v412_v33 = vsel %vm284_vm1, %v220_v20, %v348_v29  ;;  %v413_v34 = vsel %vm285_vm2, %v221_v21, %v349_v30  ;;  %vm288_vm5 = vcmp.gt.f32.partialorder %v224_v26, 0.0  ;;  %v352_v35 = vmul.f32 0.1, %v224_v26  ;;  %v684_v30 = vld [vmem:[%s1218_s2 + $0x50] sm:$0xff]  }
   0xb   :  { %477 = vst.msk [vmem:[%s1219_s3] sm:$0xff] %vm476_vm0, %v412_v33  ;;  %478 = vst.msk [vmem:[%s1219_s3 + $0x8] sm:$0xff] %vm476_vm0, %v413_v34  ;;  %v414_v37 = vsel %vm286_vm3, %v222_v24, %v350_v31  ;;  %v415_v38 = vsel %vm287_vm4, %v223_v25, %v351_v32  ;;  %vm289_vm6 = vcmp.gt.f32.partialorder %v225_v27, 0.0  ;;  %v353_v39 = vmul.f32 0.1, %v225_v27 }
   0xc   :  { %479 = vst.msk [vmem:[%s1219_s3 + $0x10] sm:$0xff] %vm476_vm0, %v414_v37  ;;  %480 = vst.msk [vmem:[%s1219_s3 + $0x18] sm:$0xff] %vm476_vm0, %v415_v38  ;;  %v416_v40 = vsel %vm288_vm5, %v224_v26, %v352_v35  ;;  %v565_v43 = vunpack.c.l.bf16 %v678_v28  ;;  %v566_v45 = vunpack.c.h.bf16 %v678_v28  ;;  %v569_v46 = vunpack.c.l.bf16 %v679_v36  ;;  %v685_v37 = vld [vmem:[%s1218_s2 + $0x58] sm:$0xff]  }
   0xd   :  { %481 = vst.msk [vmem:[%s1219_s3 + $0x20] sm:$0xff] %vm476_vm0, %v416_v40  ;;  %v417_v44 = vsel %vm289_vm6, %v225_v27, %v353_v39  ;;  %v570_v47 = vunpack.c.h.bf16 %v679_v36  ;;  %vm290_vm7 = vcmp.gt.f32.partialorder %v226_v41, 0.0  ;;  %v354_v49 = vmul.f32 0.1, %v226_v41 }
   0xe   :  { %482 = vst.msk [vmem:[%s1219_s3 + $0x28] sm:$0xff] %vm476_vm0, %v417_v44  ;;  %vm291_vm8 = vcmp.gt.f32.partialorder %v227_v42, 0.0  ;;  %v355_v50 = vmul.f32 0.1, %v227_v42  ;;  %v157_v51 = vmul.f32 %v565_v43, %v732_v1  ;;  %v158_v52 = vmul.f32 %v566_v45, %v732_v1 }
   0xf   :  { %v159_v53 = vmul.f32 %v569_v46, %v732_v1  ;;  %v160_v54 = vmul.f32 %v570_v47, %v732_v1  ;;  %v418_v56 = vsel %vm290_vm7, %v226_v41, %v354_v49  ;;  %v573_v58 = vunpack.c.l.bf16 %v680_v48 }
  0x10   :  { %v419_v57 = vsel %vm291_vm8, %v227_v42, %v355_v50  ;;  %v574_v59 = vunpack.c.h.bf16 %v680_v48  ;;  %483 = vst.msk [vmem:[%s1219_s3 + $0x30] sm:$0xff] %vm476_vm0, %v418_v56  ;;  %v228_v60 = vadd.f32 %v746_v7, %v157_v51  ;;  %v229_v61 = vadd.f32 %v746_v7, %v158_v52 }
  0x11   :  { %484 = vst.msk [vmem:[%s1219_s3 + $0x38] sm:$0xff] %vm476_vm0, %v419_v57  ;;  %v230_v62 = vadd.f32 %v746_v7, %v159_v53  ;;  %v231_v63 = vadd.f32 %v746_v7, %v160_v54  ;;  %v161_v0 = vmul.f32 %v573_v58, %v732_v1  ;;  %v577_v3 = vunpack.c.l.bf16 %v681_v55  ;;  %v686_v58 = vld [vmem:[%s1218_s2 + $0x60] sm:$0xff]  }
  0x12   :  { %v162_v2 = vmul.f32 %v574_v59, %v732_v1  ;;  %v578_v4 = vunpack.c.h.bf16 %v681_v55  ;;  %vm292_vm9 = vcmp.gt.f32.partialorder %v228_v60, 0.0  ;;  %v356_v5 = vmul.f32 0.1, %v228_v60 }
  0x13   :  { %vm293_vm10 = vcmp.gt.f32.partialorder %v229_v61, 0.0  ;;  %v357_v6 = vmul.f32 0.1, %v229_v61  ;;  %vm294_vm11 = vcmp.gt.f32.partialorder %v230_v62, 0.0  ;;  %v358_v8 = vmul.f32 0.1, %v230_v62 }
  0x14   :  { %vm295_vm12 = vcmp.gt.f32.partialorder %v231_v63, 0.0  ;;  %v359_v9 = vmul.f32 0.1, %v231_v63  ;;  %v420_v10 = vsel %vm292_vm9, %v228_v60, %v356_v5  ;;  %v232_v12 = vadd.f32 %v746_v7, %v161_v0 }
  0x15   :  { %v421_v11 = vsel %vm293_vm10, %v229_v61, %v357_v6  ;;  %v233_v13 = vadd.f32 %v746_v7, %v162_v2  ;;  %485 = vst.msk [vmem:[%s1219_s3 + $0x40] sm:$0xff] %vm476_vm0, %v420_v10  ;;  %v422_v15 = vsel %vm294_vm11, %v230_v62, %v358_v8  ;;  %v163_v17 = vmul.f32 %v577_v3, %v732_v1 }
  0x16   :  { %486 = vst.msk [vmem:[%s1219_s3 + $0x48] sm:$0xff] %vm476_vm0, %v421_v11  ;;  %v423_v16 = vsel %vm295_vm12, %v231_v63, %v359_v9  ;;  %v164_v18 = vmul.f32 %v578_v4, %v732_v1  ;;  %487 = vst.msk [vmem:[%s1219_s3 + $0x50] sm:$0xff] %vm476_vm0, %v422_v15  ;;  %vm296_vm13 = vcmp.gt.f32.partialorder %v232_v12, 0.0  ;;  %v360_v20 = vmul.f32 0.1, %v232_v12  ;;  %v687_v63 = vld [vmem:[%s1218_s2 + $0x68] sm:$0xff]  }
  0x17   :  { %488 = vst.msk [vmem:[%s1219_s3 + $0x58] sm:$0xff] %vm476_vm0, %v423_v16  ;;  %vm297_vm14 = vcmp.gt.f32.partialorder %v233_v13, 0.0  ;;  %v361_v21 = vmul.f32 0.1, %v233_v13  ;;  %v234_v22 = vadd.f32 %v746_v7, %v163_v17  ;;  %v581_v24 = vunpack.c.l.bf16 %v682_v14 }
  0x18   :  { %v235_v23 = vadd.f32 %v746_v7, %v164_v18  ;;  %v582_v25 = vunpack.c.h.bf16 %v682_v14  ;;  %v424_v26 = vsel %vm296_vm13, %v232_v12, %v360_v20  ;;  %v585_v28 = vunpack.c.l.bf16 %v683_v19  ;;  %v688_v12 = vld [vmem:[%s1218_s2 + $0x70] sm:$0xff]  }
  0x19   :  { %v425_v27 = vsel %vm297_vm14, %v233_v13, %v361_v21  ;;  %v586_v29 = vunpack.c.h.bf16 %v683_v19  ;;  %489 = vst.msk [vmem:[%s1219_s3 + $0x60] sm:$0xff] %vm476_vm0, %v424_v26  ;;  %vm298_vm15 = vcmp.gt.f32.partialorder %v234_v22, 0.0  ;;  %v362_v31 = vmul.f32 0.1, %v234_v22  ;;  %v689_v19 = vld [vmem:[%s1218_s2 + $0x78] sm:$0xff]  }
  0x1a   :  { %490 = vst.msk [vmem:[%s1219_s3 + $0x68] sm:$0xff] %vm476_vm0, %v425_v27  ;;  %vm299_vm1 = vcmp.gt.f32.partialorder %v235_v23, 0.0  ;;  %v363_v32 = vmul.f32 0.1, %v235_v23  ;;  %v165_v33 = vmul.f32 %v581_v24, %v732_v1  ;;  %v166_v34 = vmul.f32 %v582_v25, %v732_v1 }
  0x1b   :  { %v167_v35 = vmul.f32 %v585_v28, %v732_v1  ;;  %v168_v36 = vmul.f32 %v586_v29, %v732_v1  ;;  %v426_v38 = vsel %vm298_vm15, %v234_v22, %v362_v31  ;;  %v589_v40 = vunpack.c.l.bf16 %v684_v30 }
  0x1c   :  { %v427_v39 = vsel %vm299_vm1, %v235_v23, %v363_v32  ;;  %v590_v41 = vunpack.c.h.bf16 %v684_v30  ;;  %491 = vst.msk [vmem:[%s1219_s3 + $0x70] sm:$0xff] %vm476_vm0, %v426_v38  ;;  %v236_v42 = vadd.f32 %v746_v7, %v165_v33  ;;  %v237_v43 = vadd.f32 %v746_v7, %v166_v34 }
  0x1d   :  { %492 = vst.msk [vmem:[%s1219_s3 + $0x78] sm:$0xff] %vm476_vm0, %v427_v39  ;;  %v238_v44 = vadd.f32 %v746_v7, %v167_v35  ;;  %v239_v45 = vadd.f32 %v746_v7, %v168_v36  ;;  %v169_v46 = vmul.f32 %v589_v40, %v732_v1  ;;  %v593_v48 = vunpack.c.l.bf16 %v685_v37  ;;  %v690_v40 = vld [vmem:[%s1218_s2 + $0x80] sm:$0xff]  }
  0x1e   :  { %v170_v47 = vmul.f32 %v590_v41, %v732_v1  ;;  %v594_v49 = vunpack.c.h.bf16 %v685_v37  ;;  %vm300_vm2 = vcmp.gt.f32.partialorder %v236_v42, 0.0  ;;  %v364_v50 = vmul.f32 0.1, %v236_v42 }
  0x1f   :  { %vm301_vm3 = vcmp.gt.f32.partialorder %v237_v43, 0.0  ;;  %v365_v51 = vmul.f32 0.1, %v237_v43  ;;  %vm302_vm4 = vcmp.gt.f32.partialorder %v238_v44, 0.0  ;;  %v366_v52 = vmul.f32 0.1, %v238_v44 }
  0x20   :  { %vm303_vm5 = vcmp.gt.f32.partialorder %v239_v45, 0.0  ;;  %v367_v53 = vmul.f32 0.1, %v239_v45  ;;  %v428_v54 = vsel %vm300_vm2, %v236_v42, %v364_v50  ;;  %v240_v56 = vadd.f32 %v746_v7, %v169_v46 }
  0x21   :  { %v429_v55 = vsel %vm301_vm3, %v237_v43, %v365_v51  ;;  %v241_v57 = vadd.f32 %v746_v7, %v170_v47  ;;  %493 = vst.msk [vmem:[%s1219_s3 + $0x80] sm:$0xff] %vm476_vm0, %v428_v54  ;;  %v430_v59 = vsel %vm302_vm4, %v238_v44, %v366_v52  ;;  %v171_v61 = vmul.f32 %v593_v48, %v732_v1 }
  0x22   :  { %494 = vst.msk [vmem:[%s1219_s3 + $0x88] sm:$0xff] %vm476_vm0, %v429_v55  ;;  %v431_v60 = vsel %vm303_vm5, %v239_v45, %v367_v53  ;;  %v172_v62 = vmul.f32 %v594_v49, %v732_v1  ;;  %495 = vst.msk [vmem:[%s1219_s3 + $0x90] sm:$0xff] %vm476_vm0, %v430_v59  ;;  %vm304_vm6 = vcmp.gt.f32.partialorder %v240_v56, 0.0  ;;  %v368_v0 = vmul.f32 0.1, %v240_v56  ;;  %v691_v45 = vld [vmem:[%s1218_s2 + $0x88] sm:$0xff]  }
  0x23   :  { %496 = vst.msk [vmem:[%s1219_s3 + $0x98] sm:$0xff] %vm476_vm0, %v431_v60  ;;  %vm305_vm7 = vcmp.gt.f32.partialorder %v241_v57, 0.0  ;;  %v369_v2 = vmul.f32 0.1, %v241_v57  ;;  %v242_v3 = vadd.f32 %v746_v7, %v171_v61  ;;  %v597_v5 = vunpack.c.l.bf16 %v686_v58 }
  0x24   :  { %v243_v4 = vadd.f32 %v746_v7, %v172_v62  ;;  %v598_v6 = vunpack.c.h.bf16 %v686_v58  ;;  %v432_v8 = vsel %vm304_vm6, %v240_v56, %v368_v0  ;;  %v601_v10 = vunpack.c.l.bf16 %v687_v63  ;;  %v692_v56 = vld [vmem:[%s1218_s2 + $0x90] sm:$0xff]  }
  0x25   :  { %v433_v9 = vsel %vm305_vm7, %v241_v57, %v369_v2  ;;  %v602_v11 = vunpack.c.h.bf16 %v687_v63  ;;  %497 = vst.msk [vmem:[%s1219_s3 + $0xa0] sm:$0xff] %vm476_vm0, %v432_v8  ;;  %vm306_vm8 = vcmp.gt.f32.partialorder %v242_v3, 0.0  ;;  %v370_v13 = vmul.f32 0.1, %v242_v3  ;;  %v693_v63 = vld [vmem:[%s1218_s2 + $0x98] sm:$0xff]  }
  0x26   :  { %498 = vst.msk [vmem:[%s1219_s3 + $0xa8] sm:$0xff] %vm476_vm0, %v433_v9  ;;  %vm307_vm9 = vcmp.gt.f32.partialorder %v243_v4, 0.0  ;;  %v371_v14 = vmul.f32 0.1, %v243_v4  ;;  %v173_v15 = vmul.f32 %v597_v5, %v732_v1  ;;  %v174_v16 = vmul.f32 %v598_v6, %v732_v1 }
  0x27   :  { %v175_v17 = vmul.f32 %v601_v10, %v732_v1  ;;  %v176_v18 = vmul.f32 %v602_v11, %v732_v1  ;;  %v434_v20 = vsel %vm306_vm8, %v242_v3, %v370_v13  ;;  %v605_v22 = vunpack.c.l.bf16 %v688_v12 }
  0x28   :  { %v435_v21 = vsel %vm307_vm9, %v243_v4, %v371_v14  ;;  %v606_v23 = vunpack.c.h.bf16 %v688_v12  ;;  %499 = vst.msk [vmem:[%s1219_s3 + $0xb0] sm:$0xff] %vm476_vm0, %v434_v20  ;;  %v244_v24 = vadd.f32 %v746_v7, %v173_v15  ;;  %v245_v25 = vadd.f32 %v746_v7, %v174_v16 }
  0x29   :  { %500 = vst.msk [vmem:[%s1219_s3 + $0xb8] sm:$0xff] %vm476_vm0, %v435_v21  ;;  %v246_v26 = vadd.f32 %v746_v7, %v175_v17  ;;  %v247_v27 = vadd.f32 %v746_v7, %v176_v18  ;;  %v177_v28 = vmul.f32 %v605_v22, %v732_v1  ;;  %v609_v30 = vunpack.c.l.bf16 %v689_v19  ;;  %v694_v22 = vld [vmem:[%s1218_s2 + $0xa0] sm:$0xff]  }
  0x2a   :  { %v178_v29 = vmul.f32 %v606_v23, %v732_v1  ;;  %v610_v31 = vunpack.c.h.bf16 %v689_v19  ;;  %vm308_vm10 = vcmp.gt.f32.partialorder %v244_v24, 0.0  ;;  %v372_v32 = vmul.f32 0.1, %v244_v24 }
  0x2b   :  { %vm309_vm11 = vcmp.gt.f32.partialorder %v245_v25, 0.0  ;;  %v373_v33 = vmul.f32 0.1, %v245_v25  ;;  %vm310_vm12 = vcmp.gt.f32.partialorder %v246_v26, 0.0  ;;  %v374_v34 = vmul.f32 0.1, %v246_v26 }
  0x2c   :  { %vm311_vm13 = vcmp.gt.f32.partialorder %v247_v27, 0.0  ;;  %v375_v35 = vmul.f32 0.1, %v247_v27  ;;  %v436_v36 = vsel %vm308_vm10, %v244_v24, %v372_v32  ;;  %v248_v38 = vadd.f32 %v746_v7, %v177_v28 }
  0x2d   :  { %v437_v37 = vsel %vm309_vm11, %v245_v25, %v373_v33  ;;  %v249_v39 = vadd.f32 %v746_v7, %v178_v29  ;;  %501 = vst.msk [vmem:[%s1219_s3 + $0xc0] sm:$0xff] %vm476_vm0, %v436_v36  ;;  %v438_v41 = vsel %vm310_vm12, %v246_v26, %v374_v34  ;;  %v179_v43 = vmul.f32 %v609_v30, %v732_v1 }
  0x2e   :  { %502 = vst.msk [vmem:[%s1219_s3 + $0xc8] sm:$0xff] %vm476_vm0, %v437_v37  ;;  %v439_v42 = vsel %vm311_vm13, %v247_v27, %v375_v35  ;;  %v180_v44 = vmul.f32 %v610_v31, %v732_v1  ;;  %503 = vst.msk [vmem:[%s1219_s3 + $0xd0] sm:$0xff] %vm476_vm0, %v438_v41  ;;  %vm312_vm14 = vcmp.gt.f32.partialorder %v248_v38, 0.0  ;;  %v376_v46 = vmul.f32 0.1, %v248_v38  ;;  %v695_v27 = vld [vmem:[%s1218_s2 + $0xa8] sm:$0xff]  }
  0x2f   :  { %504 = vst.msk [vmem:[%s1219_s3 + $0xd8] sm:$0xff] %vm476_vm0, %v439_v42  ;;  %vm313_vm15 = vcmp.gt.f32.partialorder %v249_v39, 0.0  ;;  %v377_v47 = vmul.f32 0.1, %v249_v39  ;;  %v250_v48 = vadd.f32 %v746_v7, %v179_v43  ;;  %v613_v50 = vunpack.c.l.bf16 %v690_v40 }
  0x30   :  { %v251_v49 = vadd.f32 %v746_v7, %v180_v44  ;;  %v614_v51 = vunpack.c.h.bf16 %v690_v40  ;;  %v440_v52 = vsel %vm312_vm14, %v248_v38, %v376_v46  ;;  %v617_v54 = vunpack.c.l.bf16 %v691_v45  ;;  %v696_v38 = vld [vmem:[%s1218_s2 + $0xb0] sm:$0xff]  }
  0x31   :  { %v441_v53 = vsel %vm313_vm15, %v249_v39, %v377_v47  ;;  %v618_v55 = vunpack.c.h.bf16 %v691_v45  ;;  %505 = vst.msk [vmem:[%s1219_s3 + $0xe0] sm:$0xff] %vm476_vm0, %v440_v52  ;;  %vm314_vm1 = vcmp.gt.f32.partialorder %v250_v48, 0.0  ;;  %v378_v57 = vmul.f32 0.1, %v250_v48  ;;  %v697_v45 = vld [vmem:[%s1218_s2 + $0xb8] sm:$0xff]  }
  0x32   :  { %506 = vst.msk [vmem:[%s1219_s3 + $0xe8] sm:$0xff] %vm476_vm0, %v441_v53  ;;  %vm315_vm2 = vcmp.gt.f32.partialorder %v251_v49, 0.0  ;;  %v379_v58 = vmul.f32 0.1, %v251_v49  ;;  %v181_v59 = vmul.f32 %v613_v50, %v732_v1  ;;  %v182_v60 = vmul.f32 %v614_v51, %v732_v1 }
  0x33   :  { %v183_v61 = vmul.f32 %v617_v54, %v732_v1  ;;  %v184_v62 = vmul.f32 %v618_v55, %v732_v1  ;;  %v442_v0 = vsel %vm314_vm1, %v250_v48, %v378_v57  ;;  %v621_v3 = vunpack.c.l.bf16 %v692_v56 }
  0x34   :  { %v443_v2 = vsel %vm315_vm2, %v251_v49, %v379_v58  ;;  %v622_v4 = vunpack.c.h.bf16 %v692_v56  ;;  %507 = vst.msk [vmem:[%s1219_s3 + $0xf0] sm:$0xff] %vm476_vm0, %v442_v0  ;;  %v252_v5 = vadd.f32 %v746_v7, %v181_v59  ;;  %v253_v6 = vadd.f32 %v746_v7, %v182_v60 }
  0x35   :  { %508 = vst.msk [vmem:[%s1219_s3 + $0xf8] sm:$0xff] %vm476_vm0, %v443_v2  ;;  %v254_v8 = vadd.f32 %v746_v7, %v183_v61  ;;  %v255_v9 = vadd.f32 %v746_v7, %v184_v62  ;;  %v185_v10 = vmul.f32 %v621_v3, %v732_v1  ;;  %v625_v12 = vunpack.c.l.bf16 %v693_v63  ;;  %v698_v3 = vld [vmem:[%s1218_s2 + $0xc0] sm:$0xff]  }
  0x36   :  { %v186_v11 = vmul.f32 %v622_v4, %v732_v1  ;;  %v626_v13 = vunpack.c.h.bf16 %v693_v63  ;;  %vm316_vm3 = vcmp.gt.f32.partialorder %v252_v5, 0.0  ;;  %v380_v14 = vmul.f32 0.1, %v252_v5 }
  0x37   :  { %vm317_vm4 = vcmp.gt.f32.partialorder %v253_v6, 0.0  ;;  %v381_v15 = vmul.f32 0.1, %v253_v6  ;;  %vm318_vm5 = vcmp.gt.f32.partialorder %v254_v8, 0.0  ;;  %v382_v16 = vmul.f32 0.1, %v254_v8 }
  0x38   :  { %vm319_vm6 = vcmp.gt.f32.partialorder %v255_v9, 0.0  ;;  %v383_v17 = vmul.f32 0.1, %v255_v9  ;;  %v444_v18 = vsel %vm316_vm3, %v252_v5, %v380_v14  ;;  %v256_v20 = vadd.f32 %v746_v7, %v185_v10 }
  0x39   :  { %v445_v19 = vsel %vm317_vm4, %v253_v6, %v381_v15  ;;  %v257_v21 = vadd.f32 %v746_v7, %v186_v11  ;;  %509 = vst.msk [vmem:[%s1219_s3 + $0x100] sm:$0xff] %vm476_vm0, %v444_v18  ;;  %v446_v23 = vsel %vm318_vm5, %v254_v8, %v382_v16  ;;  %v187_v25 = vmul.f32 %v625_v12, %v732_v1 }
  0x3a   :  { %510 = vst.msk [vmem:[%s1219_s3 + $0x108] sm:$0xff] %vm476_vm0, %v445_v19  ;;  %v447_v24 = vsel %vm319_vm6, %v255_v9, %v383_v17  ;;  %v188_v26 = vmul.f32 %v626_v13, %v732_v1  ;;  %511 = vst.msk [vmem:[%s1219_s3 + $0x110] sm:$0xff] %vm476_vm0, %v446_v23  ;;  %vm320_vm7 = vcmp.gt.f32.partialorder %v256_v20, 0.0  ;;  %v384_v28 = vmul.f32 0.1, %v256_v20  ;;  %v699_v9 = vld [vmem:[%s1218_s2 + $0xc8] sm:$0xff]  }
  0x3b   :  { %512 = vst.msk [vmem:[%s1219_s3 + $0x118] sm:$0xff] %vm476_vm0, %v447_v24  ;;  %vm321_vm8 = vcmp.gt.f32.partialorder %v257_v21, 0.0  ;;  %v385_v29 = vmul.f32 0.1, %v257_v21  ;;  %v258_v30 = vadd.f32 %v746_v7, %v187_v25  ;;  %v629_v32 = vunpack.c.l.bf16 %v694_v22 }
  0x3c   :  { %v259_v31 = vadd.f32 %v746_v7, %v188_v26  ;;  %v630_v33 = vunpack.c.h.bf16 %v694_v22  ;;  %v448_v34 = vsel %vm320_vm7, %v256_v20, %v384_v28  ;;  %v633_v36 = vunpack.c.l.bf16 %v695_v27  ;;  %v700_v20 = vld [vmem:[%s1218_s2 + $0xd0] sm:$0xff]  }
  0x3d   :  { %v449_v35 = vsel %vm321_vm8, %v257_v21, %v385_v29  ;;  %v634_v37 = vunpack.c.h.bf16 %v695_v27  ;;  %513 = vst.msk [vmem:[%s1219_s3 + $0x120] sm:$0xff] %vm476_vm0, %v448_v34  ;;  %vm322_vm9 = vcmp.gt.f32.partialorder %v258_v30, 0.0  ;;  %v386_v39 = vmul.f32 0.1, %v258_v30  ;;  %v701_v27 = vld [vmem:[%s1218_s2 + $0xd8] sm:$0xff]  }
  0x3e   :  { %514 = vst.msk [vmem:[%s1219_s3 + $0x128] sm:$0xff] %vm476_vm0, %v449_v35  ;;  %vm323_vm10 = vcmp.gt.f32.partialorder %v259_v31, 0.0  ;;  %v387_v40 = vmul.f32 0.1, %v259_v31  ;;  %v189_v41 = vmul.f32 %v629_v32, %v732_v1  ;;  %v190_v42 = vmul.f32 %v630_v33, %v732_v1 }
  0x3f   :  { %v191_v43 = vmul.f32 %v633_v36, %v732_v1  ;;  %v192_v44 = vmul.f32 %v634_v37, %v732_v1  ;;  %v450_v46 = vsel %vm322_vm9, %v258_v30, %v386_v39  ;;  %v637_v48 = vunpack.c.l.bf16 %v696_v38 }
  0x40   :  { %v451_v47 = vsel %vm323_vm10, %v259_v31, %v387_v40  ;;  %v638_v49 = vunpack.c.h.bf16 %v696_v38  ;;  %515 = vst.msk [vmem:[%s1219_s3 + $0x130] sm:$0xff] %vm476_vm0, %v450_v46  ;;  %v260_v50 = vadd.f32 %v746_v7, %v189_v41  ;;  %v261_v51 = vadd.f32 %v746_v7, %v190_v42 }
  0x41   :  { %516 = vst.msk [vmem:[%s1219_s3 + $0x138] sm:$0xff] %vm476_vm0, %v451_v47  ;;  %v262_v52 = vadd.f32 %v746_v7, %v191_v43  ;;  %v263_v53 = vadd.f32 %v746_v7, %v192_v44  ;;  %v193_v54 = vmul.f32 %v637_v48, %v732_v1  ;;  %v641_v56 = vunpack.c.l.bf16 %v697_v45  ;;  %v702_v48 = vld [vmem:[%s1218_s2 + $0xe0] sm:$0xff]  }
  0x42   :  { %v194_v55 = vmul.f32 %v638_v49, %v732_v1  ;;  %v642_v57 = vunpack.c.h.bf16 %v697_v45  ;;  %vm324_vm11 = vcmp.gt.f32.partialorder %v260_v50, 0.0  ;;  %v388_v58 = vmul.f32 0.1, %v260_v50 }
  0x43   :  { %vm325_vm12 = vcmp.gt.f32.partialorder %v261_v51, 0.0  ;;  %v389_v59 = vmul.f32 0.1, %v261_v51  ;;  %vm326_vm13 = vcmp.gt.f32.partialorder %v262_v52, 0.0  ;;  %v390_v60 = vmul.f32 0.1, %v262_v52 }
  0x44   :  { %vm327_vm14 = vcmp.gt.f32.partialorder %v263_v53, 0.0  ;;  %v391_v61 = vmul.f32 0.1, %v263_v53  ;;  %v452_v62 = vsel %vm324_vm11, %v260_v50, %v388_v58  ;;  %v264_v0 = vadd.f32 %v746_v7, %v193_v54 }
  0x45   :  { %v453_v63 = vsel %vm325_vm12, %v261_v51, %v389_v59  ;;  %v265_v2 = vadd.f32 %v746_v7, %v194_v55  ;;  %517 = vst.msk [vmem:[%s1219_s3 + $0x140] sm:$0xff] %vm476_vm0, %v452_v62  ;;  %v454_v4 = vsel %vm326_vm13, %v262_v52, %v390_v60  ;;  %v195_v6 = vmul.f32 %v641_v56, %v732_v1 }
  0x46   :  { %518 = vst.msk [vmem:[%s1219_s3 + $0x148] sm:$0xff] %vm476_vm0, %v453_v63  ;;  %v455_v5 = vsel %vm327_vm14, %v263_v53, %v391_v61  ;;  %v196_v8 = vmul.f32 %v642_v57, %v732_v1  ;;  %519 = vst.msk [vmem:[%s1219_s3 + $0x150] sm:$0xff] %vm476_vm0, %v454_v4  ;;  %vm328_vm15 = vcmp.gt.f32.partialorder %v264_v0, 0.0  ;;  %v392_v10 = vmul.f32 0.1, %v264_v0  ;;  %v703_v53 = vld [vmem:[%s1218_s2 + $0xe8] sm:$0xff]  }
  0x47   :  { %520 = vst.msk [vmem:[%s1219_s3 + $0x158] sm:$0xff] %vm476_vm0, %v455_v5  ;;  %vm329_vm1 = vcmp.gt.f32.partialorder %v265_v2, 0.0  ;;  %v393_v11 = vmul.f32 0.1, %v265_v2  ;;  %v266_v12 = vadd.f32 %v746_v7, %v195_v6  ;;  %v645_v14 = vunpack.c.l.bf16 %v698_v3 }
  0x48   :  { %v267_v13 = vadd.f32 %v746_v7, %v196_v8  ;;  %v646_v15 = vunpack.c.h.bf16 %v698_v3  ;;  %v456_v16 = vsel %vm328_vm15, %v264_v0, %v392_v10  ;;  %v649_v18 = vunpack.c.l.bf16 %v699_v9  ;;  %v704_v0 = vld [vmem:[%s1218_s2 + $0xf0] sm:$0xff]  }
  0x49   :  { %v457_v17 = vsel %vm329_vm1, %v265_v2, %v393_v11  ;;  %v650_v19 = vunpack.c.h.bf16 %v699_v9  ;;  %521 = vst.msk [vmem:[%s1219_s3 + $0x160] sm:$0xff] %vm476_vm0, %v456_v16  ;;  %vm330_vm2 = vcmp.gt.f32.partialorder %v266_v12, 0.0  ;;  %v394_v21 = vmul.f32 0.1, %v266_v12  ;;  %v705_v9 = vld [vmem:[%s1218_s2 + $0xf8] sm:$0xff]  }
  0x4a   :  { %522 = vst.msk [vmem:[%s1219_s3 + $0x168] sm:$0xff] %vm476_vm0, %v457_v17  ;;  %vm331_vm3 = vcmp.gt.f32.partialorder %v267_v13, 0.0  ;;  %v395_v22 = vmul.f32 0.1, %v267_v13  ;;  %v197_v23 = vmul.f32 %v645_v14, %v732_v1  ;;  %v198_v24 = vmul.f32 %v646_v15, %v732_v1 }
  0x4b   :  { %v199_v25 = vmul.f32 %v649_v18, %v732_v1  ;;  %v200_v26 = vmul.f32 %v650_v19, %v732_v1  ;;  %v458_v28 = vsel %vm330_vm2, %v266_v12, %v394_v21  ;;  %v653_v30 = vunpack.c.l.bf16 %v700_v20 }
  0x4c   :  { %v459_v29 = vsel %vm331_vm3, %v267_v13, %v395_v22  ;;  %v654_v31 = vunpack.c.h.bf16 %v700_v20  ;;  %523 = vst.msk [vmem:[%s1219_s3 + $0x170] sm:$0xff] %vm476_vm0, %v458_v28  ;;  %v268_v32 = vadd.f32 %v746_v7, %v197_v23  ;;  %v269_v33 = vadd.f32 %v746_v7, %v198_v24 }
  0x4d   :  { %524 = vst.msk [vmem:[%s1219_s3 + $0x178] sm:$0xff] %vm476_vm0, %v459_v29  ;;  %v270_v34 = vadd.f32 %v746_v7, %v199_v25  ;;  %v271_v35 = vadd.f32 %v746_v7, %v200_v26  ;;  %v201_v36 = vmul.f32 %v653_v30, %v732_v1  ;;  %v657_v38 = vunpack.c.l.bf16 %v701_v27 }
  0x4e   :  { %v202_v37 = vmul.f32 %v654_v31, %v732_v1  ;;  %v658_v39 = vunpack.c.h.bf16 %v701_v27  ;;  %vm332_vm4 = vcmp.gt.f32.partialorder %v268_v32, 0.0  ;;  %v396_v40 = vmul.f32 0.1, %v268_v32 }
  0x4f   :  { %vm333_vm5 = vcmp.gt.f32.partialorder %v269_v33, 0.0  ;;  %v397_v41 = vmul.f32 0.1, %v269_v33  ;;  %vm334_vm6 = vcmp.gt.f32.partialorder %v270_v34, 0.0  ;;  %v398_v42 = vmul.f32 0.1, %v270_v34 }
  0x50   :  { %vm335_vm7 = vcmp.gt.f32.partialorder %v271_v35, 0.0  ;;  %v399_v43 = vmul.f32 0.1, %v271_v35  ;;  %v460_v44 = vsel %vm332_vm4, %v268_v32, %v396_v40  ;;  %v272_v46 = vadd.f32 %v746_v7, %v201_v36 }
  0x51   :  { %v461_v45 = vsel %vm333_vm5, %v269_v33, %v397_v41  ;;  %v273_v47 = vadd.f32 %v746_v7, %v202_v37  ;;  %525 = vst.msk [vmem:[%s1219_s3 + $0x180] sm:$0xff] %vm476_vm0, %v460_v44  ;;  %v462_v49 = vsel %vm334_vm6, %v270_v34, %v398_v42  ;;  %v203_v51 = vmul.f32 %v657_v38, %v732_v1 }
  0x52   :  { %526 = vst.msk [vmem:[%s1219_s3 + $0x188] sm:$0xff] %vm476_vm0, %v461_v45  ;;  %v463_v50 = vsel %vm335_vm7, %v271_v35, %v399_v43  ;;  %v204_v52 = vmul.f32 %v658_v39, %v732_v1  ;;  %527 = vst.msk [vmem:[%s1219_s3 + $0x190] sm:$0xff] %vm476_vm0, %v462_v49  ;;  %vm336_vm8 = vcmp.gt.f32.partialorder %v272_v46, 0.0  ;;  %v400_v54 = vmul.f32 0.1, %v272_v46 }
  0x53   :  { %528 = vst.msk [vmem:[%s1219_s3 + $0x198] sm:$0xff] %vm476_vm0, %v463_v50  ;;  %vm337_vm9 = vcmp.gt.f32.partialorder %v273_v47, 0.0  ;;  %v401_v55 = vmul.f32 0.1, %v273_v47  ;;  %v274_v56 = vadd.f32 %v746_v7, %v203_v51  ;;  %v661_v58 = vunpack.c.l.bf16 %v702_v48 }
  0x54   :  { %v275_v57 = vadd.f32 %v746_v7, %v204_v52  ;;  %v662_v59 = vunpack.c.h.bf16 %v702_v48  ;;  %v464_v60 = vsel %vm336_vm8, %v272_v46, %v400_v54  ;;  %v665_v62 = vunpack.c.l.bf16 %v703_v53 }
  0x55   :  { %v465_v61 = vsel %vm337_vm9, %v273_v47, %v401_v55  ;;  %v666_v63 = vunpack.c.h.bf16 %v703_v53  ;;  %529 = vst.msk [vmem:[%s1219_s3 + $0x1a0] sm:$0xff] %vm476_vm0, %v464_v60  ;;  %vm338_vm10 = vcmp.gt.f32.partialorder %v274_v56, 0.0  ;;  %v402_v2 = vmul.f32 0.1, %v274_v56 }
  0x56   :  { %530 = vst.msk [vmem:[%s1219_s3 + $0x1a8] sm:$0xff] %vm476_vm0, %v465_v61  ;;  %vm339_vm11 = vcmp.gt.f32.partialorder %v275_v57, 0.0  ;;  %v403_v3 = vmul.f32 0.1, %v275_v57  ;;  %v205_v4 = vmul.f32 %v661_v58, %v732_v1  ;;  %v206_v5 = vmul.f32 %v662_v59, %v732_v1 }
  0x57   :  { %v207_v6 = vmul.f32 %v665_v62, %v732_v1  ;;  %v208_v8 = vmul.f32 %v666_v63, %v732_v1  ;;  %v466_v10 = vsel %vm338_vm10, %v274_v56, %v402_v2  ;;  %v669_v12 = vunpack.c.l.bf16 %v704_v0 }
  0x58   :  { %v467_v11 = vsel %vm339_vm11, %v275_v57, %v403_v3  ;;  %v670_v13 = vunpack.c.h.bf16 %v704_v0  ;;  %531 = vst.msk [vmem:[%s1219_s3 + $0x1b0] sm:$0xff] %vm476_vm0, %v466_v10  ;;  %v276_v14 = vadd.f32 %v746_v7, %v205_v4  ;;  %v277_v15 = vadd.f32 %v746_v7, %v206_v5 }
  0x59   :  { %532 = vst.msk [vmem:[%s1219_s3 + $0x1b8] sm:$0xff] %vm476_vm0, %v467_v11  ;;  %v278_v16 = vadd.f32 %v746_v7, %v207_v6  ;;  %v279_v17 = vadd.f32 %v746_v7, %v208_v8  ;;  %v209_v18 = vmul.f32 %v669_v12, %v732_v1  ;;  %v673_v20 = vunpack.c.l.bf16 %v705_v9 }
  0x5a   :  { %v210_v19 = vmul.f32 %v670_v13, %v732_v1  ;;  %v674_v21 = vunpack.c.h.bf16 %v705_v9  ;;  %vm340_vm12 = vcmp.gt.f32.partialorder %v276_v14, 0.0  ;;  %v404_v22 = vmul.f32 0.1, %v276_v14 }
  0x5b   :  { %vm341_vm13 = vcmp.gt.f32.partialorder %v277_v15, 0.0  ;;  %v405_v23 = vmul.f32 0.1, %v277_v15  ;;  %vm342_vm14 = vcmp.gt.f32.partialorder %v278_v16, 0.0  ;;  %v406_v24 = vmul.f32 0.1, %v278_v16 }
  0x5c   :  { %vm343_vm15 = vcmp.gt.f32.partialorder %v279_v17, 0.0  ;;  %v407_v25 = vmul.f32 0.1, %v279_v17  ;;  %v468_v26 = vsel %vm340_vm12, %v276_v14, %v404_v22  ;;  %v280_v28 = vadd.f32 %v746_v7, %v209_v18 }
  0x5d   :  { %v469_v27 = vsel %vm341_vm13, %v277_v15, %v405_v23  ;;  %v281_v29 = vadd.f32 %v746_v7, %v210_v19  ;;  %533 = vst.msk [vmem:[%s1219_s3 + $0x1c0] sm:$0xff] %vm476_vm0, %v468_v26  ;;  %v470_v30 = vsel %vm342_vm14, %v278_v16, %v406_v24  ;;  %v211_v32 = vmul.f32 %v673_v20, %v732_v1 }
  0x5e   :  { %534 = vst.msk [vmem:[%s1219_s3 + $0x1c8] sm:$0xff] %vm476_vm0, %v469_v27  ;;  %v471_v31 = vsel %vm343_vm15, %v279_v17, %v407_v25  ;;  %v212_v33 = vmul.f32 %v674_v21, %v732_v1  ;;  %535 = vst.msk [vmem:[%s1219_s3 + $0x1d0] sm:$0xff] %vm476_vm0, %v470_v30  ;;  %vm344_vm1 = vcmp.gt.f32.partialorder %v280_v28, 0.0  ;;  %v408_v34 = vmul.f32 0.1, %v280_v28 }
  0x5f   :  { %536 = vst.msk [vmem:[%s1219_s3 + $0x1d8] sm:$0xff] %vm476_vm0, %v471_v31  ;;  %vm345_vm2 = vcmp.gt.f32.partialorder %v281_v29, 0.0  ;;  %v409_v35 = vmul.f32 0.1, %v281_v29  ;;  %v282_v36 = vadd.f32 %v746_v7, %v211_v32 }
  0x60   :  { %v283_v37 = vadd.f32 %v746_v7, %v212_v33  ;;  %v472_v38 = vsel %vm344_vm1, %v280_v28, %v408_v34 }
  0x61   :  { %v473_v1 = vsel %vm345_vm2, %v281_v29, %v409_v35  ;;  %537 = vst.msk [vmem:[%s1219_s3 + $0x1e0] sm:$0xff] %vm476_vm0, %v472_v38  ;;  %vm346_vm3 = vcmp.gt.f32.partialorder %v282_v36, 0.0  ;;  %v410_v39 = vmul.f32 0.1, %v282_v36 }
  0x62   :  { %538 = vst.msk [vmem:[%s1219_s3 + $0x1e8] sm:$0xff] %vm476_vm0, %v473_v1  ;;  %vm347_vm4 = vcmp.gt.f32.partialorder %v283_v37, 0.0  ;;  %v411_v40 = vmul.f32 0.1, %v283_v37 }
  0x63   :  { %v474_v41 = vsel %vm346_vm3, %v282_v36, %v410_v39 }
  0x64   :  { %v475_v42 = vsel %vm347_vm4, %v283_v37, %v411_v40  ;;  %539 = vst.msk [vmem:[%s1219_s3 + $0x1f0] sm:$0xff] %vm476_vm0, %v474_v41 }
  0x65   :  { %540 = vst.msk [vmem:[%s1219_s3 + $0x1f8] sm:$0xff] %vm476_vm0, %v475_v42 }

// kernel: cnn_block_forward.2
= control target key start
LH: loop header
LB: loop body
LE: loop exit
PB: predicated region body
PF: predicated region fallthrough
CT: control target
= control target key end

     0   :  { %s6888_s12 = smov 0   ;;  %s6890_s13 = smov 0   ;;  %s9404_s0 = inlined_call_operand.vmem [shape: bf16[2,18,18,4], index: 0, kind: input, shape index: {}]   ;;  %s9405_s1 = inlined_call_operand.vmem [shape: bf16[9,4,8], index: 1, kind: input, shape index: {}]   ;;  %s9406_s2 = inlined_call_operand.vmem [shape: bf16[2,256,8], index: 2, kind: output, shape index: {0}]   ;;  %s9407_s3 = inlined_call_operand.vmem [shape: f32[2,1,2,8], index: 3, kind: output, shape index: {1}]  }
   0x1   :  { %s6892_s14 = smov 0  }
   0x2 LB: > { %s26_s15 = sadd.s32 1, %s6861_s13  ;;  %p5766_p0 = scmp.ge.s32.totalorder %s6865_s14, 1  ;;  %s6865_s14 = sphi %s6892_s14, %s14_s14   ;;  %s6861_s13 = sphi %s6890_s13, %s9604_s13   ;;  %s6857_s12 = sphi %s6888_s12, %s9603_s12  }
   0x3   : > { %p28_p1 = scmp.ge.s32.totalorder %s26_s15, 2  ;;  %p156_p2 = scmp.lt.s32.totalorder %s6865_s14, 3 }
   0x5   : > { %s9606_s15 = smov (%p28_p1, %s26_s15), 0  ;;  %p157_p3 = pnand %p5766_p0, %p156_p2 }
   0x7   : > { %160 = sbr.rel (%p157_p3) target bundleno = 613 (0x265), region = 28 }
   0xe   : > { %v331_v0 = vld [vmem:[%s9405_s1] sm:$0x3]  ;;  %vm461_vm0 = vcmask 1041408   ;;  %p191_p4 = scmp.lt.s32.totalorder %s6857_s12, 1  ;;  %v5803_v2 = vld [vmem:[%s9405_s1 + $0x2] sm:$0x3] }
   0xf   : > { %6740 = vmatprep.subr.msk.bf16.mxu1 %vm461_vm0, %v331_v0  ;;  %v463_v1 = vsel %vm461_vm0, %v331_v0, 0  ;;  %6739 = vmatprep.subr.msk.bf16.mxu0 %vm461_vm0, %v331_v0  ;;  %v5852_v3 = vld [vmem:[%s9405_s1 + $0x4] sm:$0x3]  ;;  %v5933_v4 = vld [vmem:[%s9405_s1 + $0x6] sm:$0x3]  ;;  %vm412_vm1 = vcmask 31744  }
  0x10   : > { %6738 = vmatpush3.bf16.msra.mxu1 %v463_v1  ;;  %s9608_s12 = smov (!%p191_p4, %s6857_s12), 1  ;;  %6432 = vmatpush3.bf16.msra.mxu0 %v463_v1  ;;  %v6928_v5 = vld [vmem:[%s9405_s1 + $0x8] sm:$0x3]  ;;  %v6934_v6 = vld [vmem:[%s9405_s1 + $0xa] sm:$0x3]  ;;  %v1208_v7 = vsel %vm461_vm0, %v5803_v2, 0 }
  0x11   : > { %6741 = vmatprep.subr.msk.bf16.mxu1 %vm461_vm0, %v5803_v2  ;;  %6742 = vmatprep.subr.msk.bf16.mxu0 %vm461_vm0, %v5852_v3  ;;  %s6749_s26 = smul.u32 216, %s9608_s12  ;;  %v6938_v8 = vsel %vm461_vm0, %v5852_v3, 0  ;;  %v6943_v9 = vld [vmem:[%s9405_s1 + $0xc] sm:$0x3]  ;;  %v6951_v10 = vsel %vm461_vm0, %v5933_v4, 0  ;;  %v6955_v11 = vsel %vm461_vm0, %v6928_v5, 0 }
  0x12   : > { %v6959_v12 = vsel %vm461_vm0, %v6934_v6, 0  ;;  %v6963_v13 = vsel %vm461_vm0, %v6943_v9, 0  ;;  %vm690_vm2 = vsmask.f32 3328  ;;  %vm691_vm3 = vsmask.f32 7440 }
  0x13   : > { %s6948_s6 = scalar_lea.vmem %s9404_s0, %s6749_s26  ;;  %9443 = vst [vmem:[#allocation3_spill] sm:$0xff] %v6959_v12  ;;  %9444 = vst [vmem:[#allocation4_spill] sm:$0xff] %v6963_v13  ;;  %vm1451_vm4 = vcmask 1042432   ;;  %vm1452_vm5 = vcmask 1046532   ;;  %vm215_vm8 = vcmask 64512   ;;  %s6245_s11 = sshll.u32 %s9608_s12, 7 }
  0x14   : > { %v6966_v14 = vld [vmem:[%s6948_s6 + $0x60] sm:$0xf]  ;;  %v6969_v15 = vld [vmem:[%s6948_s6 + $0x64] sm:$0xf]  ;;  %v6972_v16 = vld [vmem:[%s6948_s6 + $0x6c] sm:$0xf]  ;;  %s9210_s18 = scalar_lea.vmem %s9406_s2, %s6245_s11 }
  0x15   : > { %v5779_v17 = vcombine.low %v6966_v14, %v6969_v15  ;;  %v886_v18 = vshrl.u32 %v6966_v14, 16  ;;  %v889_v19 = vshll.u32 %v6966_v14, 16  ;;  %v895_v20 = vshll.u32 %v6969_v15, 16  ;;  %v6980_v21 = vld [vmem:[%s6948_s6 + $0x70] sm:$0xf]  ;;  %vm7152_vm6 = vmor %vm690_vm2, %vm691_vm3  ;;  %s5770_s19 = sshll.u32 %s9608_s12, 1 }
  0x16   : > { %v899_v22 = vshrl.u32 %v6969_v15, 16  ;;  %v9408_v24 = vrot.slane %v6969_v15, 5  ;;  %v5780_v25 = vcombine.low %v6972_v16, %v6980_v21  ;;  %v6988_v26 = vld [vmem:[%s6948_s6] sm:$0xf]  ;;  %v6995_v31 = vld [vmem:[%s6948_s6 + $0x4] sm:$0xf]  ;;  %vm7175_vm7 = vmor %vm1451_vm4, %vm1452_vm5  ;;  %s212_s22 = scalar_lea.vmem %s9407_s3, %s5770_s19 }
  0x17   : > { %6449 = vmatprep.mubr.msk.bf16.mxu1 %vm412_vm1, %v5779_v17  ;;  %v888_v27 = vrot.slane %v886_v18, 4  ;;  %v891_v28 = vrot.slane %v889_v19, 5  ;;  %v6991_v29 = vrot.slane %v895_v20, 5  ;;  %v5771_v37 = vcombine.low %v6988_v26, %v6995_v31  ;;  %v7009_v40 = vld [vmem:[%s6948_s6 + $0xc] sm:$0xf] }
  0x18   : > { %v901_v32 = vrot.slane %v899_v22, 4  ;;  %v6999_v33 = vrot.slane %v9408_v24, 4  ;;  %6450 = vmatmul.mubr.msk.bf16.vlgmr.msra.gmra.mrb[0].mxu1 %vm412_vm1, %v5780_v25  ;;  %v694_v38 = vshrl.u32 %v6988_v26, 16  ;;  %v697_v39 = vshll.u32 %v6988_v26, 16  ;;  %v7012_v41 = vld [vmem:[%s6948_s6 + $0x10] sm:$0xf] }
  0x19   : > { %v892_v36 = vor.u32 %v891_v28, %v888_v27  ;;  %6466 = vmatpush3.bf16.msra.mxu1 %v1208_v7  ;;  %v703_v43 = vshll.u32 %v6995_v31, 16  ;;  %v707_v44 = vshrl.u32 %v6995_v31, 16  ;;  %v5836_v45 = vrot.slane %v6988_v26, 9  ;;  %6433 = vmatprep.mubr.msk.bf16.mxu0 %vm412_vm1, %v5771_v37  ;;  %v7024_v50 = vld [vmem:[%s6948_s6 + $0x78] sm:$0xf] }
  0x1a   : > { %v902_v42 = vor.u32 %v901_v32, %v6991_v29  ;;  %6743 = vmatprep.subr.msk.bf16.mxu1 %vm461_vm0, %v5933_v4  ;;  %v696_v47 = vrot.slane %v694_v38, 4  ;;  %v699_v48 = vrot.slane %v697_v39, 5  ;;  %v1456_v49 = vrot.slane %v6995_v31, 5  ;;  %v7033_v55 = vld [vmem:[%s6948_s6 + $0x7c] sm:$0xf] }
  0x1b   : > { %v7019_v46 = vrot.slane %v892_v36, 4  ;;  %v7028_v52 = vrot.slane %v703_v43, 5  ;;  %v709_v53 = vrot.slane %v707_v44, 4  ;;  %v5772_v54 = vcombine.low %v7009_v40, %v7012_v41  ;;  %v7042_v60 = vld [vmem:[%s6948_s6 + $0x84] sm:$0xf] }
  0x1c   : > { %v7026_v51 = vrot.slane %v902_v42, 4  ;;  %v700_v56 = vor.u32 %v699_v48, %v696_v47  ;;  %v7037_v57 = vrot.slane %v1456_v49, 4  ;;  %v718_v58 = vshrl.u32 %v7009_v40, 16  ;;  %v7045_v61 = vld [vmem:[%s6948_s6 + $0x88] sm:$0xf] }
  0x1d   : > { %v721_v59 = vshll.u32 %v7009_v40, 16  ;;  %v710_v62 = vor.u32 %v709_v53, %v7028_v52  ;;  %6434 = vmatmul.mubr.msk.bf16.vlgmr.msra.gmra.mrb[0].mxu0 %vm412_vm1, %v5772_v54  ;;  %v727_v63 = vshll.u32 %v7012_v41, 16  ;;  %v731_v0 = vshrl.u32 %v7012_v41, 16  ;;  %v7053_v2 = vld [vmem:[%s6948_s6 + $0x18] sm:$0xf] }
  0x1e   : > { %v7055_v3 = vrot.slane %v700_v56, 4  ;;  %v720_v4 = vrot.slane %v718_v58, 4  ;;  %v9409_v17 = vrot.slane %v7012_v41, 5  ;;  %6500 = vmatpush3.bf16.msra.mxu0 %v6938_v8  ;;  %v7060_v18 = vld [vmem:[%s6948_s6 + $0x1c] sm:$0xf]  ;;  %v5781_v25 = vcombine.low %v7024_v50, %v7033_v55 }
  0x1f   : > { %v723_v7 = vrot.slane %v721_v59, 5  ;;  %v7062_v19 = vrot.slane %v710_v62, 4  ;;  %v7064_v20 = vrot.slane %v727_v63, 5  ;;  %v733_v22 = vrot.slane %v731_v0, 4  ;;  %v7069_v27 = vld [vmem:[%s6948_s6 + $0x24] sm:$0xf]  ;;  %6744 = vmatprep.subr.msk.bf16.mxu0 %vm461_vm0, %v6928_v5 }
  0x20   : > { %v7072_v28 = vld [vmem:[%s6948_s6 + $0x28] sm:$0xf]  ;;  %v7078_v32 = vrot.slane %v9409_v17, 4  ;;  %v7083_v38 = vld [vmem:[%s6948_s6 + $0x90] sm:$0xf]  ;;  %6453 = vmatprep.mubr.msk.bf16.mxu1 %vm412_vm1, %v5781_v25  ;;  %v5782_v5 = vcombine.low %v7042_v60, %v7045_v61  ;;  %v5773_v56 = vcombine.low %v7053_v2, %v7060_v18  ;;  %v742_v62 = vshrl.u32 %v7053_v2, 16 }
  0x21   : > { %v724_v8 = vor.u32 %v723_v7, %v720_v4  ;;  %v734_v39 = vor.u32 %v733_v22, %v7064_v20  ;;  %v7092_v44 = vld [vmem:[%s6948_s6 + $0x94] sm:$0xf]  ;;  %v7095_v47 = vld [vmem:[%s6948_s6 + $0x9c] sm:$0xf]  ;;  %v7104_v58 = vld [vmem:[%s6948_s6 + $0xa0] sm:$0xf]  ;;  %v5774_v7 = vcombine.low %v7069_v27, %v7072_v28 }
  0x22   : > { %9445 = vst [vmem:[#allocation5_spill] sm:$0xff] %v7104_v58  ;;  %6454 = vmatmul.mubr.msk.bf16.gmra.mrb[4].mxu1 %vm412_vm1, %v5782_v5  ;;  %v7113_v4 = vld [vmem:[%s6948_s6 + $0x30] sm:$0xf]  ;;  %6437 = vmatprep.mubr.msk.bf16.mxu0 %vm412_vm1, %v5773_v56  ;;  %v5783_v5 = vcombine.low %v7083_v38, %v7092_v44  ;;  %v7130_v43 = vld [vmem:[%s6948_s6 + $0x3c] sm:$0xf]  ;;  %v5784_v42 = vcombine.low %v7095_v47, %v7104_v58  ;;  %v9454_v12 = vrot.slane %v7012_v41, 5 }
  0x23   : > { %v7097_v48 = vrot.slane %v724_v8, 4  ;;  %v7106_v59 = vrot.slane %v734_v39, 4  ;;  %v7122_v39 = vld [vmem:[%s6948_s6 + $0x34] sm:$0xf]  ;;  %v7139_v24 = vld [vmem:[%s6948_s6 + $0x40] sm:$0xf]  ;;  %v706_v8 = vsel %vm7152_vm6, %v7055_v3, %v7028_v52  ;;  %v1457_v56 = vsel %vm7175_vm7, %v5836_v45, %v1456_v49 }
  0x24   : > { %6457 = vmatprep.mubr.msk.bf16.mxu1 %vm412_vm1, %v5783_v5  ;;  %v5775_v53 = vcombine.low %v7113_v4, %v7122_v39  ;;  %v7148_v37 = vld [vmem:[%s6948_s6 + $0xa8] sm:$0xf]  ;;  %v5776_v5 = vcombine.low %v7130_v43, %v7139_v24  ;;  %v7162_v30 = vld [vmem:[%s6948_s6 + $0xac] sm:$0xf]  ;;  %v7171_v25 = vld [vmem:[%s6948_s6 + $0xb4] sm:$0xf] }
  0x25   : > { %6438 = vmatmul.mubr.msk.bf16.gmra.mrb[4].mxu0 %vm412_vm1, %v5774_v7  ;;  %9446 = vst [vmem:[#allocation6_spill] sm:$0xff] %v7148_v37  ;;  %9449 = vst [vmem:[#allocation7_spill] sm:$0xff] %v7162_v30  ;;  %v5785_v54 = vcombine.low %v7148_v37, %v7162_v30  ;;  %v7185_v36 = vld [vmem:[%s6948_s6 + $0x48] sm:$0xf]  ;;  %v730_v7 = vsel %vm7152_vm6, %v7097_v48, %v7064_v20  ;;  %v7200_v35 = vld [vmem:[%s6948_s6 + $0x4c] sm:$0xf] }
  0x26   : > { %6441 = vmatprep.mubr.msk.bf16.mxu0 %vm412_vm1, %v5775_v53  ;;  %9450 = vst [vmem:[#allocation8_spill] sm:$0xff] %v7171_v25  ;;  %v7180_v53 = vld [vmem:[%s6948_s6 + $0xb8] sm:$0xf]  ;;  %v5777_v3 = vcombine.low %v7185_v36, %v7200_v35  ;;  %v744_v52 = vrot.slane %v742_v62, 4  ;;  %v253_v1 = vld [vmem:[%s6948_s6 + $0x8] sm:$0x1] }
  0x27   : > { %9453 = vst [vmem:[#allocation9_spill] sm:$0xff] %v7180_v53  ;;  %v5786_v22 = vcombine.low %v7171_v25, %v7180_v53  ;;  %v7212_v48 = vld [vmem:[%s6948_s6 + $0x58] sm:$0xf]  ;;  %v713_v17 = vshll.u32 %v253_v1, 16  ;;  %v256_v31 = vld [vmem:[%s6948_s6 + $0x14] sm:$0x1] }
  0x28   : > { %v1459_v13 = vrot.slane %v253_v1, 5  ;;  %v259_v26 = vld [vmem:[%s6948_s6 + $0x20] sm:$0x1]  ;;  %v9455_v45 = vrot.slane %v7009_v40, 9  ;;  %v9456_v1 = vshll.u32 %v7053_v2, 16  ;;  %v751_v41 = vshll.u32 %v7060_v18, 16 }
  0x29   : > { %v9457_v40 = vshrl.u32 %v7060_v18, 16  ;;  %v715_v0 = vrot.slane %v713_v17, 5  ;;  %v1466_v53 = vrot.slane %v256_v31, 5  ;;  %v7257_v17 = vld [vmem:[%s6948_s6 + $0x2c] sm:$0x1]  ;;  %v9458_v58 = vshrl.u32 %v7069_v27, 16 }
  0x2a   : > { %6458 = vmatmul.mubr.msk.bf16.gmra.mrb[8].mxu1 %vm412_vm1, %v5784_v42  ;;  %v7209_v42 = vld [vmem:[%s6948_s6 + $0x54] sm:$0xf]  ;;  %v7235_v49 = vsel %vm7175_vm7, %v9455_v45, %v9454_v12  ;;  %v747_v20 = vrot.slane %v9456_v1, 5  ;;  %v1460_v12 = vsel %vm7175_vm7, %v7037_v57, %v1459_v13  ;;  %v761_v45 = vshll.u32 %v259_v26, 16 }
  0x2b   : > { %6461 = vmatprep.mubr.msk.bf16.mxu1 %vm412_vm1, %v5785_v54  ;;  %v5778_v54 = vcombine.low %v7209_v42, %v7212_v48  ;;  %v757_v63 = vrot.slane %v9457_v40, 4  ;;  %v5853_v25 = vcombine.low %v1457_v56, %v1460_v12  ;;  %v753_v30 = vrot.slane %v751_v41, 5 }
  0x2c   : > { %v716_v1 = vsel %vm7152_vm6, %v7062_v19, %v715_v0  ;;  %v763_v37 = vrot.slane %v761_v45, 5  ;;  %v1467_v40 = vsel %vm7175_vm7, %v7078_v32, %v1466_v53  ;;  %v768_v13 = vrot.slane %v9458_v58, 4  ;;  %v7282_v45 = vld [vmem:[%s6948_s6 + $0x38] sm:$0x1] }
  0x2d   : > { %6442 = vmatmul.mubr.msk.bf16.gmra.mrb[8].mxu0 %vm412_vm1, %v5776_v5  ;;  %v737_v5 = vshll.u32 %v256_v31, 16  ;;  %v5804_v57 = vcombine.low %v706_v8, %v716_v1  ;;  %v5854_v0 = vcombine.low %v7235_v49, %v1467_v40  ;;  %v9459_v31 = vshll.u32 %v7069_v27, 16 }
  0x2e   : > { %6445 = vmatprep.mubr.msk.bf16.mxu0 %vm412_vm1, %v5777_v3  ;;  %v748_v3 = vor.u32 %v747_v20, %v744_v52  ;;  %v758_v20 = vor.u32 %v757_v63, %v753_v30  ;;  %v775_v53 = vshll.u32 %v7072_v28, 16  ;;  %v9460_v8 = vshrl.u32 %v7072_v28, 16 }
  0x2f   : > { %v739_v62 = vrot.slane %v737_v5, 5  ;;  %v771_v32 = vrot.slane %v9459_v31, 5  ;;  %v785_v63 = vshll.u32 %v7257_v17, 16  ;;  %v1470_v5 = vrot.slane %v7060_v18, 5 }
  0x30   : > { %v749_v52 = vrot.slane %v748_v3, 4  ;;  %v777_v49 = vrot.slane %v775_v53, 5  ;;  %v1473_v12 = vrot.slane %v259_v26, 5  ;;  %v9461_v3 = vshrl.u32 %v7113_v4, 16 }
  0x31   : > { %v740_v56 = vsel %vm7152_vm6, %v7106_v59, %v739_v62  ;;  %v781_v59 = vrot.slane %v9460_v8, 4  ;;  %v5838_v62 = vrot.slane %v7053_v2, 9  ;;  %v9462_v18 = vshll.u32 %v7113_v4, 16 }
  0x32   : > { %6462 = vmatmul.mubr.msk.bf16.gmra.mrb[12].mxu1 %vm412_vm1, %v5786_v22  ;;  %v5805_v19 = vcombine.low %v730_v7, %v740_v56  ;;  %v754_v58 = vsel %vm7152_vm6, %v749_v52, %v753_v30  ;;  %v759_v22 = vrot.slane %v758_v20, 4  ;;  %v772_v7 = vor.u32 %v771_v32, %v768_v13 }
  0x33   : > { %6467 = vmatprep.mubr.msk.bf16.mxu1 %vm412_vm1, %v5804_v57  ;;  %v787_v30 = vrot.slane %v785_v63, 5  ;;  %v792_v1 = vrot.slane %v9461_v3, 4  ;;  %v782_v13 = vor.u32 %v781_v59, %v777_v49  ;;  %v1471_v2 = vsel %vm7175_vm7, %v5838_v62, %v1470_v5 }
  0x34   : > { %v764_v41 = vsel %vm7152_vm6, %v759_v22, %v763_v37  ;;  %v1472_v57 = vrot.slane %v1470_v5, 4  ;;  %v799_v56 = vshll.u32 %v7122_v39, 16  ;;  %v9463_v37 = vshrl.u32 %v7122_v39, 16 }
  0x35   : > { %6446 = vmatmul.mubr.msk.bf16.gmra.mrb[12].mxu0 %vm412_vm1, %v5778_v54  ;;  %v5806_v40 = vcombine.low %v754_v58, %v764_v41  ;;  %v773_v54 = vrot.slane %v772_v7, 4  ;;  %v783_v20 = vrot.slane %v782_v13, 4  ;;  %v809_v31 = vshll.u32 %v7282_v45, 16 }
  0x36   : > { %6501 = vmatprep.mubr.msk.bf16.mxu0 %vm412_vm1, %v5853_v25  ;;  %v795_v25 = vrot.slane %v9462_v18, 5  ;;  %v805_v26 = vrot.slane %v9463_v37, 4  ;;  %v5839_v32 = vrot.slane %v7069_v27, 9  ;;  %v1474_v53 = vsel %vm7175_vm7, %v1472_v57, %v1473_v12 }
  0x37   : > { %v778_v52 = vsel %vm7152_vm6, %v773_v54, %v777_v49  ;;  %v801_v22 = vrot.slane %v799_v56, 5  ;;  %v1477_v8 = vrot.slane %v7072_v28, 5  ;;  %v788_v59 = vsel %vm7152_vm6, %v783_v20, %v787_v30  ;;  %v7307_v49 = vld [vmem:[%s6948_s6 + $0x44] sm:$0x1] }
  0x38   : > { %v796_v58 = vor.u32 %v795_v25, %v792_v1  ;;  %v5855_v63 = vcombine.low %v1471_v2, %v1474_v53  ;;  %v811_v7 = vrot.slane %v809_v31, 5  ;;  %v1480_v27 = vrot.slane %v7257_v17, 5 }
  0x39   : > { %v806_v5 = vor.u32 %v805_v26, %v801_v22  ;;  %v1478_v41 = vsel %vm7175_vm7, %v5839_v32, %v1477_v8  ;;  %v9464_v28 = vshrl.u32 %v7130_v43, 16  ;;  %v9465_v12 = vshll.u32 %v7130_v43, 16  ;;  %v7336_v32 = vld [vmem:[%s6948_s6 + $0x50] sm:$0x1] }
  0x3a   : > { %6468 = vmatmul.mubr.msk.bf16.vlgmr.msra.gmra.mrb[16].mxu1 %vm412_vm1, %v5805_v19  ;;  %v5807_v19 = vcombine.low %v778_v52, %v788_v59  ;;  %v797_v62 = vrot.slane %v796_v58, 4  ;;  %v823_v3 = vshll.u32 %v7139_v24, 16  ;;  %v833_v54 = vshll.u32 %v7307_v49, 16 }
  0x3b   : > { %6534 = vmatpush3.bf16.msra.mxu1 %v6951_v10  ;;  %6471 = vmatprep.mubr.msk.bf16.mxu1 %vm412_vm1, %v5806_v40  ;;  %v1479_v10 = vrot.slane %v1477_v8, 4  ;;  %v816_v30 = vrot.slane %v9464_v28, 4  ;;  %v819_v17 = vrot.slane %v9465_v12, 5  ;;  %v807_v40 = vrot.slane %v806_v5, 4 }
  0x3c   : > { %6745 = vmatprep.subr.msk.bf16.mxu1 %vm461_vm0, %v6934_v6  ;;  %v802_v1 = vsel %vm7152_vm6, %v797_v62, %v801_v22  ;;  %v9466_v6 = vshrl.u32 %v7139_v24, 16  ;;  %v825_v57 = vrot.slane %v823_v3, 5  ;;  %v5840_v18 = vrot.slane %v7113_v4, 9 }
  0x3d   : > { %6502 = vmatmul.mubr.msk.bf16.vlgmr.msra.gmra.mrb[16].mxu0 %vm412_vm1, %v5854_v0  ;;  %v1481_v13 = vsel %vm7175_vm7, %v1479_v10, %v1480_v27  ;;  %v820_v2 = vor.u32 %v819_v17, %v816_v30  ;;  %v835_v56 = vrot.slane %v833_v54, 5  ;;  %v1484_v37 = vrot.slane %v7122_v39, 5 }
  0x3e   : > { %6568 = vmatpush3.bf16.msra.mxu0 %v6955_v11  ;;  %6505 = vmatprep.mubr.msk.bf16.mxu0 %vm412_vm1, %v5855_v63  ;;  %v829_v0 = vrot.slane %v9466_v6, 4  ;;  %v812_v11 = vsel %vm7152_vm6, %v807_v40, %v811_v7  ;;  %v5856_v25 = vcombine.low %v1478_v41, %v1481_v13  ;;  %v1487_v31 = vrot.slane %v7282_v45, 5  ;;  %v274_v40 = vld [vmem:[%s6948_s6 + $0x5c] sm:$0x1] }
  0x3f   : > { %6746 = vmatprep.subr.msk.bf16.mxu0 %vm461_vm0, %v6943_v9  ;;  %v5808_v26 = vcombine.low %v802_v1, %v812_v11  ;;  %v821_v52 = vrot.slane %v820_v2, 4  ;;  %v1485_v4 = vsel %vm7175_vm7, %v5840_v18, %v1484_v37  ;;  %v1486_v9 = vrot.slane %v1484_v37, 4 }
  0x40   : > { %v830_v20 = vor.u32 %v829_v0, %v825_v57  ;;  %v9467_v53 = vshrl.u32 %v7185_v36, 16  ;;  %v9468_v22 = vshll.u32 %v7185_v36, 16  ;;  %v847_v59 = vshll.u32 %v7200_v35, 16 }
  0x41   : > { %v826_v39 = vsel %vm7152_vm6, %v821_v52, %v825_v57  ;;  %v9469_v63 = vshrl.u32 %v7200_v35, 16  ;;  %v1488_v27 = vsel %vm7175_vm7, %v1486_v9, %v1487_v31  ;;  %v857_v62 = vshll.u32 %v7336_v32, 16 }
  0x42   : > { %6472 = vmatmul.mubr.msk.bf16.gmra.mrb[20].mxu1 %vm412_vm1, %v5807_v19  ;;  %v840_v58 = vrot.slane %v9467_v53, 4  ;;  %v843_v8 = vrot.slane %v9468_v22, 5  ;;  %v831_v45 = vrot.slane %v830_v20, 4  ;;  %v5841_v5 = vrot.slane %v7130_v43, 9 }
  0x43   : > { %6475 = vmatprep.mubr.msk.bf16.mxu1 %vm412_vm1, %v5808_v26  ;;  %v853_v7 = vrot.slane %v9469_v63, 4  ;;  %v5857_v10 = vcombine.low %v1485_v4, %v1488_v27  ;;  %v849_v28 = vrot.slane %v847_v59, 5  ;;  %v1491_v30 = vrot.slane %v7139_v24, 5 }
  0x44   : > { %v844_v19 = vor.u32 %v843_v8, %v840_v58  ;;  %v836_v41 = vsel %vm7152_vm6, %v831_v45, %v835_v56  ;;  %v859_v3 = vrot.slane %v857_v62, 5  ;;  %v1494_v1 = vrot.slane %v7307_v49, 5 }
  0x45   : > { %6506 = vmatmul.mubr.msk.bf16.gmra.mrb[20].mxu0 %vm412_vm1, %v5856_v25  ;;  %v5809_v12 = vcombine.low %v826_v39, %v836_v41  ;;  %v854_v6 = vor.u32 %v853_v7, %v849_v28  ;;  %v1492_v43 = vsel %vm7175_vm7, %v5841_v5, %v1491_v30  ;;  %v1493_v0 = vrot.slane %v1491_v30, 4  ;;  %v277_v25 = vld [vmem:[%s6948_s6 + $0x68] sm:$0x1]  ;;  %v280_v30 = vld [vmem:[%s6948_s6 + $0x74] sm:$0x1] }
  0x46   : > { %v845_v17 = vrot.slane %v844_v19, 4  ;;  %6509 = vmatprep.mubr.msk.bf16.mxu0 %vm412_vm1, %v5857_v10  ;;  %v9470_v54 = vshrl.u32 %v7209_v42, 16  ;;  %v9471_v24 = vshll.u32 %v7209_v42, 16  ;;  %v871_v18 = vshll.u32 %v7212_v48, 16 }
  0x47   : > { %v9472_v49 = vshrl.u32 %v7212_v48, 16  ;;  %v855_v56 = vrot.slane %v854_v6, 4  ;;  %v1495_v37 = vsel %vm7175_vm7, %v1493_v0, %v1494_v1  ;;  %v881_v26 = vshll.u32 %v274_v40, 16 }
  0x48   : > { %v864_v13 = vrot.slane %v9470_v54, 4  ;;  %v850_v2 = vsel %vm7152_vm6, %v845_v17, %v849_v28  ;;  %v867_v57 = vrot.slane %v9471_v24, 5  ;;  %v5842_v52 = vrot.slane %v7185_v36, 9 }
  0x49   : > { %v877_v11 = vrot.slane %v9472_v49, 4  ;;  %v5858_v20 = vcombine.low %v1492_v43, %v1495_v37  ;;  %v873_v4 = vrot.slane %v871_v18, 5  ;;  %v1498_v9 = vrot.slane %v7200_v35, 5  ;;  %v7422_v49 = vld [vmem:[%s6948_s6 + $0x80] sm:$0x1] }
  0x4a   : > { %6476 = vmatmul.mubr.msk.bf16.gmra.mrb[24].mxu1 %vm412_vm1, %v5809_v12  ;;  %v868_v31 = vor.u32 %v867_v57, %v864_v13  ;;  %v860_v53 = vsel %vm7152_vm6, %v855_v56, %v859_v3  ;;  %v883_v58 = vrot.slane %v881_v26, 5  ;;  %v1501_v22 = vrot.slane %v7336_v32, 5 }
  0x4b   : > { %v905_v8 = vshll.u32 %v277_v25, 16  ;;  %v5810_v39 = vcombine.low %v850_v2, %v860_v53  ;;  %v878_v59 = vor.u32 %v877_v11, %v873_v4  ;;  %v1499_v36 = vsel %vm7175_vm7, %v5842_v52, %v1498_v9 }
  0x4c   : > { %v869_v45 = vrot.slane %v868_v31, 4  ;;  %v1500_v63 = vrot.slane %v1498_v9, 4  ;;  %v5843_v35 = vrot.slane %v7209_v42, 9  ;;  %v1505_v27 = vrot.slane %v7212_v48, 5 }
  0x4d   : > { %6510 = vmatmul.mubr.msk.bf16.gmra.mrb[24].mxu0 %vm412_vm1, %v5858_v20  ;;  %v907_v7 = vrot.slane %v905_v8, 5  ;;  %6479 = vmatprep.mubr.msk.bf16.mxu1 %vm412_vm1, %v5810_v39  ;;  %v879_v19 = vrot.slane %v878_v59, 4  ;;  %v1508_v62 = vrot.slane %v274_v40, 5  ;;  %v9473_v5 = vshrl.u32 %v6972_v16, 16 }
  0x4e   : > { %v874_v32 = vsel %vm7152_vm6, %v869_v45, %v873_v4  ;;  %v1502_v10 = vsel %vm7175_vm7, %v1500_v63, %v1501_v22  ;;  %v1506_v42 = vsel %vm7175_vm7, %v5843_v35, %v1505_v27  ;;  %v1507_v48 = vrot.slane %v1505_v27, 4 }
  0x4f   : > { %v912_v41 = vrot.slane %v9473_v5, 4  ;;  %v908_v28 = vsel %vm7152_vm6, %v7026_v51, %v907_v7  ;;  %v884_v12 = vsel %vm7152_vm6, %v879_v19, %v883_v58  ;;  %v5859_v17 = vcombine.low %v1499_v36, %v1502_v10 }
  0x50   : > { %v9474_v3 = vsel %vm7152_vm6, %v7019_v46, %v6991_v29  ;;  %v9475_v40 = vshll.u32 %v6972_v16, 16  ;;  %v5811_v51 = vcombine.low %v874_v32, %v884_v12  ;;  %v1509_v43 = vsel %vm7175_vm7, %v1507_v48, %v1508_v62 }
  0x51   : > { %v5812_v1 = vcombine.low %v9474_v3, %v908_v28  ;;  %v919_v0 = vshll.u32 %v6980_v21, 16  ;;  %v9476_v54 = vshrl.u32 %v6980_v21, 16  ;;  %6513 = vmatprep.mubr.msk.bf16.mxu0 %vm412_vm1, %v5859_v17  ;;  %v5860_v2 = vcombine.low %v1506_v42, %v1509_v43 }
  0x52   : > { %v915_v6 = vrot.slane %v9475_v40, 5  ;;  %v929_v57 = vshll.u32 %v280_v30, 16  ;;  %v9477_v29 = vrot.slane %v6969_v15, 5  ;;  %v9478_v46 = vrot.slane %v6966_v14, 9  ;;  %6480 = vmatmul.mubr.msk.bf16.gmra.mrb[28].mxu1 %vm412_vm1, %v5811_v51 }
  0x53   : > { %v925_v13 = vrot.slane %v9476_v54, 4  ;;  %v921_v11 = vrot.slane %v919_v0, 5  ;;  %v1515_v56 = vrot.slane %v277_v25, 5  ;;  %v9479_v37 = vshrl.u32 %v7024_v50, 16  ;;  %6483 = vmatprep.mubr.msk.bf16.mxu1 %vm412_vm1, %v5812_v1 }
  0x54   : > { %v916_v24 = vor.u32 %v915_v6, %v912_v41  ;;  %v1513_v18 = vsel %vm7175_vm7, %v9478_v46, %v9477_v29  ;;  %v9480_v52 = vshll.u32 %v7024_v50, 16  ;;  %v931_v31 = vrot.slane %v929_v57, 5  ;;  %v7466_v29 = vld [vmem:[%s6948_s6 + $0x98] sm:$0x1] }
  0x55   : > { %v936_v26 = vrot.slane %v9479_v37, 4  ;;  %v943_v14 = vshll.u32 %v7033_v55, 16  ;;  %v9481_v4 = vshrl.u32 %v7033_v55, 16  ;;  %6514 = vmatmul.mubr.msk.bf16.gmra.mrb[28].mxu0 %vm412_vm1, %v5860_v2  ;;  %v926_v53 = vor.u32 %v925_v13, %v921_v11 }
  0x56   : > { %v939_v20 = vrot.slane %v9480_v52, 5  ;;  %v917_v15 = vrot.slane %v916_v24, 4  ;;  %v1516_v25 = vsel %vm7175_vm7, %v6999_v33, %v1515_v56  ;;  %v953_v22 = vshll.u32 %v7422_v49, 16  ;;  %v286_v33 = vld [vmem:[%s6948_s6 + $0x8c] sm:$0x1] }
  0x57   : > { %v949_v9 = vrot.slane %v9481_v4, 4  ;;  %v5861_v39 = vcombine.low %v1513_v18, %v1516_v25  ;;  %v945_v45 = vrot.slane %v943_v14, 5  ;;  %v5845_v59 = vrot.slane %v6972_v16, 9 }
  0x58   : > { %v940_v58 = vor.u32 %v939_v20, %v936_v26  ;;  %v922_v8 = vsel %vm7152_vm6, %v917_v15, %v921_v11  ;;  %v927_v36 = vrot.slane %v926_v53, 4  ;;  %v955_v7 = vrot.slane %v953_v22, 5 }
  0x59   : > { %v1519_v35 = vrot.slane %v6980_v21, 5  ;;  %6517 = vmatprep.mubr.msk.bf16.mxu0 %vm412_vm1, %v5861_v39  ;;  %v950_v27 = vor.u32 %v949_v9, %v945_v45  ;;  %v1522_v32 = vrot.slane %v280_v30, 5  ;;  %v9482_v19 = vshrl.u32 %v7042_v60, 16 }
  0x5a   : > { %v941_v63 = vrot.slane %v940_v58, 4  ;;  %v9483_v5 = vshll.u32 %v7042_v60, 16  ;;  %v932_v10 = vsel %vm7152_vm6, %v927_v36, %v931_v31  ;;  %v967_v12 = vshll.u32 %v7045_v61, 16 }
  0x5b   : > { %v960_v62 = vrot.slane %v9482_v19, 4  ;;  %v1520_v21 = vsel %vm7175_vm7, %v5845_v59, %v1519_v35  ;;  %v1521_v28 = vrot.slane %v1519_v35, 4  ;;  %v5813_v42 = vcombine.low %v922_v8, %v932_v10  ;;  %v7489_v59 = vld [vmem:[%s6948_s6 + $0xa4] sm:$0x1]  ;;  %v9490_v19 = vld [vmem:[#allocation5_spill] sm:$0xff] }
  0x5c   : > { %v963_v41 = vrot.slane %v9483_v5, 5  ;;  %v946_v16 = vsel %vm7152_vm6, %v941_v63, %v945_v45  ;;  %v951_v48 = vrot.slane %v950_v27, 4  ;;  %v9484_v3 = vshrl.u32 %v7045_v61, 16 }
  0x5d   : > { %v1523_v17 = vsel %vm7175_vm7, %v1521_v28, %v1522_v32  ;;  %v977_v40 = vshll.u32 %v286_v33, 16  ;;  %v5846_v6 = vrot.slane %v7024_v50, 9  ;;  %6484 = vmatmul.mubr.msk.bf16.gmra.mrb[32].mxu1 %vm412_vm1, %v5813_v42  ;;  %v969_v54 = vrot.slane %v967_v12, 5 }
  0x5e   : > { %v964_v30 = vor.u32 %v963_v41, %v960_v62  ;;  %v973_v1 = vrot.slane %v9484_v3, 4  ;;  %v956_v51 = vsel %vm7152_vm6, %v951_v48, %v955_v7  ;;  %v5862_v43 = vcombine.low %v1520_v21, %v1523_v17 }
  0x5f   : > { %v5814_v13 = vcombine.low %v946_v16, %v956_v51  ;;  %v979_v2 = vrot.slane %v977_v40, 5  ;;  %v1526_v24 = vrot.slane %v7033_v55, 5  ;;  %v1529_v57 = vrot.slane %v7422_v49, 5  ;;  %v7513_v40 = vld [vmem:[%s6948_s6 + $0xb0] sm:$0x1] }
  0x60   : > { %v965_v0 = vrot.slane %v964_v30, 4  ;;  %6518 = vmatmul.mubr.msk.bf16.gmra.mrb[32].mxu0 %vm412_vm1, %v5862_v43  ;;  %v974_v46 = vor.u32 %v973_v1, %v969_v54  ;;  %v9485_v18 = vshrl.u32 %v7083_v38, 16  ;;  %v9486_v56 = vshll.u32 %v7083_v38, 16 }
  0x61   : > { %6487 = vmatprep.mubr.msk.bf16.mxu1 %vm412_vm1, %v5814_v13  ;;  %v1527_v55 = vsel %vm7175_vm7, %v5846_v6, %v1526_v24  ;;  %v1528_v49 = vrot.slane %v1526_v24, 4  ;;  %v991_v26 = vshll.u32 %v7092_v44, 16  ;;  %v9487_v52 = vshrl.u32 %v7092_v44, 16 }
  0x62   : > { %v970_v50 = vsel %vm7152_vm6, %v965_v0, %v969_v54  ;;  %v984_v11 = vrot.slane %v9485_v18, 4  ;;  %v987_v37 = vrot.slane %v9486_v56, 5  ;;  %v975_v15 = vrot.slane %v974_v46, 4  ;;  %v9492_v0 = vld [vmem:[#allocation6_spill] sm:$0xff] }
  0x63   : > { %v997_v20 = vrot.slane %v9487_v52, 4  ;;  %v1001_v14 = vshll.u32 %v7466_v29, 16  ;;  %v5847_v4 = vrot.slane %v7042_v60, 9  ;;  %v1530_v9 = vsel %vm7175_vm7, %v1528_v49, %v1529_v57 }
  0x64   : > { %v988_v31 = vor.u32 %v987_v37, %v984_v11  ;;  %v993_v53 = vrot.slane %v991_v26, 5  ;;  %v1533_v25 = vrot.slane %v7045_v61, 5  ;;  %v1536_v58 = vrot.slane %v286_v33, 5 }
  0x65   : > { %v980_v22 = vsel %vm7152_vm6, %v975_v15, %v979_v2  ;;  %v5863_v8 = vcombine.low %v1527_v55, %v1530_v9  ;;  %v1003_v45 = vrot.slane %v1001_v14, 5  ;;  %v9488_v35 = vshrl.u32 %v7095_v47, 16 }
  0x66   : > { %v989_v39 = vrot.slane %v988_v31, 4  ;;  %v5815_v36 = vcombine.low %v970_v50, %v980_v22  ;;  %v998_v63 = vor.u32 %v997_v20, %v993_v53  ;;  %v1534_v60 = vsel %vm7175_vm7, %v5847_v4, %v1533_v25 }
  0x67   : > { %v1535_v7 = vrot.slane %v1533_v25, 4  ;;  %6521 = vmatprep.mubr.msk.bf16.mxu0 %vm412_vm1, %v5863_v8  ;;  %v1008_v27 = vrot.slane %v9488_v35, 4  ;;  %v9489_v32 = vshll.u32 %v7095_v47, 16  ;;  %v1015_v62 = vshll.u32 %v9490_v19, 16  ;;  %v298_v25 = vld [vmem:[%s6948_s6 + $0xbc] sm:$0x1] }
  0x68   : > { %v994_v61 = vsel %vm7152_vm6, %v989_v39, %v993_v53  ;;  %6488 = vmatmul.mubr.msk.bf16.gmra.mrb[36].mxu1 %vm412_vm1, %v5815_v36  ;;  %v999_v5 = vrot.slane %v998_v63, 4  ;;  %v9491_v10 = vshrl.u32 %v9490_v19, 16  ;;  %v1025_v21 = vshll.u32 %v7489_v59, 16 }
  0x69   : > { %v1011_v33 = vrot.slane %v9489_v32, 5  ;;  %v1537_v41 = vsel %vm7175_vm7, %v1535_v7, %v1536_v58  ;;  %v1017_v48 = vrot.slane %v1015_v62, 5  ;;  %v5848_v30 = vrot.slane %v7083_v38, 9 }
  0x6a   : > { %v1021_v16 = vrot.slane %v9491_v10, 4  ;;  %v5864_v28 = vcombine.low %v1534_v60, %v1537_v41  ;;  %v1004_v12 = vsel %vm7152_vm6, %v999_v5, %v1003_v45  ;;  %v1027_v17 = vrot.slane %v1025_v21, 5  ;;  %v9500_v60 = vld [vmem:[#allocation9_spill] sm:$0xff] }
  0x6b   : > { %v1012_v42 = vor.u32 %v1011_v33, %v1008_v27  ;;  %v1540_v3 = vrot.slane %v7092_v44, 5  ;;  %v1543_v1 = vrot.slane %v7466_v29, 5  ;;  %v5816_v6 = vcombine.low %v994_v61, %v1004_v12  ;;  %v9495_v44 = vld [vmem:[#allocation7_spill] sm:$0xff] }
  0x6c   : > { %6522 = vmatmul.mubr.msk.bf16.gmra.mrb[36].mxu0 %vm412_vm1, %v5864_v28  ;;  %v1022_v43 = vor.u32 %v1021_v16, %v1017_v48  ;;  %v9493_v54 = vshrl.u32 %v9492_v0, 16  ;;  %v9494_v24 = vshll.u32 %v9492_v0, 16  ;;  %v1039_v50 = vshll.u32 %v9495_v44, 16 }
  0x6d   : > { %v1013_v51 = vrot.slane %v1012_v42, 4  ;;  %v1541_v38 = vsel %vm7175_vm7, %v5848_v30, %v1540_v3  ;;  %v1542_v2 = vrot.slane %v1540_v3, 4  ;;  %6491 = vmatprep.mubr.msk.bf16.mxu1 %vm412_vm1, %v5816_v6  ;;  %v9496_v18 = vshrl.u32 %v9495_v44, 16 }
  0x6e   : > { %v1032_v13 = vrot.slane %v9493_v54, 4  ;;  %v1035_v57 = vrot.slane %v9494_v24, 5  ;;  %v1023_v46 = vrot.slane %v1022_v43, 4  ;;  %v1049_v56 = vshll.u32 %v7513_v40, 16  ;;  %v7581_v24 = vld [vmem:[%s6948_s6 + $0x1c] sm:$0xf] }
  0x6f   : > { %v1018_v29 = vsel %vm7152_vm6, %v1013_v51, %v1017_v48  ;;  %v1045_v11 = vrot.slane %v9496_v18, 4  ;;  %v1544_v37 = vsel %vm7175_vm7, %v1542_v2, %v1543_v1  ;;  %v1041_v49 = vrot.slane %v1039_v50, 5  ;;  %v7558_v48 = vld [vmem:[%s6948_s6 + $0xc] sm:$0xf]  ;;  %v7565_v1 = vld [vmem:[%s6948_s6 + $0x10] sm:$0xf] }
  0x70   : > { %v1036_v55 = vor.u32 %v1035_v57, %v1032_v13  ;;  %v5849_v26 = vrot.slane %v7095_v47, 9  ;;  %v1028_v52 = vsel %vm7152_vm6, %v1023_v46, %v1027_v17  ;;  %v5865_v20 = vcombine.low %v1541_v38, %v1544_v37  ;;  %v9497_v47 = vld [vmem:[#allocation8_spill] sm:$0xff]  ;;  %v7593_v37 = vld [vmem:[%s6948_s6 + $0x14] sm:$0x1] }
  0x71   : > { %v1051_v15 = vrot.slane %v1049_v56, 5  ;;  %v1547_v31 = vrot.slane %v9490_v19, 5  ;;  %v5817_v14 = vcombine.low %v1018_v29, %v1028_v52  ;;  %v1046_v9 = vor.u32 %v1045_v11, %v1041_v49 }
  0x72   : > { %v1037_v4 = vrot.slane %v1036_v55, 4  ;;  %v1550_v53 = vrot.slane %v7489_v59, 5  ;;  %6525 = vmatprep.mubr.msk.bf16.mxu0 %vm412_vm1, %v5865_v20  ;;  %v9498_v8 = vshrl.u32 %v9497_v47, 16  ;;  %v9499_v45 = vshll.u32 %v9497_v47, 16  ;;  %v7596_v55 = vld [vmem:[%s6948_s6 + $0x24] sm:$0xf] }
  0x73   : > { %v1548_v58 = vsel %vm7175_vm7, %v5849_v26, %v1547_v31  ;;  %v1549_v22 = vrot.slane %v1547_v31, 4  ;;  %6492 = vmatmul.mubr.msk.bf16.gmra.mrb[40].mxu1 %vm412_vm1, %v5817_v14  ;;  %v1047_v59 = vrot.slane %v1046_v9, 4  ;;  %v1063_v7 = vshll.u32 %v9500_v60, 16 }
  0x74   : > { %v1056_v39 = vrot.slane %v9498_v8, 4  ;;  %v1059_v36 = vrot.slane %v9499_v45, 5  ;;  %v1042_v63 = vsel %vm7152_vm6, %v1037_v4, %v1041_v49  ;;  %v9501_v61 = vshrl.u32 %v9500_v60, 16 }
  0x75   : > { %v1551_v27 = vsel %vm7175_vm7, %v1549_v22, %v1550_v53  ;;  %v1073_v33 = vshll.u32 %v298_v25, 16  ;;  %v5850_v19 = vrot.slane %v9492_v0, 9  ;;  %v1052_v62 = vsel %vm7152_vm6, %v1047_v59, %v1051_v15  ;;  %v7574_v0 = vld [vmem:[%s6948_s6 + $0x18] sm:$0xf]  ;;  %v7603_v15 = vld [vmem:[%s6948_s6 + $0x28] sm:$0xf] }
  0x76   : > { %v1069_v35 = vrot.slane %v9501_v61, 4  ;;  %v1060_v32 = vor.u32 %v1059_v36, %v1056_v39  ;;  %v5866_v5 = vcombine.low %v1548_v58, %v1551_v27  ;;  %v1065_v41 = vrot.slane %v1063_v7, 5 }
  0x77   : > { %v1554_v10 = vrot.slane %v9495_v44, 5  ;;  %v5818_v16 = vcombine.low %v1042_v63, %v1052_v62  ;;  %v1075_v28 = vrot.slane %v1073_v33, 5  ;;  %v1557_v42 = vrot.slane %v7513_v40, 5  ;;  %v7619_v63 = vld [vmem:[%s6948_s6 + $0x30] sm:$0xf] }
  0x78   : > { %v1061_v21 = vrot.slane %v1060_v32, 4  ;;  %6526 = vmatmul.mubr.msk.bf16.gmra.mrb[40].mxu0 %vm412_vm1, %v5866_v5  ;;  %v1070_v30 = vor.u32 %v1069_v35, %v1065_v41  ;;  %v5851_v3 = vrot.slane %v9497_v47, 9  ;;  %v1561_v40 = vrot.slane %v9500_v60, 5  ;;  %v7613_v47 = vld [vmem:[%s6948_s6 + $0x20] sm:$0x1] }
  0x79   : > { %v1555_v12 = vsel %vm7175_vm7, %v5850_v19, %v1554_v10  ;;  %v1556_v17 = vrot.slane %v1554_v10, 4  ;;  %6495 = vmatprep.mubr.msk.bf16.mxu1 %vm412_vm1, %v5818_v16  ;;  %v1564_v51 = vrot.slane %v298_v25, 5  ;;  %v5934_v43 = vcombine.low %v7558_v48, %v7565_v1  ;;  %v7623_v35 = vld [vmem:[%s6948_s6 + $0x34] sm:$0xf]  ;;  %v7631_v16 = vld [vmem:[%s6948_s6 + $0x2c] sm:$0x1] }
  0x7a   : > { %v1066_v6 = vsel %vm7152_vm6, %v1061_v21, %v1065_v41  ;;  %v1071_v54 = vrot.slane %v1070_v30, 4  ;;  %v2367_v38 = vshrl.u32 %v7558_v48, 16  ;;  %v2370_v2 = vshll.u32 %v7558_v48, 16 }
  0x7b   : > { %v1558_v13 = vsel %vm7175_vm7, %v1556_v17, %v1557_v42  ;;  %v1562_v44 = vsel %vm7175_vm7, %v5851_v3, %v1561_v40  ;;  %v1563_v50 = vrot.slane %v1561_v40, 4  ;;  %v2380_v29 = vshrl.u32 %v7565_v1, 16 }
  0x7c   : > { %v5867_v57 = vcombine.low %v1555_v12, %v1558_v13  ;;  %v1076_v46 = vsel %vm7152_vm6, %v1071_v54, %v1075_v28  ;;  %v5935_v18 = vcombine.low %v7574_v0, %v7581_v24  ;;  %v2391_v11 = vshrl.u32 %v7574_v0, 16  ;;  %v7637_v12 = vld [vmem:[%s6948_s6 + $0x3c] sm:$0xf] }
  0x7d   : > { %v2394_v56 = vshll.u32 %v7574_v0, 16  ;;  %v5819_v49 = vcombine.low %v1066_v6, %v1076_v46  ;;  %v1565_v26 = vsel %vm7175_vm7, %v1563_v50, %v1564_v51  ;;  %v2404_v52 = vshrl.u32 %v7581_v24, 16  ;;  %v7640_v51 = vld [vmem:[%s6948_s6 + $0x40] sm:$0xf] }
  0x7e   : > { %6529 = vmatprep.mubr.msk.bf16.mxu0 %vm412_vm1, %v5867_v57  ;;  %v2369_v20 = vrot.slane %v2367_v38, 4  ;;  %v5868_v31 = vcombine.low %v1562_v44, %v1565_v26  ;;  %v2372_v14 = vrot.slane %v2370_v2, 5  ;;  %v2376_v4 = vshll.u32 %v7565_v1, 16  ;;  %v7649_v2 = vld [vmem:[%s9405_s1 + $0xe] sm:$0x3]  ;;  %v9502_v46 = vld [vmem:[#allocation3_spill] sm:$0xff] }
  0x7f   : > { %v2382_v9 = vrot.slane %v2380_v29, 4  ;;  %6496 = vmatmul.mubr.msk.bf16.gmra.mrb[44].mxu1 %vm412_vm1, %v5819_v49  ;;  %v2386_v53 = vshll.u32 %v7593_v37, 16  ;;  %v5936_v25 = vcombine.low %v7596_v55, %v7603_v15  ;;  %v2415_v58 = vshrl.u32 %v7596_v55, 16 }
  0x80   : > { %v2418_v22 = vshll.u32 %v7596_v55, 16  ;;  %6530 = vmatmul.mubr.msk.bf16.gmra.mrb[44].mxu0 %vm412_vm1, %v5868_v31  ;;  %6535 = vmatprep.mubr.msk.bf16.mxu1 %vm412_vm1, %v5934_v43  ;;  %v2373_v8 = vor.u32 %v2372_v14, %v2369_v20  ;;  %v2378_v39 = vrot.slane %v2376_v4, 5  ;;  %v2428_v45 = vshrl.u32 %v7603_v15, 16  ;;  %v7668_v4 = vld [vmem:[%s6948_s6 + $0x48] sm:$0xf] }
  0x81   : > { %v2393_v36 = vrot.slane %v2391_v11, 4  ;;  %v2388_v59 = vrot.slane %v2386_v53, 5  ;;  %v2396_v60 = vrot.slane %v2394_v56, 5  ;;  %v2400_v7 = vshll.u32 %v7581_v24, 16 }
  0x82   : > { %v2406_v61 = vrot.slane %v2404_v52, 4  ;;  %v2374_v27 = vrot.slane %v2373_v8, 4  ;;  %v2383_v32 = vor.u32 %v2382_v9, %v2378_v39  ;;  %v2410_v33 = vshll.u32 %v7613_v47, 16 }
  0x83   : > { %v5937_v19 = vcombine.low %v7619_v63, %v7623_v35  ;;  %v2397_v62 = vor.u32 %v2396_v60, %v2393_v36  ;;  %v2402_v5 = vrot.slane %v2400_v7, 5  ;;  %v2439_v41 = vshrl.u32 %v7619_v63, 16 }
  0x84   : > { %v2442_v10 = vshll.u32 %v7619_v63, 16  ;;  %v2379_v21 = vsel %vm7152_vm6, %v2374_v27, %v2378_v39  ;;  %v2384_v28 = vrot.slane %v2383_v32, 4  ;;  %v2412_v42 = vrot.slane %v2410_v33, 5  ;;  %v9503_v32 = vld [vmem:[#allocation4_spill] sm:$0xff] }
  0x85   : > { %v2452_v30 = vshrl.u32 %v7623_v35, 16  ;;  %v2398_v17 = vrot.slane %v2397_v62, 4  ;;  %v2407_v3 = vor.u32 %v2406_v61, %v2402_v5  ;;  %v2417_v6 = vrot.slane %v2415_v58, 4 }
  0x86   : > { %v2420_v40 = vrot.slane %v2418_v22, 5  ;;  %v2389_v43 = vsel %vm7152_vm6, %v2384_v28, %v2388_v59  ;;  %v2424_v54 = vshll.u32 %v7603_v15, 16  ;;  %v2430_v13 = vrot.slane %v2428_v45, 4  ;;  %v7673_v22 = vld [vmem:[%s6948_s6 + $0x4c] sm:$0xf] }
  0x87   : > { %v2434_v38 = vshll.u32 %v7631_v16, 16  ;;  %6536 = vmatmul.mubr.msk.bf16.vlgmr.msra.gmra.mrb[48].mxu1 %vm412_vm1, %v5935_v18  ;;  %v5967_v57 = vcombine.low %v2379_v21, %v2389_v43  ;;  %v2403_v44 = vsel %vm7152_vm6, %v2398_v17, %v2402_v5  ;;  %v2408_v50 = vrot.slane %v2407_v3, 4  ;;  %v7660_v18 = vld [vmem:[%s6948_s6 + $0x38] sm:$0x1]  ;;  %v7682_v59 = vld [vmem:[%s9405_s1 + $0x10] sm:$0x3] }
  0x88   : > { %v2421_v29 = vor.u32 %v2420_v40, %v2417_v6  ;;  %6602 = vmatpush3.bf16.msra.mxu1 %v9502_v46  ;;  %6539 = vmatprep.mubr.msk.bf16.mxu1 %vm412_vm1, %v5936_v25  ;;  %v2426_v11 = vrot.slane %v2424_v54, 5  ;;  %v5938_v49 = vcombine.low %v7637_v12, %v7640_v51  ;;  %v2463_v26 = vshrl.u32 %v7637_v12, 16  ;;  %v7697_v17 = vld [vmem:[%s6948_s6 + $0x54] sm:$0xf]  ;;  %v7707_v54 = vld [vmem:[%s6948_s6 + $0x58] sm:$0xf] }
  0x89   : > { %v2436_v56 = vrot.slane %v2434_v38, 5  ;;  %6569 = vmatprep.mubr.msk.bf16.mxu0 %vm412_vm1, %v5967_v57  ;;  %v2413_v52 = vsel %vm7152_vm6, %v2408_v50, %v2412_v42  ;;  %v2466_v31 = vshll.u32 %v7637_v12, 16  ;;  %v2476_v14 = vshrl.u32 %v7640_v51, 16  ;;  %6747 = vmatprep.subr.msk.bf16.mxu1 %vm461_vm0, %v7649_v2 }
  0x8a   : > { %v2422_v20 = vrot.slane %v2421_v29, 4  ;;  %v5968_v9 = vcombine.low %v2403_v44, %v2413_v52  ;;  %v2431_v53 = vor.u32 %v2430_v13, %v2426_v11  ;;  %v2441_v25 = vrot.slane %v2439_v41, 4 }
  0x8b   : > { %v2444_v58 = vrot.slane %v2442_v10, 5  ;;  %v2448_v39 = vshll.u32 %v7623_v35, 16  ;;  %v2454_v45 = vrot.slane %v2452_v30, 4  ;;  %v2458_v36 = vshll.u32 %v7660_v18, 16  ;;  %v7692_v10 = vld [vmem:[%s6948_s6 + $0x44] sm:$0x1] }
  0x8c   : > { %v2427_v8 = vsel %vm7152_vm6, %v2422_v20, %v2426_v11  ;;  %6570 = vmatmul.mubr.msk.bf16.vlgmr.msra.gmra.mrb[48].mxu0 %vm412_vm1, %v5968_v9  ;;  %v2432_v60 = vrot.slane %v2431_v53, 4  ;;  %v5939_v61 = vcombine.low %v7668_v4, %v7673_v22  ;;  %v2487_v27 = vshrl.u32 %v7668_v4, 16  ;;  %v7719_v11 = vld [vmem:[%s6948_s6 + $0x50] sm:$0x1]  ;;  %v7726_v53 = vld [vmem:[%s6948_s6 + $0x60] sm:$0xf] }
  0x8d   : > { %v2445_v7 = vor.u32 %v2444_v58, %v2441_v25  ;;  %6636 = vmatpush3.bf16.msra.mxu0 %v9503_v32  ;;  %v2450_v33 = vrot.slane %v2448_v39, 5  ;;  %v2460_v62 = vrot.slane %v2458_v36, 5  ;;  %v2490_v5 = vshll.u32 %v7668_v4, 16  ;;  %v7729_v25 = vld [vmem:[%s6948_s6 + $0x64] sm:$0xf] }
  0x8e   : > { %v2500_v41 = vshrl.u32 %v7673_v22, 16  ;;  %v2437_v21 = vsel %vm7152_vm6, %v2432_v60, %v2436_v56  ;;  %v2465_v42 = vrot.slane %v2463_v26, 4  ;;  %v2468_v30 = vrot.slane %v2466_v31, 5  ;;  %6748 = vmatprep.subr.msk.bf16.mxu0 %vm461_vm0, %v7682_v59 }
  0x8f   : > { %v2446_v28 = vrot.slane %v2445_v7, 4  ;;  %6540 = vmatmul.mubr.msk.bf16.gmra.mrb[52].mxu1 %vm412_vm1, %v5937_v19  ;;  %v5969_v3 = vcombine.low %v2427_v8, %v2437_v21  ;;  %v2455_v6 = vor.u32 %v2454_v45, %v2450_v33  ;;  %v2472_v40 = vshll.u32 %v7640_v51, 16 }
  0x90   : > { %v2478_v43 = vrot.slane %v2476_v14, 4  ;;  %6543 = vmatprep.mubr.msk.bf16.mxu1 %vm412_vm1, %v5938_v49  ;;  %v2469_v38 = vor.u32 %v2468_v30, %v2465_v42  ;;  %v2482_v57 = vshll.u32 %v7692_v10, 16  ;;  %v5940_v19 = vcombine.low %v7697_v17, %v7707_v54 }
  0x91   : > { %v2451_v13 = vsel %vm7152_vm6, %v2446_v28, %v2450_v33  ;;  %6573 = vmatprep.mubr.msk.bf16.mxu0 %vm412_vm1, %v5969_v3  ;;  %v2456_v44 = vrot.slane %v2455_v6, 4  ;;  %v2474_v50 = vrot.slane %v2472_v40, 5  ;;  %v2511_v29 = vshrl.u32 %v7697_v17, 16  ;;  %v7747_v3 = vld [vmem:[%s6948_s6 + $0x6c] sm:$0xf] }
  0x92   : > { %v2514_v46 = vshll.u32 %v7697_v17, 16  ;;  %v2470_v56 = vrot.slane %v2469_v38, 4  ;;  %v2484_v49 = vrot.slane %v2482_v57, 5  ;;  %v2524_v26 = vshrl.u32 %v7707_v54, 16  ;;  %v7752_v38 = vld [vmem:[%s6948_s6 + $0x70] sm:$0xf] }
  0x93   : > { %v2489_v52 = vrot.slane %v2487_v27, 4  ;;  %v2461_v20 = vsel %vm7152_vm6, %v2456_v44, %v2460_v62  ;;  %v2479_v31 = vor.u32 %v2478_v43, %v2474_v50  ;;  %v2492_v14 = vrot.slane %v2490_v5, 5 }
  0x94   : > { %v2496_v9 = vshll.u32 %v7673_v22, 16  ;;  %v5970_v58 = vcombine.low %v2451_v13, %v2461_v20  ;;  %v2475_v8 = vsel %vm7152_vm6, %v2470_v56, %v2474_v50  ;;  %v2502_v39 = vrot.slane %v2500_v41, 4  ;;  %v7741_v41 = vld [vmem:[%s6948_s6 + $0x5c] sm:$0x1] }
  0x95   : > { %v2506_v45 = vshll.u32 %v7719_v11, 16  ;;  %v2480_v36 = vrot.slane %v2479_v31, 4  ;;  %v2493_v60 = vor.u32 %v2492_v14, %v2489_v52  ;;  %v5941_v27 = vcombine.low %v7726_v53, %v7729_v25  ;;  %v7769_v14 = vld [vmem:[%s6948_s6 + $0x78] sm:$0xf] }
  0x96   : > { %v2498_v7 = vrot.slane %v2496_v9, 5  ;;  %6574 = vmatmul.mubr.msk.bf16.gmra.mrb[52].mxu0 %vm412_vm1, %v5970_v58  ;;  %v2535_v33 = vshrl.u32 %v7726_v53, 16  ;;  %v2538_v62 = vshll.u32 %v7726_v53, 16  ;;  %v2548_v5 = vshrl.u32 %v7729_v25, 16 }
  0x97   : > { %v2508_v32 = vrot.slane %v2506_v45, 5  ;;  %6544 = vmatmul.mubr.msk.bf16.gmra.mrb[56].mxu1 %vm412_vm1, %v5939_v61  ;;  %v2485_v21 = vsel %vm7152_vm6, %v2480_v36, %v2484_v49  ;;  %v2494_v28 = vrot.slane %v2493_v60, 4  ;;  %v2513_v30 = vrot.slane %v2511_v29, 4  ;;  %v7763_v49 = vld [vmem:[%s6948_s6 + $0x68] sm:$0x1] }
  0x98   : > { %v2503_v42 = vor.u32 %v2502_v39, %v2498_v7  ;;  %v5971_v6 = vcombine.low %v2475_v8, %v2485_v21  ;;  %6547 = vmatprep.mubr.msk.bf16.mxu1 %vm412_vm1, %v5940_v19  ;;  %v2516_v40 = vrot.slane %v2514_v46, 5  ;;  %v2520_v43 = vshll.u32 %v7707_v54, 16  ;;  %v7772_v45 = vld [vmem:[%s6948_s6 + $0x7c] sm:$0xf] }
  0x99   : > { %v2526_v13 = vrot.slane %v2524_v26, 4  ;;  %v2499_v61 = vsel %vm7152_vm6, %v2494_v28, %v2498_v7  ;;  %v2530_v44 = vshll.u32 %v7741_v41, 16  ;;  %v5942_v50 = vcombine.low %v7747_v3, %v7752_v38 }
  0x9a   : > { %v2504_v57 = vrot.slane %v2503_v42, 4  ;;  %6577 = vmatprep.mubr.msk.bf16.mxu0 %vm412_vm1, %v5971_v6  ;;  %v2517_v19 = vor.u32 %v2516_v40, %v2513_v30  ;;  %v2522_v29 = vrot.slane %v2520_v43, 5  ;;  %v2559_v46 = vshrl.u32 %v7747_v3, 16  ;;  %v7786_v40 = vld [vmem:[%s6948_s6 + $0x74] sm:$0x1] }
  0x9b   : > { %v2562_v56 = vshll.u32 %v7747_v3, 16  ;;  %v2532_v52 = vrot.slane %v2530_v44, 5  ;;  %v2572_v20 = vshrl.u32 %v7752_v38, 16  ;;  %v2537_v31 = vrot.slane %v2535_v33, 4  ;;  %v7792_v44 = vld [vmem:[%s6948_s6 + $0x84] sm:$0xf] }
  0x9c   : > { %v2509_v26 = vsel %vm7152_vm6, %v2504_v57, %v2508_v32  ;;  %v2518_v58 = vrot.slane %v2517_v19, 4  ;;  %v2527_v8 = vor.u32 %v2526_v13, %v2522_v29  ;;  %v2540_v39 = vrot.slane %v2538_v62, 5  ;;  %9504 = vst [vmem:[#allocation5_spill] sm:$0xff] %v7792_v44 }
  0x9d   : > { %v5972_v9 = vcombine.low %v2499_v61, %v2509_v26  ;;  %v2544_v36 = vshll.u32 %v7729_v25, 16  ;;  %v2550_v60 = vrot.slane %v2548_v5, 4  ;;  %v2554_v7 = vshll.u32 %v7763_v49, 16 }
  0x9e   : > { %v5943_v32 = vcombine.low %v7769_v14, %v7772_v45  ;;  %v2523_v33 = vsel %vm7152_vm6, %v2518_v58, %v2522_v29  ;;  %v2528_v21 = vrot.slane %v2527_v8, 4  ;;  %v2541_v28 = vor.u32 %v2540_v39, %v2537_v31  ;;  %v7796_v31 = vld [vmem:[%s6948_s6 + $0x88] sm:$0xf]  ;;  %v7807_v39 = vld [vmem:[%s6948_s6 + $0x80] sm:$0x1] }
  0x9f   : > { %6578 = vmatmul.mubr.msk.bf16.gmra.mrb[56].mxu0 %vm412_vm1, %v5972_v9  ;;  %v2583_v62 = vshrl.u32 %v7769_v14, 16  ;;  %6548 = vmatmul.mubr.msk.bf16.gmra.mrb[60].mxu1 %vm412_vm1, %v5941_v27  ;;  %v2546_v42 = vrot.slane %v2544_v36, 5  ;;  %v2556_v5 = vrot.slane %v2554_v7, 5  ;;  %v2586_v30 = vshll.u32 %v7769_v14, 16  ;;  %9505 = vst [vmem:[#allocation6_spill] sm:$0xff] %v7796_v31 }
  0xa0   : > { %v2596_v6 = vshrl.u32 %v7772_v45, 16  ;;  %v2533_v43 = vsel %vm7152_vm6, %v2528_v21, %v2532_v52  ;;  %6551 = vmatprep.mubr.msk.bf16.mxu1 %vm412_vm1, %v5942_v50  ;;  %v2542_v13 = vrot.slane %v2541_v28, 4  ;;  %v2561_v61 = vrot.slane %v2559_v46, 4 }
  0xa1   : > { %v2564_v57 = vrot.slane %v2562_v56, 5  ;;  %v5973_v27 = vcombine.low %v2523_v33, %v2533_v43  ;;  %v2551_v19 = vor.u32 %v2550_v60, %v2546_v42  ;;  %v2568_v29 = vshll.u32 %v7752_v38, 16 }
  0xa2   : > { %v2574_v26 = vrot.slane %v2572_v20, 4  ;;  %v2547_v9 = vsel %vm7152_vm6, %v2542_v13, %v2546_v42  ;;  %v2578_v52 = vshll.u32 %v7786_v40, 16  ;;  %v5944_v50 = vcombine.low %v7792_v44, %v7796_v31  ;;  %v7814_v13 = vld [vmem:[%s6948_s6 + $0x90] sm:$0xf] }
  0xa3   : > { %v2565_v58 = vor.u32 %v2564_v57, %v2561_v61  ;;  %6581 = vmatprep.mubr.msk.bf16.mxu0 %vm412_vm1, %v5973_v27  ;;  %v2552_v46 = vrot.slane %v2551_v19, 4  ;;  %v2570_v56 = vrot.slane %v2568_v29, 5  ;;  %v2607_v8 = vshrl.u32 %v7792_v44, 16  ;;  %9506 = vst [vmem:[#allocation7_spill] sm:$0xff] %v7814_v13  ;;  %v7817_v61 = vld [vmem:[%s6948_s6 + $0x94] sm:$0xf] }
  0xa4   : > { %v2610_v20 = vshll.u32 %v7792_v44, 16  ;;  %v2580_v60 = vrot.slane %v2578_v52, 5  ;;  %v2620_v7 = vshrl.u32 %v7796_v31, 16  ;;  %v2585_v33 = vrot.slane %v2583_v62, 4  ;;  %9507 = vst [vmem:[#allocation8_spill] sm:$0xff] %v7817_v61 }
  0xa5   : > { %v2566_v36 = vrot.slane %v2565_v58, 4  ;;  %v2557_v21 = vsel %vm7152_vm6, %v2552_v46, %v2556_v5  ;;  %v2575_v28 = vor.u32 %v2574_v26, %v2570_v56  ;;  %v2588_v42 = vrot.slane %v2586_v30, 5 }
  0xa6   : > { %v2592_v43 = vshll.u32 %v7772_v45, 16  ;;  %v5974_v57 = vcombine.low %v2547_v9, %v2557_v21  ;;  %v2598_v19 = vrot.slane %v2596_v6, 4  ;;  %v2602_v29 = vshll.u32 %v7807_v39, 16  ;;  %v7836_v21 = vld [vmem:[%s6948_s6 + $0x9c] sm:$0xf] }
  0xa7   : > { %v2571_v27 = vsel %vm7152_vm6, %v2566_v36, %v2570_v56  ;;  %6552 = vmatmul.mubr.msk.bf16.gmra.mrb[64].mxu1 %vm412_vm1, %v5943_v32  ;;  %v2576_v62 = vrot.slane %v2575_v28, 4  ;;  %v2589_v5 = vor.u32 %v2588_v42, %v2585_v33  ;;  %v5945_v26 = vcombine.low %v7814_v13, %v7817_v61  ;;  %v7831_v32 = vld [vmem:[%s6948_s6 + $0x8c] sm:$0x1]  ;;  %9509 = vst [vmem:[#allocation3_spill] sm:$0xff] %v7836_v21 }
  0xa8   : > { %v2594_v30 = vrot.slane %v2592_v43, 5  ;;  %6582 = vmatmul.mubr.msk.bf16.gmra.mrb[60].mxu0 %vm412_vm1, %v5974_v57  ;;  %6555 = vmatprep.mubr.msk.bf16.mxu1 %vm412_vm1, %v5944_v50  ;;  %v2604_v9 = vrot.slane %v2602_v29, 5  ;;  %v2631_v58 = vshrl.u32 %v7814_v13, 16  ;;  %v2634_v6 = vshll.u32 %v7814_v13, 16  ;;  %9508 = vst [vmem:[#allocation9_spill] sm:$0xff] %v7831_v32 }
  0xa9   : > { %v2644_v52 = vshrl.u32 %v7817_v61, 16  ;;  %v2581_v46 = vsel %vm7152_vm6, %v2576_v62, %v2580_v60  ;;  %v2590_v56 = vrot.slane %v2589_v5, 4  ;;  %v2609_v33 = vrot.slane %v2607_v8, 4  ;;  %v7840_v57 = vld [vmem:[%s6948_s6 + $0xa0] sm:$0xf] }
  0xaa   : > { %v2599_v36 = vor.u32 %v2598_v19, %v2594_v30  ;;  %v5975_v28 = vcombine.low %v2571_v27, %v2581_v46  ;;  %v2612_v50 = vrot.slane %v2610_v20, 5  ;;  %v2616_v42 = vshll.u32 %v7796_v31, 16  ;;  %9510 = vst [vmem:[#allocation4_spill] sm:$0xff] %v7840_v57  ;;  %v7851_v62 = vld [vmem:[%s6948_s6 + $0x98] sm:$0x1] }
  0xab   : > { %v2622_v43 = vrot.slane %v2620_v7, 4  ;;  %v2595_v29 = vsel %vm7152_vm6, %v2590_v56, %v2594_v30  ;;  %v2626_v60 = vshll.u32 %v7831_v32, 16  ;;  %v5946_v8 = vcombine.low %v7836_v21, %v7840_v57  ;;  %9511 = vst [vmem:[#allocation10_spill] sm:$0xff] %v7851_v62 }
  0xac   : > { %v2600_v13 = vrot.slane %v2599_v36, 4  ;;  %6585 = vmatprep.mubr.msk.bf16.mxu0 %vm412_vm1, %v5975_v28  ;;  %v2613_v27 = vor.u32 %v2612_v50, %v2609_v33  ;;  %v2618_v20 = vrot.slane %v2616_v42, 5  ;;  %v2655_v19 = vshrl.u32 %v7836_v21, 16  ;;  %v7857_v36 = vld [vmem:[%s6948_s6 + $0xa8] sm:$0xf] }
  0xad   : > { %v2658_v7 = vshll.u32 %v7836_v21, 16  ;;  %v2628_v30 = vrot.slane %v2626_v60, 5  ;;  %v2668_v46 = vshrl.u32 %v7840_v57, 16  ;;  %v2633_v56 = vrot.slane %v2631_v58, 4  ;;  %9512 = vst [vmem:[#allocation11_spill] sm:$0xff] %v7857_v36 }
  0xae   : > { %v2605_v5 = vsel %vm7152_vm6, %v2600_v13, %v2604_v9  ;;  %v2614_v31 = vrot.slane %v2613_v27, 4  ;;  %v2623_v28 = vor.u32 %v2622_v43, %v2618_v20  ;;  %v2636_v33 = vrot.slane %v2634_v6, 5  ;;  %v7860_v50 = vld [vmem:[%s6948_s6 + $0xac] sm:$0xf] }
  0xaf   : > { %v5976_v32 = vcombine.low %v2595_v29, %v2605_v5  ;;  %9513 = vst [vmem:[#allocation12_spill] sm:$0xff] %v7860_v50  ;;  %6556 = vmatmul.mubr.msk.bf16.gmra.mrb[68].mxu1 %vm412_vm1, %v5945_v26  ;;  %v2640_v42 = vshll.u32 %v7817_v61, 16  ;;  %v2646_v21 = vrot.slane %v2644_v52, 4  ;;  %v2650_v13 = vshll.u32 %v7851_v62, 16  ;;  %v7875_v5 = vld [vmem:[%s6948_s6 + $0xa4] sm:$0x1] }
  0xb0   : > { %v5947_v9 = vcombine.low %v7857_v36, %v7860_v50  ;;  %v2619_v58 = vsel %vm7152_vm6, %v2614_v31, %v2618_v20  ;;  %v2624_v6 = vrot.slane %v2623_v28, 4  ;;  %6559 = vmatprep.mubr.msk.bf16.mxu1 %vm412_vm1, %v5946_v8  ;;  %v2637_v43 = vor.u32 %v2636_v33, %v2633_v56  ;;  %9514 = vst [vmem:[#allocation13_spill] sm:$0xff] %v7875_v5  ;;  %v7880_v8 = vld [vmem:[%s6948_s6 + $0xb4] sm:$0xf] }
  0xb1   : > { %6586 = vmatmul.mubr.msk.bf16.gmra.mrb[64].mxu0 %vm412_vm1, %v5976_v32  ;;  %v2679_v26 = vshrl.u32 %v7857_v36, 16  ;;  %v2642_v29 = vrot.slane %v2640_v42, 5  ;;  %v2652_v52 = vrot.slane %v2650_v13, 5  ;;  %v2682_v60 = vshll.u32 %v7857_v36, 16  ;;  %9515 = vst [vmem:[#allocation14_spill] sm:$0xff] %v7880_v8 }
  0xb2   : > { %v2692_v27 = vshrl.u32 %v7860_v50, 16  ;;  %v2629_v32 = vsel %vm7152_vm6, %v2624_v6, %v2628_v30  ;;  %v2638_v62 = vrot.slane %v2637_v43, 4  ;;  %v2657_v31 = vrot.slane %v2655_v19, 4  ;;  %v7884_v13 = vld [vmem:[%s6948_s6 + $0xb8] sm:$0xf] }
  0xb3   : > { %v2660_v20 = vrot.slane %v2658_v7, 5  ;;  %v5977_v56 = vcombine.low %v2619_v58, %v2629_v32  ;;  %v2647_v28 = vor.u32 %v2646_v21, %v2642_v29  ;;  %v2664_v33 = vshll.u32 %v7840_v57, 16  ;;  %v7895_v58 = vld [vmem:[%s6948_s6 + $0xb0] sm:$0x1] }
  0xb4   : > { %v2670_v42 = vrot.slane %v2668_v46, 4  ;;  %v2643_v36 = vsel %vm7152_vm6, %v2638_v62, %v2642_v29  ;;  %v2674_v44 = vshll.u32 %v7875_v5, 16  ;;  %v5948_v19 = vcombine.low %v7880_v8, %v7884_v13  ;;  %9516 = vst [vmem:[#allocation15_spill] sm:$0xff] %v7895_v58 }
  0xb5   : > { %v2661_v61 = vor.u32 %v2660_v20, %v2657_v31  ;;  %6589 = vmatprep.mubr.msk.bf16.mxu0 %vm412_vm1, %v5977_v56  ;;  %v2648_v7 = vrot.slane %v2647_v28, 4  ;;  %v2666_v21 = vrot.slane %v2664_v33, 5  ;;  %v2703_v30 = vshrl.u32 %v7880_v8, 16  ;;  %v7903_v28 = vld [vmem:[%s6948_s6 + $0xc0] sm:$0xf] }
  0xb6   : > { %v2706_v46 = vshll.u32 %v7880_v8, 16  ;;  %v2676_v62 = vrot.slane %v2674_v44, 5  ;;  %v2716_v43 = vshrl.u32 %v7884_v13, 16  ;;  %v2681_v29 = vrot.slane %v2679_v26, 4  ;;  %9517 = vst [vmem:[#allocation16_spill] sm:$0xff] %v7903_v28 }
  0xb7   : > { %v2662_v6 = vrot.slane %v2661_v61, 4  ;;  %v2653_v32 = vsel %vm7152_vm6, %v2648_v7, %v2652_v52  ;;  %6560 = vmatmul.mubr.msk.bf16.gmra.mrb[72].mxu1 %vm412_vm1, %v5947_v9  ;;  %v2671_v31 = vor.u32 %v2670_v42, %v2666_v21  ;;  %v2684_v20 = vrot.slane %v2682_v60, 5  ;;  %v7906_v33 = vld [vmem:[%s6948_s6 + $0xc4] sm:$0xf] }
  0xb8   : > { %v2688_v56 = vshll.u32 %v7860_v50, 16  ;;  %v5978_v8 = vcombine.low %v2643_v36, %v2653_v32  ;;  %6563 = vmatprep.mubr.msk.bf16.mxu1 %vm412_vm1, %v5948_v19  ;;  %v2694_v61 = vrot.slane %v2692_v27, 4  ;;  %v2698_v26 = vshll.u32 %v7895_v58, 16  ;;  %v7919_v19 = vld [vmem:[%s6948_s6 + $0xbc] sm:$0x1] }
  0xb9   : > { %v2667_v44 = vsel %vm7152_vm6, %v2662_v6, %v2666_v21  ;;  %v2672_v52 = vrot.slane %v2671_v31, 4  ;;  %v2685_v9 = vor.u32 %v2684_v20, %v2681_v29  ;;  %v5949_v60 = vcombine.low %v7903_v28, %v7906_v33 }
  0xba   : > { %v2690_v42 = vrot.slane %v2688_v56, 5  ;;  %6590 = vmatmul.mubr.msk.bf16.gmra.mrb[68].mxu0 %vm412_vm1, %v5978_v8  ;;  %v2700_v7 = vrot.slane %v2698_v26, 5  ;;  %v2727_v36 = vshrl.u32 %v7903_v28, 16  ;;  %v2730_v32 = vshll.u32 %v7903_v28, 16  ;;  %v7925_v26 = vld [vmem:[%s6948_s6 + $0xc8] sm:$0x1] }
  0xbb   : > { %v2740_v21 = vshrl.u32 %v7906_v33, 16  ;;  %v2677_v27 = vsel %vm7152_vm6, %v2672_v52, %v2676_v62  ;;  %v2686_v6 = vrot.slane %v2685_v9, 4  ;;  %v2705_v31 = vrot.slane %v2703_v30, 4 }
  0xbc   : > { %v2695_v29 = vor.u32 %v2694_v61, %v2690_v42  ;;  %v5979_v20 = vcombine.low %v2667_v44, %v2677_v27  ;;  %v2708_v56 = vrot.slane %v2706_v46, 5  ;;  %v2712_v58 = vshll.u32 %v7884_v13, 16 }
  0xbd   : > { %v2718_v8 = vrot.slane %v2716_v43, 4  ;;  %v2691_v28 = vsel %vm7152_vm6, %v2686_v6, %v2690_v42  ;;  %v2722_v5 = vshll.u32 %v7919_v19, 16  ;;  %v2729_v57 = vrot.slane %v2727_v36, 4 }
  0xbe   : > { %v2696_v50 = vrot.slane %v2695_v29, 4  ;;  %6593 = vmatprep.mubr.msk.bf16.mxu0 %vm412_vm1, %v5979_v20  ;;  %v2709_v62 = vor.u32 %v2708_v56, %v2705_v31  ;;  %v2714_v52 = vrot.slane %v2712_v58, 5  ;;  %v2732_v61 = vrot.slane %v2730_v32, 5 }
  0xbf   : > { %v2736_v30 = vshll.u32 %v7906_v33, 16  ;;  %6564 = vmatmul.mubr.msk.bf16.gmra.mrb[76].mxu1 %vm412_vm1, %v5949_v60  ;;  %v2724_v43 = vrot.slane %v2722_v5, 5  ;;  %v2742_v44 = vrot.slane %v2740_v21, 4  ;;  %v2746_v9 = vshll.u32 %v7925_v26, 16 }
  0xc0   : > { %v2701_v46 = vsel %vm7152_vm6, %v2696_v50, %v2700_v7  ;;  %v2710_v27 = vrot.slane %v2709_v62, 4  ;;  %v2719_v36 = vor.u32 %v2718_v8, %v2714_v52  ;;  %v2733_v6 = vor.u32 %v2732_v61, %v2729_v57 }
  0xc1   : > { %v5980_v42 = vcombine.low %v2691_v28, %v2701_v46  ;;  %v2738_v29 = vrot.slane %v2736_v30, 5  ;;  %v2748_v58 = vrot.slane %v2746_v9, 5  ;;  %v5999_v32 = vrot.slane %v7558_v48, 9  ;;  %v7946_v48 = vld [vmem:[%s6948_s6 + $0x18] sm:$0xf] }
  0xc2   : > { %v3126_v31 = vrot.slane %v7565_v1, 5  ;;  %v2715_v50 = vsel %vm7152_vm6, %v2710_v27, %v2714_v52  ;;  %v2720_v5 = vrot.slane %v2719_v36, 4  ;;  %v2734_v60 = vrot.slane %v2733_v6, 4  ;;  %v7949_v1 = vld [vmem:[%s6948_s6 + $0x1c] sm:$0xf] }
  0xc3   : > { %6594 = vmatmul.mubr.msk.bf16.gmra.mrb[72].mxu0 %vm412_vm1, %v5980_v42  ;;  %v3129_v28 = vrot.slane %v7593_v37, 5  ;;  %v2743_v7 = vor.u32 %v2742_v44, %v2738_v29  ;;  %v6000_v20 = vrot.slane %v7574_v0, 9  ;;  %v3133_v37 = vrot.slane %v7581_v24, 5  ;;  %v7966_v42 = vld [vmem:[%s6948_s6 + $0x24] sm:$0xf] }
  0xc4   : > { %v3127_v21 = vsel %vm7175_vm7, %v5999_v32, %v3126_v31  ;;  %v3128_v57 = vrot.slane %v3126_v31, 4  ;;  %v2725_v56 = vsel %vm7152_vm6, %v2720_v5, %v2724_v43  ;;  %v2739_v8 = vsel %vm7152_vm6, %v2734_v60, %v2738_v29  ;;  %v7969_v24 = vld [vmem:[%s6948_s6 + $0x28] sm:$0xf]  ;;  %v8274_v60 = vld [vmem:[%s6948_s6 + $0xc0] sm:$0xf] }
  0xc5   : > { %v3136_v62 = vrot.slane %v7613_v47, 5  ;;  %v5981_v52 = vcombine.low %v2715_v50, %v2725_v56  ;;  %v2744_v61 = vrot.slane %v2743_v7, 4  ;;  %v4551_v30 = vsel %vm461_vm0, %v7649_v2, 0  ;;  %v7990_v7 = vld [vmem:[%s6948_s6 + $0x34] sm:$0xf] }
  0xc6   : > { %v3130_v0 = vsel %vm7175_vm7, %v3128_v57, %v3129_v28  ;;  %v3134_v44 = vsel %vm7175_vm7, %v6000_v20, %v3133_v37  ;;  %v3135_v43 = vrot.slane %v3133_v37, 4  ;;  %v6097_v9 = vcombine.low %v7946_v48, %v7949_v1  ;;  %v7987_v28 = vld [vmem:[%s6948_s6 + $0x30] sm:$0xf]  ;;  %v7998_v57 = vld [vmem:[%s6948_s6 + $0x3c] sm:$0xf] }
  0xc7   : > { %v6016_v46 = vcombine.low %v3127_v21, %v3130_v0  ;;  %6597 = vmatprep.mubr.msk.bf16.mxu0 %vm412_vm1, %v5981_v52  ;;  %v2749_v47 = vsel %vm7152_vm6, %v2744_v61, %v2748_v58  ;;  %v4037_v2 = vshrl.u32 %v7946_v48, 16  ;;  %v6001_v32 = vrot.slane %v7596_v55, 9  ;;  %v9535_v0 = vld [vmem:[#allocation15_spill] sm:$0xff] }
  0xc8   : > { %v5982_v6 = vcombine.low %v2739_v8, %v2749_v47  ;;  %v3137_v29 = vsel %vm7175_vm7, %v3135_v43, %v3136_v62  ;;  %v3140_v31 = vrot.slane %v7603_v15, 5  ;;  %v3143_v58 = vrot.slane %v7631_v16, 5  ;;  %v8008_v62 = vld [vmem:[%s6948_s6 + $0x40] sm:$0xf] }
  0xc9   : > { %6603 = vmatprep.mubr.msk.bf16.mxu1 %vm412_vm1, %v6016_v46  ;;  %v6017_v50 = vcombine.low %v3134_v44, %v3137_v29  ;;  %v6098_v5 = vcombine.low %v7966_v42, %v7969_v24  ;;  %v6002_v20 = vrot.slane %v7619_v63, 9  ;;  %v3147_v56 = vrot.slane %v7623_v35, 5  ;;  %v8020_v44 = vld [vmem:[%s6948_s6 + $0x48] sm:$0xf]  ;;  %v8343_v36 = vld [vmem:[%s6948_s6 + $0x20] sm:$0x1] }
  0xca   : > { %v3141_v55 = vsel %vm7175_vm7, %v6001_v32, %v3140_v31  ;;  %v3142_v21 = vrot.slane %v3140_v31, 4  ;;  %v3150_v8 = vrot.slane %v7660_v18, 5  ;;  %v5037_v37 = vsel %vm461_vm0, %v7682_v59, 0  ;;  %v8199_v32 = vld [vmem:[%s6948_s6 + $0xa8] sm:$0xf] }
  0xcb   : > { %6598 = vmatmul.mubr.msk.bf16.gmra.mrb[76].mxu0 %vm412_vm1, %v5982_v6  ;;  %6604 = vmatmul.mubr.msk.bf16.vlgmr.msra.gmra.mrb[80].mxu1 %vm412_vm1, %v6017_v50  ;;  %v6099_v61 = vcombine.low %v7987_v28, %v7990_v7  ;;  %v3148_v18 = vsel %vm7175_vm7, %v6002_v20, %v3147_v56  ;;  %v3149_v46 = vrot.slane %v3147_v56, 4  ;;  %v3154_v43 = vrot.slane %v7640_v51, 5  ;;  %v8028_v6 = vld [vmem:[%s6948_s6 + $0x4c] sm:$0xf] }
  0xcc   : > { %6637 = vmatprep.mubr.msk.bf16.mxu0 %vm412_vm1, %v6097_v9  ;;  %6670 = vmatpush3.bf16.msra.mxu1 %v4551_v30  ;;  %v3144_v52 = vsel %vm7175_vm7, %v3142_v21, %v3143_v58  ;;  %v6003_v30 = vrot.slane %v7637_v12, 9  ;;  %v3157_v9 = vrot.slane %v7692_v10, 5  ;;  %v6100_v47 = vcombine.low %v7998_v57, %v8008_v62 }
  0xcd   : > { %v6018_v35 = vcombine.low %v3141_v55, %v3144_v52  ;;  %v3151_v29 = vsel %vm7175_vm7, %v3149_v46, %v3150_v8  ;;  %v3156_v50 = vrot.slane %v3154_v43, 4  ;;  %v6004_v58 = vrot.slane %v7668_v4, 9  ;;  %v8040_v55 = vld [vmem:[%s6948_s6 + $0x54] sm:$0xf]  ;;  %v8048_v52 = vld [vmem:[%s6948_s6 + $0x58] sm:$0xf] }
  0xce   : > { %v6019_v51 = vcombine.low %v3148_v18, %v3151_v29  ;;  %v3155_v10 = vsel %vm7175_vm7, %v6003_v30, %v3154_v43  ;;  %v3161_v21 = vrot.slane %v7673_v22, 5  ;;  %v3164_v20 = vrot.slane %v7719_v11, 5  ;;  %v8061_v43 = vld [vmem:[%s6948_s6 + $0x60] sm:$0xf]  ;;  %v8085_v29 = vld [vmem:[%s6948_s6 + $0x70] sm:$0xf] }
  0xcf   : > { %6607 = vmatprep.mubr.msk.bf16.mxu1 %vm412_vm1, %v6018_v35  ;;  %v6101_v56 = vcombine.low %v8020_v44, %v8028_v6  ;;  %v3158_v35 = vsel %vm7175_vm7, %v3156_v50, %v3157_v9  ;;  %v6005_v18 = vrot.slane %v7697_v17, 9  ;;  %v3171_v9 = vrot.slane %v7741_v41, 5  ;;  %v8079_v50 = vld [vmem:[%s6948_s6 + $0x6c] sm:$0xf]  ;;  %v9529_v8 = vld [vmem:[#allocation10_spill] sm:$0xff] }
  0xd0   : > { %v6020_v11 = vcombine.low %v3155_v10, %v3158_v35  ;;  %v3162_v46 = vsel %vm7175_vm7, %v6004_v58, %v3161_v21  ;;  %v3163_v30 = vrot.slane %v3161_v21, 4  ;;  %v6102_v17 = vcombine.low %v8040_v55, %v8048_v52  ;;  %v9528_v22 = vld [vmem:[#allocation8_spill] sm:$0xff] }
  0xd1   : > { %v6006_v21 = vrot.slane %v7726_v53, 9  ;;  %v3175_v35 = vrot.slane %v7729_v25, 5  ;;  %v6007_v41 = vrot.slane %v7747_v3, 9  ;;  %v3203_v4 = vrot.slane %v9528_v22, 5 }
  0xd2   : > { %v3206_v12 = vrot.slane %v9529_v8, 5  ;;  %v6867_v15 = vmov 0.0   ;;  %vm5424_vm9 = vcmask 60416   ;;  %vm5526_vm10 = vcmask 57344  }
  0xd3   : > { %6638 = vmatmul.mubr.msk.bf16.vlgmr.msra.gmra.mrb[80].mxu0 %vm412_vm1, %v6098_v5  ;;  %6608 = vmatmul.mubr.msk.bf16.gmra.mrb[84].mxu1 %vm412_vm1, %v6019_v51  ;;  %v3168_v5 = vrot.slane %v7707_v54, 5  ;;  %v8070_v51 = vld [vmem:[%s6948_s6 + $0x64] sm:$0xf]  ;;  %v3165_v54 = vsel %vm7175_vm7, %v3163_v30, %v3164_v20  ;;  %v3176_v53 = vsel %vm7175_vm7, %v6006_v21, %v3175_v35  ;;  %v3177_v25 = vrot.slane %v3175_v35, 4  ;;  %v9523_v21 = vld [vmem:[#allocation6_spill] sm:$0xff]  ;;  %234 = vst.msk [vmem:[#allocation2 + $0x90] sm:$0xff] %vm215_vm8, %v6867_v15 }
  0xd4   : > { %6704 = vmatpush3.bf16.msra.mxu0 %v5037_v37  ;;  %6641 = vmatprep.mubr.msk.bf16.mxu0 %vm412_vm1, %v6099_v61  ;;  %v6021_v58 = vcombine.low %v3162_v46, %v3165_v54  ;;  %v6104_v30 = vcombine.low %v8079_v50, %v8085_v29  ;;  %v3192_v35 = vrot.slane %v7807_v39, 5  ;;  %v8141_v54 = vld [vmem:[%s6948_s6 + $0x90] sm:$0xf]  ;;  %216 = vst.msk [vmem:[#allocation2] sm:$0xff] %vm215_vm8, %v6867_v15  ;;  %217 = vst.msk [vmem:[#allocation2 + $0x8] sm:$0xff] %vm215_vm8, %v6867_v15 }
  0xd5   : > { %6611 = vmatprep.mubr.msk.bf16.mxu1 %vm412_vm1, %v6020_v11  ;;  %v3169_v61 = vsel %vm7175_vm7, %v6005_v18, %v3168_v5  ;;  %v3170_v10 = vrot.slane %v3168_v5, 4  ;;  %v3178_v11 = vrot.slane %v7763_v49, 5  ;;  %v6103_v18 = vcombine.low %v8061_v43, %v8070_v51  ;;  %v8097_v49 = vld [vmem:[%s6948_s6 + $0x78] sm:$0xf]  ;;  %v8105_v5 = vld [vmem:[%s6948_s6 + $0x7c] sm:$0xf] }
  0xd6   : > { %9518 = vst [vmem:[#allocation17_spill] sm:$0xff] %v8097_v49  ;;  %9519 = vst [vmem:[#allocation18_spill] sm:$0xff] %v8105_v5  ;;  %v9525_v37 = vld [vmem:[#allocation9_spill] sm:$0xff] }
  0xd7   : > { %v3172_v20 = vsel %vm7175_vm7, %v3170_v10, %v3171_v9  ;;  %v3182_v9 = vrot.slane %v7752_v38, 5  ;;  %v3185_v10 = vrot.slane %v7786_v40, 5  ;;  %218 = vst.msk [vmem:[#allocation2 + $0x10] sm:$0xff] %vm215_vm8, %v6867_v15  ;;  %219 = vst.msk [vmem:[#allocation2 + $0x18] sm:$0xff] %vm215_vm8, %v6867_v15 }
  0xd8   : > { %v6022_v46 = vcombine.low %v3169_v61, %v3172_v20  ;;  %v3179_v61 = vsel %vm7175_vm7, %v3177_v25, %v3178_v11  ;;  %v8119_v11 = vld [vmem:[%s6948_s6 + $0x84] sm:$0xf]  ;;  %v3189_v25 = vrot.slane %v7772_v45, 5  ;;  %220 = vst.msk [vmem:[#allocation2 + $0x20] sm:$0xff] %vm215_vm8, %v6867_v15  ;;  %221 = vst.msk [vmem:[#allocation2 + $0x28] sm:$0xff] %vm215_vm8, %v6867_v15 }
  0xd9   : > { %v6023_v38 = vcombine.low %v3176_v53, %v3179_v61  ;;  %v3183_v40 = vsel %vm7175_vm7, %v6007_v41, %v3182_v9  ;;  %v3184_v20 = vrot.slane %v3182_v9, 4  ;;  %9520 = vst [vmem:[#allocation19_spill] sm:$0xff] %v8119_v11  ;;  %v8128_v53 = vld [vmem:[%s6948_s6 + $0x88] sm:$0xf]  ;;  %v9527_v41 = vld [vmem:[#allocation7_spill] sm:$0xff]  ;;  %222 = vst.msk [vmem:[#allocation2 + $0x30] sm:$0xff] %vm215_vm8, %v6867_v15 }
  0xda   : > { %9521 = vst [vmem:[#allocation20_spill] sm:$0xff] %v8128_v53  ;;  %v3191_v3 = vrot.slane %v3189_v25, 4  ;;  %223 = vst.msk [vmem:[#allocation2 + $0x38] sm:$0xff] %vm215_vm8, %v6867_v15 }
  0xdb   : > { %6642 = vmatmul.mubr.msk.bf16.gmra.mrb[84].mxu0 %vm412_vm1, %v6100_v47  ;;  %6612 = vmatmul.mubr.msk.bf16.gmra.mrb[88].mxu1 %vm412_vm1, %v6021_v58  ;;  %v6008_v47 = vrot.slane %v7769_v14, 9  ;;  %v6105_v58 = vcombine.low %v8097_v49, %v8105_v5  ;;  %v3186_v14 = vsel %vm7175_vm7, %v3184_v20, %v3185_v10  ;;  %v3199_v10 = vrot.slane %v9525_v37, 5  ;;  %v9532_v37 = vld [vmem:[#allocation13_spill] sm:$0xff]  ;;  %224 = vst.msk [vmem:[#allocation2 + $0x40] sm:$0xff] %vm215_vm8, %v6867_v15 }
  0xdc   : > { %6645 = vmatprep.mubr.msk.bf16.mxu0 %vm412_vm1, %v6101_v56  ;;  %6615 = vmatprep.mubr.msk.bf16.mxu1 %vm412_vm1, %v6022_v46  ;;  %v9522_v46 = vld [vmem:[#allocation5_spill] sm:$0xff]  ;;  %v6024_v61 = vcombine.low %v3183_v40, %v3186_v14  ;;  %v3196_v56 = vrot.slane %v9523_v21, 5  ;;  %v8161_v14 = vld [vmem:[%s6948_s6 + $0x9c] sm:$0xf]  ;;  %v3213_v31 = vrot.slane %v9532_v37, 5  ;;  %225 = vst.msk [vmem:[#allocation2 + $0x48] sm:$0xff] %vm215_vm8, %v6867_v15 }
  0xdd   : > { %v6009_v45 = vrot.slane %v9522_v46, 9  ;;  %v8137_v39 = vsel %vm7175_vm7, %v6008_v47, %v3189_v25  ;;  %9524 = vst [vmem:[#allocation5_spill] sm:$0xff] %v8141_v54  ;;  %v8149_v40 = vld [vmem:[%s6948_s6 + $0x94] sm:$0xf]  ;;  %v8153_v47 = vsel %vm7175_vm7, %v3191_v3, %v3192_v35  ;;  %v6010_v46 = vrot.slane %v9527_v41, 9  ;;  %v9531_v41 = vld [vmem:[#allocation4_spill] sm:$0xff] }
  0xde   : > { %9526 = vst [vmem:[#allocation6_spill] sm:$0xff] %v8149_v40  ;;  %v3198_v25 = vrot.slane %v3196_v56, 4  ;;  %v6025_v9 = vcombine.low %v8137_v39, %v8153_v47  ;;  %v8169_v3 = vld [vmem:[%s6948_s6 + $0xa0] sm:$0xf]  ;;  %226 = vst.msk [vmem:[#allocation2 + $0x50] sm:$0xff] %vm215_vm8, %v6867_v15  ;;  %v9537_v47 = vld [vmem:[#allocation16_spill] sm:$0xff] }
  0xdf   : > { %v8157_v21 = vsel %vm7175_vm7, %v6009_v45, %v3196_v56  ;;  %v3205_v45 = vrot.slane %v3203_v4, 4  ;;  %227 = vst.msk [vmem:[#allocation2 + $0x58] sm:$0xff] %vm215_vm8, %v6867_v15  ;;  %228 = vst.msk [vmem:[#allocation2 + $0x60] sm:$0xff] %vm215_vm8, %v6867_v15 }
  0xe0   : > { %v8177_v35 = vsel %vm7175_vm7, %v3198_v25, %v3199_v10  ;;  %v9530_v25 = vld [vmem:[#allocation3_spill] sm:$0xff]  ;;  %v8209_v10 = vld [vmem:[%s6948_s6 + $0xac] sm:$0xf]  ;;  %229 = vst.msk [vmem:[#allocation2 + $0x68] sm:$0xff] %vm215_vm8, %v6867_v15  ;;  %230 = vst.msk [vmem:[#allocation2 + $0x70] sm:$0xff] %vm215_vm8, %v6867_v15 }
  0xe1   : > { %v6026_v8 = vcombine.low %v8157_v21, %v8177_v35  ;;  %v6011_v22 = vrot.slane %v9530_v25, 9  ;;  %v8224_v25 = vld [vmem:[%s6948_s6 + $0xb8] sm:$0xf]  ;;  %231 = vst.msk [vmem:[#allocation2 + $0x78] sm:$0xff] %vm215_vm8, %v6867_v15  ;;  %232 = vst.msk [vmem:[#allocation2 + $0x80] sm:$0xff] %vm215_vm8, %v6867_v15 }
  0xe2   : > { %233 = vst.msk [vmem:[#allocation2 + $0x88] sm:$0xff] %vm215_vm8, %v6867_v15  ;;  %235 = vst.msk [vmem:[#allocation2 + $0x98] sm:$0xff] %vm215_vm8, %v6867_v15 }
  0xe3   : > { %6646 = vmatmul.mubr.msk.bf16.gmra.mrb[88].mxu0 %vm412_vm1, %v6102_v17  ;;  %6616 = vmatmul.mubr.msk.bf16.gmra.mrb[92].mxu1 %vm412_vm1, %v6023_v38  ;;  %v8189_v17 = vsel %vm7175_vm7, %v6010_v46, %v3203_v4  ;;  %v3210_v38 = vrot.slane %v9531_v41, 5  ;;  %v8203_v4 = vsel %vm7175_vm7, %v3205_v45, %v3206_v12  ;;  %v8219_v12 = vld [vmem:[%s6948_s6 + $0xb4] sm:$0xf]  ;;  %v9534_v45 = vld [vmem:[#allocation12_spill] sm:$0xff]  ;;  %236 = vst.msk [vmem:[#allocation2 + $0xa0] sm:$0xff] %vm215_vm8, %v6867_v15  ;;  %237 = vst.msk [vmem:[#allocation2 + $0xa8] sm:$0xff] %vm215_vm8, %v6867_v15 }
  0xe4   : > { %6649 = vmatprep.mubr.msk.bf16.mxu0 %vm412_vm1, %v6103_v18  ;;  %6619 = vmatprep.mubr.msk.bf16.mxu1 %vm412_vm1, %v6024_v61  ;;  %v9533_v18 = vld [vmem:[#allocation11_spill] sm:$0xff]  ;;  %v3217_v46 = vrot.slane %v9534_v45, 5  ;;  %v3220_v61 = vrot.slane %v9535_v0, 5  ;;  %238 = vst.msk [vmem:[#allocation2 + $0xb0] sm:$0xff] %vm215_vm8, %v6867_v15  ;;  %239 = vst.msk [vmem:[#allocation2 + $0xb8] sm:$0xff] %vm215_vm8, %v6867_v15  ;;  %v3224_v0 = vrot.slane %v7884_v13, 5 }
  0xe5   : > { %v8215_v41 = vsel %vm7175_vm7, %v6011_v22, %v3210_v38  ;;  %v3212_v59 = vrot.slane %v3210_v38, 4  ;;  %v6012_v63 = vrot.slane %v9533_v18, 9  ;;  %240 = vst.msk [vmem:[#allocation2 + $0xc0] sm:$0xff] %vm215_vm8, %v6867_v15  ;;  %241 = vst.msk [vmem:[#allocation2 + $0xc8] sm:$0xff] %vm215_vm8, %v6867_v15  ;;  %v8289_v22 = vld [vmem:[%s6948_s6 + $0xcc] sm:$0xf] }
  0xe6   : > { %242 = vst.msk [vmem:[#allocation2 + $0xd0] sm:$0xff] %vm215_vm8, %v6867_v15  ;;  %243 = vst.msk [vmem:[#allocation2 + $0xd8] sm:$0xff] %vm215_vm8, %v6867_v15  ;;  %v3219_v18 = vrot.slane %v3217_v46, 4  ;;  %v8307_v45 = vld [vmem:[%s6948_s6 + $0xd0] sm:$0xf]  ;;  %v3226_v39 = vrot.slane %v3224_v0, 4 }
  0xe7   : > { %v8228_v16 = vsel %vm7175_vm7, %v3212_v59, %v3213_v31  ;;  %244 = vst.msk [vmem:[#allocation2 + $0xe0] sm:$0xff] %vm215_vm8, %v6867_v15  ;;  %245 = vst.msk [vmem:[#allocation2 + $0xe8] sm:$0xff] %vm215_vm8, %v6867_v15  ;;  %v8270_v38 = vsel %vm7175_vm7, %v6012_v63, %v3217_v46  ;;  %v9536_v31 = vld [vmem:[#allocation14_spill] sm:$0xff]  ;;  %v3227_v63 = vrot.slane %v7919_v19, 5 }
  0xe8   : > { %246 = vst.msk [vmem:[#allocation2 + $0xf0] sm:$0xff] %vm215_vm8, %v6867_v15  ;;  %247 = vst.msk [vmem:[#allocation2 + $0xf8] sm:$0xff] %vm215_vm8, %v6867_v15  ;;  %v8277_v15 = vld [vmem:[%s6948_s6 + $0xc4] sm:$0xf]  ;;  %v6013_v59 = vrot.slane %v9536_v31, 9  ;;  %v8301_v13 = vsel %vm7175_vm7, %v3219_v18, %v3220_v61  ;;  %v6014_v61 = vrot.slane %v9537_v47, 9 }
  0xe9   : > { %v3231_v18 = vrot.slane %v7906_v33, 5  ;;  %v3234_v31 = vrot.slane %v7925_v26, 5  ;;  %v317_v47 = vld [vmem:[#allocation2 + $0x90] sm:$0xff]  ;;  %v315_v26 = vld [vmem:[#allocation2 + $0x80] sm:$0xff]  ;;  %v318_v46 = vld [vmem:[#allocation2 + $0x98] sm:$0xff] }
  0xea   : > { %v316_v56 = vld [vmem:[#allocation2 + $0x88] sm:$0xff] }
  0xeb   : > { %6650 = vmatmul.mubr.msk.bf16.gmra.mrb[92].mxu0 %vm412_vm1, %v6104_v30  ;;  %6620 = vmatmul.mubr.msk.bf16.gmra.mrb[96].mxu1 %vm412_vm1, %v6025_v9  ;;  %v8317_v9 = vsel %vm7175_vm7, %v6013_v59, %v3224_v0  ;;  %v6451_v35 = vpop.f32.mrb[0].mxu1 }
  0xec   : > { %6653 = vmatprep.mubr.msk.bf16.mxu0 %vm412_vm1, %v6105_v58  ;;  %6623 = vmatprep.mubr.msk.bf16.mxu1 %vm412_vm1, %v6026_v8  ;;  %v8327_v8 = vsel %vm7175_vm7, %v3226_v39, %v3227_v63  ;;  %v563_v19 = vpop.f32.mrb[1].mxu1  ;;  %v8337_v63 = vsel %vm7175_vm7, %v6014_v61, %v3231_v18  ;;  %v3233_v39 = vrot.slane %v3231_v18, 4  ;;  %v644_v0 = vadd.f32 %v6451_v35, %v317_v47  ;;  %v8354_v35 = vld [vmem:[%s6948_s6 + $0x2c] sm:$0x1] }
  0xed   : > { %v642_v30 = vadd.f32 %v563_v19, %v315_v26  ;;  %v6452_v58 = vpop.f32.mrb[2].mxu1  ;;  %v4039_v61 = vrot.slane %v4037_v2, 4  ;;  %v9538_v18 = vshll.u32 %v7946_v48, 16  ;;  %v9539_v47 = vcombine.low %v8119_v11, %v8128_v53 }
  0xee   : > { %v645_v20 = vadd.f32 %v6452_v58, %v318_v46  ;;  %v566_v21 = vpop.f32.mrb[3].mxu1  ;;  %v8347_v27 = vsel %vm7175_vm7, %v3233_v39, %v3234_v31  ;;  %676 = vst.msk [vmem:[#allocation2 + $0x90] sm:$0xff] %vm215_vm8, %v644_v0  ;;  %v301_v58 = vld [vmem:[#allocation2 + $0x10] sm:$0xff]  ;;  %v4046_v2 = vshll.u32 %v7949_v1, 16  ;;  %v9540_v26 = vshrl.u32 %v7949_v1, 16 }
  0xef   : > { %v4042_v19 = vrot.slane %v9538_v18, 5  ;;  %674 = vst.msk [vmem:[#allocation2 + $0x80] sm:$0xff] %vm215_vm8, %v642_v30  ;;  %v643_v46 = vadd.f32 %v566_v21, %v316_v56  ;;  %v9541_v18 = vcombine.low %v8189_v17, %v8203_v4  ;;  %v9542_v0 = vcombine.low %v8141_v54, %v8149_v40  ;;  %v299_v56 = vld [vmem:[#allocation2] sm:$0xff] }
  0xf0   : > { %v4052_v39 = vrot.slane %v9540_v26, 4  ;;  %677 = vst.msk [vmem:[#allocation2 + $0x98] sm:$0xff] %vm215_vm8, %v645_v20  ;;  %v4056_v21 = vshll.u32 %v8343_v36, 16  ;;  %v9544_v26 = vshll.u32 %v7966_v42, 16  ;;  %v9545_v17 = vcombine.low %v8215_v41, %v8228_v16  ;;  %v6435_v4 = vpop.f32.mrb[0].mxu0 }
  0xf1   : > { %v4043_v30 = vor.u32 %v4042_v19, %v4039_v61  ;;  %675 = vst.msk [vmem:[#allocation2 + $0x88] sm:$0xff] %vm215_vm8, %v643_v46  ;;  %v4048_v20 = vrot.slane %v4046_v2, 5  ;;  %v4070_v61 = vshll.u32 %v7969_v24, 16  ;;  %v9546_v19 = vshrl.u32 %v7969_v24, 16  ;;  %v499_v31 = vpop.f32.mrb[1].mxu0 }
  0xf2   : > { %v4066_v33 = vrot.slane %v9544_v26, 5  ;;  %v628_v59 = vadd.f32 %v6435_v4, %v301_v58  ;;  %v300_v26 = vld [vmem:[#allocation2 + $0x8] sm:$0xff]  ;;  %v4058_v54 = vrot.slane %v4056_v21, 5  ;;  %v626_v41 = vadd.f32 %v499_v31, %v299_v56 }
  0xf3   : > { %6654 = vmatmul.mubr.msk.bf16.gmra.mrb[96].mxu0 %vm412_vm1, %v9539_v47  ;;  %6624 = vmatmul.mubr.msk.bf16.gmra.mrb[100].mxu1 %vm412_vm1, %v9541_v18  ;;  %v9543_v47 = vshrl.u32 %v7966_v42, 16  ;;  %v302_v18 = vld [vmem:[#allocation2 + $0x18] sm:$0xff]  ;;  %v4044_v40 = vrot.slane %v4043_v30, 4  ;;  %v4053_v53 = vor.u32 %v4052_v39, %v4048_v20  ;;  %v4072_v46 = vrot.slane %v4070_v61, 5  ;;  %v321_v30 = vld [vmem:[#allocation2 + $0xb0] sm:$0xff]  ;;  %v319_v39 = vld [vmem:[#allocation2 + $0xa0] sm:$0xff] }
  0xf4   : > { %6657 = vmatprep.mubr.msk.bf16.mxu0 %vm412_vm1, %v9542_v0  ;;  %6627 = vmatprep.mubr.msk.bf16.mxu1 %vm412_vm1, %v9545_v17  ;;  %v4076_v0 = vrot.slane %v9546_v19, 4  ;;  %v6436_v17 = vpop.f32.mrb[2].mxu0  ;;  %660 = vst.msk [vmem:[#allocation2 + $0x10] sm:$0xff] %vm215_vm8, %v628_v59  ;;  %v6162_v58 = vrot.slane %v7946_v48, 9  ;;  %658 = vst.msk [vmem:[#allocation2] sm:$0xff] %vm215_vm8, %v626_v41  ;;  %v4796_v31 = vrot.slane %v7949_v1, 5 }
  0xf5   : > { %v4063_v37 = vrot.slane %v9543_v47, 4  ;;  %v4080_v47 = vshll.u32 %v8354_v35, 16  ;;  %v629_v2 = vadd.f32 %v6436_v17, %v302_v18  ;;  %v502_v5 = vpop.f32.mrb[3].mxu0  ;;  %v4049_v19 = vsel %vm7152_vm6, %v4044_v40, %v4048_v20  ;;  %v6455_v1 = vpop.f32.mrb[4].mxu1  ;;  %v320_v41 = vld [vmem:[#allocation2 + $0xa8] sm:$0xff]  ;;  %v305_v17 = vld [vmem:[#allocation2 + $0x30] sm:$0xff] }
  0xf6   : > { %v627_v21 = vadd.f32 %v502_v5, %v300_v26  ;;  %v4799_v56 = vrot.slane %v8343_v36, 5  ;;  %v9547_v40 = vshrl.u32 %v7987_v28, 16  ;;  %v9548_v48 = vshll.u32 %v7987_v28, 16 }
  0xf7   : > { %v4067_v16 = vor.u32 %v4066_v33, %v4063_v37  ;;  %v4082_v11 = vrot.slane %v4080_v47, 5  ;;  %v4054_v37 = vrot.slane %v4053_v53, 4  ;;  %v4077_v33 = vor.u32 %v4076_v0, %v4072_v46  ;;  %661 = vst.msk [vmem:[#allocation2 + $0x18] sm:$0xff] %vm215_vm8, %v629_v2  ;;  %v322_v53 = vld [vmem:[#allocation2 + $0xb8] sm:$0xff] }
  0xf8   : > { %v4087_v4 = vrot.slane %v9547_v40, 4  ;;  %v4090_v18 = vrot.slane %v9548_v48, 5  ;;  %v9549_v5 = vcombine.low %v8161_v14, %v8169_v3  ;;  %659 = vst.msk [vmem:[#allocation2 + $0x8] sm:$0xff] %vm215_vm8, %v627_v21  ;;  %v8413_v20 = vsel %vm7175_vm7, %v6162_v58, %v4796_v31 }
  0xf9   : > { %v4068_v49 = vrot.slane %v4067_v16, 4  ;;  %v4078_v36 = vrot.slane %v4077_v33, 4  ;;  %v4798_v61 = vrot.slane %v4796_v31, 4  ;;  %v9550_v0 = vcombine.low %v8270_v38, %v8301_v13  ;;  %v579_v16 = vpop.f32.mrb[5].mxu1 }
  0xfa   : > { %v9551_v47 = vcombine.low %v8199_v32, %v8209_v10  ;;  %v648_v26 = vadd.f32 %v6455_v1, %v321_v30  ;;  %v4091_v2 = vor.u32 %v4090_v18, %v4087_v4  ;;  %v4094_v58 = vshll.u32 %v7990_v7, 16  ;;  %v6456_v21 = vpop.f32.mrb[6].mxu1  ;;  %v304_v1 = vld [vmem:[#allocation2 + $0x28] sm:$0xff] }
  0xfb   : > { %v4073_v59 = vsel %vm7152_vm6, %v4068_v49, %v4072_v46  ;;  %6658 = vmatmul.mubr.msk.bf16.gmra.mrb[100].mxu0 %vm412_vm1, %v9549_v5  ;;  %v4059_v49 = vsel %vm7152_vm6, %v4054_v37, %v4058_v54  ;;  %6628 = vmatmul.mubr.msk.bf16.gmra.mrb[104].mxu1 %vm412_vm1, %v9550_v0  ;;  %v8426_v46 = vld [vmem:[%s6948_s6 + $0x38] sm:$0x1]  ;;  %v9552_v38 = vcombine.low %v8317_v9, %v8327_v8  ;;  %v303_v37 = vld [vmem:[#allocation2 + $0x20] sm:$0xff]  ;;  %v9553_v33 = vshrl.u32 %v7990_v7, 16  ;;  %v582_v4 = vpop.f32.mrb[7].mxu1  ;;  %v6439_v8 = vpop.f32.mrb[4].mxu0 }
  0xfc   : > { %6661 = vmatprep.mubr.msk.bf16.mxu0 %vm412_vm1, %v9551_v47  ;;  %v8423_v54 = vcombine.low %v4049_v19, %v4059_v49  ;;  %v646_v13 = vadd.f32 %v579_v16, %v319_v39  ;;  %v4083_v30 = vsel %vm7152_vm6, %v4078_v36, %v4082_v11  ;;  %v8437_v19 = vsel %vm7175_vm7, %v4798_v61, %v4799_v56  ;;  %v306_v39 = vld [vmem:[#allocation2 + $0x38] sm:$0xff]  ;;  %v515_v5 = vpop.f32.mrb[5].mxu0 }
  0xfd   : > { %6631 = vmatprep.mubr.msk.bf16.mxu1 %vm412_vm1, %v9552_v38  ;;  %v4100_v31 = vrot.slane %v9553_v33, 4  ;;  %680 = vst.msk [vmem:[#allocation2 + $0xb0] sm:$0xff] %vm215_vm8, %v648_v26  ;;  %v649_v40 = vadd.f32 %v6456_v21, %v322_v53  ;;  %v8442_v9 = vcombine.low %v4073_v59, %v4083_v30  ;;  %v6179_v48 = vcombine.low %v8413_v20, %v8437_v19  ;;  %v6440_v53 = vpop.f32.mrb[6].mxu0  ;;  %v325_v26 = vld [vmem:[#allocation2 + $0xd0] sm:$0xff]  ;;  %v8457_v38 = vld [vmem:[%s6948_s6 + $0x44] sm:$0x1] }
  0xfe   : > { %v4092_v11 = vrot.slane %v4091_v2, 4  ;;  %678 = vst.msk [vmem:[#allocation2 + $0xa0] sm:$0xff] %vm215_vm8, %v646_v13  ;;  %v647_v18 = vadd.f32 %v582_v4, %v320_v41  ;;  %v632_v56 = vadd.f32 %v6439_v8, %v305_v17  ;;  %v4096_v49 = vrot.slane %v4094_v58, 5  ;;  %v518_v41 = vpop.f32.mrb[7].mxu0  ;;  %v6459_v33 = vpop.f32.mrb[8].mxu1 }
  0xff   : > { %v4104_v36 = vshll.u32 %v8426_v46, 16  ;;  %681 = vst.msk [vmem:[#allocation2 + $0xb8] sm:$0xff] %vm215_vm8, %v649_v40  ;;  %v630_v59 = vadd.f32 %v515_v5, %v303_v37  ;;  %v6163_v61 = vrot.slane %v7966_v42, 9  ;;  %v4803_v0 = vrot.slane %v7969_v24, 5  ;;  %v323_v42 = vld [vmem:[#allocation2 + $0xc0] sm:$0xff] }
 0x100   : > { %v4806_v47 = vrot.slane %v8354_v35, 5  ;;  %679 = vst.msk [vmem:[#allocation2 + $0xa8] sm:$0xff] %vm215_vm8, %v647_v18  ;;  %664 = vst.msk [vmem:[#allocation2 + $0x30] sm:$0xff] %vm215_vm8, %v632_v56  ;;  %v633_v16 = vadd.f32 %v6440_v53, %v306_v39  ;;  %v4097_v17 = vsel %vm7152_vm6, %v4092_v11, %v4096_v49  ;;  %v4101_v2 = vor.u32 %v4100_v31, %v4096_v49  ;;  %v326_v31 = vld [vmem:[#allocation2 + $0xd8] sm:$0xff]  ;;  %v595_v49 = vpop.f32.mrb[9].mxu1 }
 0x101   : > { %v4106_v58 = vrot.slane %v4104_v36, 5  ;;  %662 = vst.msk [vmem:[#allocation2 + $0x20] sm:$0xff] %vm215_vm8, %v630_v59  ;;  %v631_v24 = vadd.f32 %v518_v41, %v304_v1  ;;  %v8462_v35 = vsel %vm7175_vm7, %v6163_v61, %v4803_v0  ;;  %v4805_v13 = vrot.slane %v4803_v0, 4  ;;  %v324_v36 = vld [vmem:[#allocation2 + $0xc8] sm:$0xff]  ;;  %v309_v61 = vld [vmem:[#allocation2 + $0x50] sm:$0xff]  ;;  %v6460_v0 = vpop.f32.mrb[10].mxu1 }
 0x102   : > { %v9554_v21 = vshrl.u32 %v7998_v57, 16  ;;  %v9555_v37 = vcombine.low %v8219_v12, %v8224_v25  ;;  %665 = vst.msk [vmem:[#allocation2 + $0x38] sm:$0xff] %vm215_vm8, %v633_v16  ;;  %v4102_v40 = vrot.slane %v4101_v2, 4  ;;  %v9556_v4 = vshll.u32 %v7998_v57, 16  ;;  %v307_v2 = vld [vmem:[#allocation2 + $0x40] sm:$0xff] }
 0x103   : > { %v4118_v39 = vshll.u32 %v8008_v62, 16  ;;  %v9557_v11 = vshrl.u32 %v8008_v62, 16  ;;  %v9558_v56 = vcombine.low %v8337_v63, %v8347_v27  ;;  %v9559_v5 = vcombine.low %v8274_v60, %v8277_v15  ;;  %663 = vst.msk [vmem:[#allocation2 + $0x28] sm:$0xff] %vm215_vm8, %v631_v24  ;;  %v598_v24 = vpop.f32.mrb[11].mxu1 }
 0x104   : > { %v4111_v30 = vrot.slane %v9554_v21, 4  ;;  %6662 = vmatmul.mubr.msk.bf16.gmra.mrb[104].mxu0 %vm412_vm1, %v9555_v37  ;;  %v4114_v8 = vrot.slane %v9556_v4, 5  ;;  %v652_v1 = vadd.f32 %v6459_v33, %v325_v26  ;;  %v8487_v59 = vsel %vm7175_vm7, %v4805_v13, %v4806_v47  ;;  %v6443_v37 = vpop.f32.mrb[8].mxu0  ;;  %v308_v4 = vld [vmem:[#allocation2 + $0x48] sm:$0xff] }
 0x105   : > { %v4124_v18 = vrot.slane %v9557_v11, 4  ;;  %6632 = vmatmul.mubr.msk.bf16.gmra.mrb[108].mxu1 %vm412_vm1, %v9558_v56  ;;  %6665 = vmatprep.mubr.msk.bf16.mxu0 %vm412_vm1, %v9559_v5  ;;  %v4128_v53 = vshll.u32 %v8457_v38, 16  ;;  %v6164_v27 = vrot.slane %v7987_v28, 9  ;;  %v650_v63 = vadd.f32 %v595_v49, %v323_v42 }
 0x106   : > { %6671 = vmatprep.mubr.msk.bf16.mxu1 %vm412_vm1, %v8423_v54  ;;  %v4107_v26 = vsel %vm7152_vm6, %v4102_v40, %v4106_v58  ;;  %v6180_v16 = vcombine.low %v8462_v35, %v8487_v59  ;;  %v4115_v41 = vor.u32 %v4114_v8, %v4111_v30  ;;  %684 = vst.msk [vmem:[#allocation2 + $0xd0] sm:$0xff] %vm215_vm8, %v652_v1  ;;  %v4120_v21 = vrot.slane %v4118_v39, 5  ;;  %v310_v54 = vld [vmem:[#allocation2 + $0x58] sm:$0xff]  ;;  %v531_v40 = vpop.f32.mrb[9].mxu0  ;;  %v8503_v39 = vld [vmem:[%s6948_s6 + $0x50] sm:$0x1] }
 0x107   : > { %v653_v47 = vadd.f32 %v6460_v0, %v326_v31  ;;  %v6132_v13 = vcombine.low %v4097_v17, %v4107_v26  ;;  %v4130_v28 = vrot.slane %v4128_v53, 5  ;;  %682 = vst.msk [vmem:[#allocation2 + $0xc0] sm:$0xff] %vm215_vm8, %v650_v63  ;;  %v651_v42 = vadd.f32 %v598_v24, %v324_v36  ;;  %v6444_v11 = vpop.f32.mrb[10].mxu0  ;;  %v1077_v59 = vld [vmem:[#allocation2] sm:$0xff] }
 0x108   : > { %v4116_v33 = vrot.slane %v4115_v41, 4  ;;  %v636_v58 = vadd.f32 %v6443_v37, %v309_v61  ;;  %v4810_v30 = vrot.slane %v7990_v7, 5  ;;  %v4125_v8 = vor.u32 %v4124_v18, %v4120_v21  ;;  %v329_v7 = vld [vmem:[#allocation2 + $0xf0] sm:$0xff]  ;;  %v534_v36 = vpop.f32.mrb[11].mxu0  ;;  %v327_v61 = vld [vmem:[#allocation2 + $0xe0] sm:$0xff] }
 0x109   : > { %685 = vst.msk [vmem:[#allocation2 + $0xd8] sm:$0xff] %vm215_vm8, %v653_v47  ;;  %v634_v31 = vadd.f32 %v531_v40, %v307_v2  ;;  %v4813_v17 = vrot.slane %v8426_v46, 5  ;;  %v9560_v56 = vshrl.u32 %v8020_v44, 16  ;;  %683 = vst.msk [vmem:[#allocation2 + $0xc8] sm:$0xff] %vm215_vm8, %v651_v42  ;;  %v637_v49 = vadd.f32 %v6444_v11, %v310_v54  ;;  %v6463_v47 = vpop.f32.mrb[12].mxu1 }
 0x10a   : > { %v4121_v1 = vsel %vm7152_vm6, %v4116_v33, %v4120_v21  ;;  %668 = vst.msk [vmem:[#allocation2 + $0x50] sm:$0xff] %vm215_vm8, %v636_v58  ;;  %v8513_v18 = vsel %vm7175_vm7, %v6164_v27, %v4810_v30  ;;  %v4812_v46 = vrot.slane %v4810_v30, 4  ;;  %v4126_v53 = vrot.slane %v4125_v8, 4  ;;  %v330_v27 = vld [vmem:[#allocation2 + $0xf8] sm:$0xff]  ;;  %v611_v40 = vpop.f32.mrb[13].mxu1 }
 0x10b   : > { %v4135_v5 = vrot.slane %v9560_v56, 4  ;;  %666 = vst.msk [vmem:[#allocation2 + $0x40] sm:$0xff] %vm215_vm8, %v634_v31  ;;  %v635_v63 = vadd.f32 %v534_v36, %v308_v4  ;;  %v9561_v0 = vshll.u32 %v8020_v44, 16  ;;  %v4142_v41 = vshll.u32 %v8028_v6, 16  ;;  %669 = vst.msk [vmem:[#allocation2 + $0x58] sm:$0xff] %vm215_vm8, %v637_v49  ;;  %v328_v4 = vld [vmem:[#allocation2 + $0xe8] sm:$0xff] }
 0x10c   : > { %v9562_v2 = vcombine.low %v8289_v22, %v8307_v45  ;;  %v4814_v24 = vsel %vm7175_vm7, %v4812_v46, %v4813_v17  ;;  %v9563_v21 = vshrl.u32 %v8028_v6, 16  ;;  %v4152_v54 = vshll.u32 %v8503_v39, 16  ;;  %v6464_v31 = vpop.f32.mrb[14].mxu1  ;;  %v6447_v49 = vpop.f32.mrb[12].mxu0 }
 0x10d   : > { %v4138_v26 = vrot.slane %v9561_v0, 5  ;;  %v6165_v42 = vrot.slane %v7998_v57, 9  ;;  %6672 = vmatmul.mubr.msk.bf16.vlgmr.msra.gmra.mrb[112].mxu1 %vm412_vm1, %v8442_v9  ;;  %v4131_v33 = vsel %vm7152_vm6, %v4126_v53, %v4130_v28  ;;  %v656_v58 = vadd.f32 %v6463_v47, %v329_v7  ;;  %667 = vst.msk [vmem:[#allocation2 + $0x48] sm:$0xff] %vm215_vm8, %v635_v63  ;;  %v614_v28 = vpop.f32.mrb[15].mxu1  ;;  %v8545_v7 = vld [vmem:[%s6948_s6 + $0x5c] sm:$0x1] }
 0x10e   : > { %6666 = vmatmul.mubr.msk.bf16.gmra.mrb[108].mxu0 %vm412_vm1, %v9562_v2  ;;  %v4148_v37 = vrot.slane %v9563_v21, 4  ;;  %v6181_v30 = vcombine.low %v8513_v18, %v4814_v24  ;;  %v4144_v57 = vrot.slane %v4142_v41, 5  ;;  %6675 = vmatprep.mubr.msk.bf16.mxu1 %vm412_vm1, %v6132_v13  ;;  %v6133_v9 = vcombine.low %v4121_v1, %v4131_v33  ;;  %v313_v53 = vld [vmem:[#allocation2 + $0x70] sm:$0xff]  ;;  %v311_v21 = vld [vmem:[#allocation2 + $0x60] sm:$0xff] }
 0x10f   : > { %6705 = vmatprep.mubr.msk.bf16.mxu0 %vm412_vm1, %v6179_v48  ;;  %v654_v8 = vadd.f32 %v611_v40, %v327_v61  ;;  %v4139_v20 = vor.u32 %v4138_v26, %v4135_v5  ;;  %v4154_v19 = vrot.slane %v4152_v54, 5  ;;  %688 = vst.msk [vmem:[#allocation2 + $0xf0] sm:$0xff] %vm215_vm8, %v656_v58  ;;  %v657_v48 = vadd.f32 %v6464_v31, %v330_v27  ;;  %v547_v61 = vpop.f32.mrb[13].mxu0  ;;  %v314_v40 = vld [vmem:[#allocation2 + $0x78] sm:$0xff] }
 0x110   : > { %v4149_v11 = vor.u32 %v4148_v37, %v4144_v57  ;;  %v4817_v17 = vrot.slane %v8008_v62, 5  ;;  %v4820_v56 = vrot.slane %v8457_v38, 5  ;;  %v655_v13 = vadd.f32 %v614_v28, %v328_v4  ;;  %v6448_v26 = vpop.f32.mrb[14].mxu0  ;;  %v312_v4 = vld [vmem:[#allocation2 + $0x68] sm:$0xff] }
 0x111   : > { %686 = vst.msk [vmem:[#allocation2 + $0xe0] sm:$0xff] %vm215_vm8, %v654_v8  ;;  %v4140_v1 = vrot.slane %v4139_v20, 4  ;;  %v9564_v36 = vshrl.u32 %v8040_v55, 16  ;;  %v9565_v18 = vshll.u32 %v8040_v55, 16  ;;  %689 = vst.msk [vmem:[#allocation2 + $0xf8] sm:$0xff] %vm215_vm8, %v657_v48  ;;  %v4166_v0 = vshll.u32 %v8048_v52, 16 }
 0x112   : > { %v4150_v62 = vrot.slane %v4149_v11, 4  ;;  %v8555_v38 = vsel %vm7175_vm7, %v6165_v42, %v4817_v17  ;;  %v4819_v63 = vrot.slane %v4817_v17, 4  ;;  %687 = vst.msk [vmem:[#allocation2 + $0xe8] sm:$0xff] %vm215_vm8, %v655_v13  ;;  %v9566_v47 = vshrl.u32 %v8048_v52, 16  ;;  %v550_v37 = vpop.f32.mrb[15].mxu0  ;;  %v6469_v48 = vpop.f32.mrb[16].mxu1 }
 0x113   : > { %v4159_v5 = vrot.slane %v9564_v36, 4  ;;  %v4162_v46 = vrot.slane %v9565_v18, 5  ;;  %v4145_v41 = vsel %vm7152_vm6, %v4140_v1, %v4144_v57  ;;  %v4176_v24 = vshll.u32 %v8545_v7, 16  ;;  %v1080_v1 = vld [vmem:[#allocation2 + $0x18] sm:$0xff] }
 0x114   : > { %v4172_v27 = vrot.slane %v9566_v47, 4  ;;  %v4155_v54 = vsel %vm7152_vm6, %v4150_v62, %v4154_v19  ;;  %v8568_v42 = vsel %vm7175_vm7, %v4819_v63, %v4820_v56  ;;  %v4168_v33 = vrot.slane %v4166_v0, 5  ;;  %v1079_v19 = vld [vmem:[#allocation2 + $0x10] sm:$0xff]  ;;  %v6503_v62 = vpop.f32.mrb[16].mxu0 }
 0x115   : > { %v4163_v2 = vor.u32 %v4162_v46, %v4159_v5  ;;  %v640_v58 = vadd.f32 %v6447_v49, %v313_v53  ;;  %v6134_v57 = vcombine.low %v4145_v41, %v4155_v54  ;;  %v6182_v8 = vcombine.low %v8555_v38, %v8568_v42  ;;  %6676 = vmatmul.mubr.msk.bf16.gmra.mrb[116].mxu1 %vm412_vm1, %v6133_v9  ;;  %v1078_v46 = vld [vmem:[#allocation2 + $0x8] sm:$0xff]  ;;  %v1733_v47 = vpop.f32.mrb[17].mxu0 }
 0x116   : > { %6706 = vmatmul.mubr.msk.bf16.vlgmr.msra.gmra.mrb[112].mxu0 %vm412_vm1, %v6180_v16  ;;  %v4178_v20 = vrot.slane %v4176_v24, 5  ;;  %v4173_v28 = vor.u32 %v4172_v27, %v4168_v33  ;;  %v638_v11 = vadd.f32 %v547_v61, %v311_v21  ;;  %v1373_v35 = vadd.f32 %v6469_v48, %v1079_v19  ;;  %v1244_v16 = vpop.f32.mrb[17].mxu1 }
 0x117   : > { %v4164_v31 = vrot.slane %v4163_v2, 4  ;;  %6709 = vmatprep.mubr.msk.bf16.mxu0 %vm412_vm1, %v6181_v30  ;;  %672 = vst.msk [vmem:[#allocation2 + $0x70] sm:$0xff] %vm215_vm8, %v640_v58  ;;  %v6166_v17 = vrot.slane %v8020_v44, 9  ;;  %6679 = vmatprep.mubr.msk.bf16.mxu1 %vm412_vm1, %v6134_v57  ;;  %v641_v49 = vadd.f32 %v6448_v26, %v314_v40  ;;  %v1371_v13 = vadd.f32 %v1244_v16, %v1077_v59  ;;  %v6470_v36 = vpop.f32.mrb[18].mxu1  ;;  %v8584_v30 = vld [vmem:[%s6948_s6 + $0x68] sm:$0x1] }
 0x118   : > { %v639_v9 = vadd.f32 %v550_v37, %v312_v4  ;;  %v4174_v5 = vrot.slane %v4173_v28, 4  ;;  %670 = vst.msk [vmem:[#allocation2 + $0x60] sm:$0xff] %vm215_vm8, %v638_v11  ;;  %1405 = vst.msk [vmem:[#allocation2 + $0x10] sm:$0xff] %vm215_vm8, %v1373_v35  ;;  %v1374_v18 = vadd.f32 %v6470_v36, %v1080_v1  ;;  %v1247_v44 = vpop.f32.mrb[19].mxu1  ;;  %v4824_v53 = vrot.slane %v8028_v6, 5  ;;  %v6504_v37 = vpop.f32.mrb[18].mxu0 }
 0x119   : > { %v4169_v56 = vsel %vm7152_vm6, %v4164_v31, %v4168_v33  ;;  %v4827_v61 = vrot.slane %v8503_v39, 5  ;;  %673 = vst.msk [vmem:[#allocation2 + $0x78] sm:$0xff] %vm215_vm8, %v641_v49  ;;  %1403 = vst.msk [vmem:[#allocation2] sm:$0xff] %vm215_vm8, %v1371_v13  ;;  %v1372_v38 = vadd.f32 %v1247_v44, %v1078_v46  ;;  %v9567_v63 = vshrl.u32 %v8061_v43, 16  ;;  %v1736_v58 = vpop.f32.mrb[19].mxu0  ;;  %v6473_v11 = vpop.f32.mrb[20].mxu1 }
 0x11a   : > { %671 = vst.msk [vmem:[#allocation2 + $0x68] sm:$0xff] %vm215_vm8, %v639_v9  ;;  %v9568_v26 = vshll.u32 %v8061_v43, 16  ;;  %v4190_v2 = vshll.u32 %v8070_v51, 16  ;;  %v4179_v6 = vsel %vm7152_vm6, %v4174_v5, %v4178_v20  ;;  %1406 = vst.msk [vmem:[#allocation2 + $0x18] sm:$0xff] %vm215_vm8, %v1374_v18  ;;  %v4825_v39 = vsel %vm7175_vm7, %v6166_v17, %v4824_v53  ;;  %v8614_v28 = vld [vmem:[%s6948_s6 + $0x74] sm:$0x1] }
 0x11b   : > { %v4183_v0 = vrot.slane %v9567_v63, 4  ;;  %v4826_v27 = vrot.slane %v4824_v53, 4  ;;  %v9569_v24 = vshrl.u32 %v8070_v51, 16  ;;  %v6135_v54 = vcombine.low %v4169_v56, %v4179_v6  ;;  %1404 = vst.msk [vmem:[#allocation2 + $0x8] sm:$0xff] %vm215_vm8, %v1372_v38  ;;  %v1083_v44 = vld [vmem:[#allocation2 + $0x30] sm:$0xff]  ;;  %v8632_v38 = vpop.f32.mrb[20].mxu0 }
 0x11c   : > { %v4186_v41 = vrot.slane %v9568_v26, 5  ;;  %v4192_v42 = vrot.slane %v4190_v2, 5  ;;  %v4200_v33 = vshll.u32 %v8584_v30, 16  ;;  %v6167_v4 = vrot.slane %v8040_v55, 9  ;;  %v8636_v2 = vpop.f32.mrb[21].mxu0 }
 0x11d   : > { %v4196_v21 = vrot.slane %v9569_v24, 4  ;;  %v4828_v40 = vsel %vm7175_vm7, %v4826_v27, %v4827_v61  ;;  %v4831_v57 = vrot.slane %v8048_v52, 5  ;;  %v4834_v51 = vrot.slane %v8545_v7, 5  ;;  %6680 = vmatmul.mubr.msk.bf16.gmra.mrb[120].mxu1 %vm412_vm1, %v6135_v54  ;;  %v1081_v24 = vld [vmem:[#allocation2 + $0x20] sm:$0xff] }
 0x11e   : > { %v4187_v43 = vor.u32 %v4186_v41, %v4183_v0  ;;  %6710 = vmatmul.mubr.msk.bf16.gmra.mrb[116].mxu0 %vm412_vm1, %v6182_v8  ;;  %v6183_v31 = vcombine.low %v4825_v39, %v4828_v40  ;;  %v4202_v48 = vrot.slane %v4200_v33, 5  ;;  %v9570_v55 = vshrl.u32 %v8079_v50, 16  ;;  %v1260_v8 = vpop.f32.mrb[21].mxu1 }
 0x11f   : > { %v4197_v19 = vor.u32 %v4196_v21, %v4192_v42  ;;  %v4832_v35 = vsel %vm7175_vm7, %v6167_v4, %v4831_v57  ;;  %v4833_v59 = vrot.slane %v4831_v57, 4  ;;  %v9571_v7 = vshll.u32 %v8079_v50, 16  ;;  %v1568_v1 = vld [vmem:[#allocation2 + $0x10] sm:$0xff]  ;;  %v6474_v36 = vpop.f32.mrb[22].mxu1  ;;  %v1084_v21 = vld [vmem:[#allocation2 + $0x38] sm:$0xff]  ;;  %v1082_v57 = vld [vmem:[#allocation2 + $0x28] sm:$0xff] }
 0x120   : > { %v4188_v20 = vrot.slane %v4187_v43, 4  ;;  %v4207_v52 = vrot.slane %v9570_v55, 4  ;;  %6713 = vmatprep.mubr.msk.bf16.mxu0 %vm412_vm1, %v6183_v31  ;;  %v4214_v49 = vshll.u32 %v8085_v29, 16  ;;  %v9572_v13 = vshrl.u32 %v8085_v29, 16  ;;  %v1566_v53 = vld [vmem:[#allocation2] sm:$0xff]  ;;  %v1263_v61 = vpop.f32.mrb[23].mxu1 }
 0x121   : > { %v4210_v16 = vrot.slane %v9571_v7, 5  ;;  %v4198_v56 = vrot.slane %v4197_v19, 4  ;;  %v4835_v5 = vsel %vm7175_vm7, %v4833_v59, %v4834_v51  ;;  %v4224_v50 = vshll.u32 %v8614_v28, 16  ;;  %v1569_v41 = vld [vmem:[#allocation2 + $0x18] sm:$0xff]  ;;  %v8639_v43 = vpop.f32.mrb[22].mxu0 }
 0x122   : > { %v4193_v17 = vsel %vm7152_vm6, %v4188_v20, %v4192_v42  ;;  %v4220_v9 = vrot.slane %v9572_v13, 4  ;;  %v1862_v46 = vadd.f32 %v6503_v62, %v1568_v1  ;;  %v6184_v0 = vcombine.low %v4832_v35, %v4835_v5  ;;  %v1567_v54 = vld [vmem:[#allocation2 + $0x8] sm:$0xff]  ;;  %v8643_v51 = vld [vmem:[%s6948_s6 + $0x80] sm:$0x1]  ;;  %v8645_v31 = vpop.f32.mrb[23].mxu0  ;;  %v9576_v13 = vld [vmem:[#allocation18_spill] sm:$0xff] }
 0x123   : > { %v4211_v18 = vor.u32 %v4210_v16, %v4207_v52  ;;  %v4203_v63 = vsel %vm7152_vm6, %v4198_v56, %v4202_v48  ;;  %v4216_v29 = vrot.slane %v4214_v49, 5  ;;  %v1377_v26 = vadd.f32 %v6473_v11, %v1083_v44  ;;  %v6823_v48 = vld [vmem:[%s6948_s6 + $0x60] sm:$0xf]  ;;  %v6824_v35 = vld [vmem:[%s6948_s6 + $0x64] sm:$0xf]  ;;  %v9573_v52 = vld [vmem:[#allocation17_spill] sm:$0xff] }
 0x124   : > { %v6136_v6 = vcombine.low %v4193_v17, %v4203_v63  ;;  %v4226_v27 = vrot.slane %v4224_v50, 5  ;;  %1894 = vst.msk [vmem:[#allocation2 + $0x10] sm:$0xff] %vm215_vm8, %v1862_v46  ;;  %v1860_v62 = vadd.f32 %v1733_v47, %v1566_v53  ;;  %v1375_v33 = vadd.f32 %v1260_v8, %v1081_v24  ;;  %v6477_v16 = vpop.f32.mrb[24].mxu1  ;;  %v8665_v56 = vld [vmem:[%s6948_s6 + $0x7c] sm:$0xf] }
 0x125   : > { %v4212_v39 = vrot.slane %v4211_v18, 4  ;;  %v4221_v42 = vor.u32 %v4220_v9, %v4216_v29  ;;  %1409 = vst.msk [vmem:[#allocation2 + $0x30] sm:$0xff] %vm215_vm8, %v1377_v26  ;;  %v1863_v40 = vadd.f32 %v6504_v37, %v1569_v41  ;;  %v1378_v4 = vadd.f32 %v6474_v36, %v1084_v21  ;;  %v1276_v36 = vpop.f32.mrb[25].mxu1  ;;  %v6826_v46 = vld [vmem:[%s6948_s6 + $0x6c] sm:$0xf]  ;;  %v8676_v41 = vpop.f32.mrb[24].mxu0 }
 0x126   : > { %6683 = vmatprep.mubr.msk.bf16.mxu1 %vm412_vm1, %v6136_v6  ;;  %1892 = vst.msk [vmem:[#allocation2] sm:$0xff] %vm215_vm8, %v1860_v62  ;;  %v1861_v20 = vadd.f32 %v1736_v58, %v1567_v54  ;;  %v1376_v19 = vadd.f32 %v1263_v61, %v1082_v57  ;;  %v6168_v11 = vrot.slane %v6823_v48, 9  ;;  %6714 = vmatmul.mubr.msk.bf16.gmra.mrb[120].mxu0 %vm412_vm1, %v6184_v0  ;;  %1407 = vst.msk [vmem:[#allocation2 + $0x20] sm:$0xff] %vm215_vm8, %v1375_v33  ;;  %v6478_v53 = vpop.f32.mrb[26].mxu1  ;;  %v8683_v24 = vld [vmem:[%s6948_s6 + $0x8c] sm:$0x1] }
 0x127   : > { %v4217_v47 = vsel %vm7152_vm6, %v4212_v39, %v4216_v29  ;;  %v4222_v37 = vrot.slane %v4221_v42, 4  ;;  %1895 = vst.msk [vmem:[#allocation2 + $0x18] sm:$0xff] %vm215_vm8, %v1863_v40  ;;  %1410 = vst.msk [vmem:[#allocation2 + $0x38] sm:$0xff] %vm215_vm8, %v1378_v4  ;;  %v4838_v59 = vrot.slane %v6824_v35, 5  ;;  %v4841_v55 = vrot.slane %v8584_v30, 5  ;;  %v1279_v26 = vpop.f32.mrb[27].mxu1 }
 0x128   : > { %v9574_v58 = vshrl.u32 %v9573_v52, 16  ;;  %1893 = vst.msk [vmem:[#allocation2 + $0x8] sm:$0xff] %vm215_vm8, %v1861_v20  ;;  %1408 = vst.msk [vmem:[#allocation2 + $0x28] sm:$0xff] %vm215_vm8, %v1376_v19  ;;  %v9575_v8 = vshll.u32 %v9573_v52, 16  ;;  %v4238_v49 = vshll.u32 %v8665_v56, 16  ;;  %v9577_v9 = vshrl.u32 %v9576_v13, 16 }
 0x129   : > { %v4248_v30 = vshll.u32 %v8643_v51, 16  ;;  %v4227_v5 = vsel %vm7152_vm6, %v4222_v37, %v4226_v27  ;;  %v4839_v18 = vsel %vm7175_vm7, %v6168_v11, %v4838_v59  ;;  %v4840_v50 = vrot.slane %v4838_v59, 4  ;;  %v6827_v39 = vld [vmem:[%s6948_s6 + $0x70] sm:$0xf]  ;;  %v9578_v21 = vld [vmem:[#allocation19_spill] sm:$0xff]  ;;  %v8687_v33 = vpop.f32.mrb[25].mxu0 }
 0x12a   : > { %v4231_v7 = vrot.slane %v9574_v58, 4  ;;  %v4234_v17 = vrot.slane %v9575_v8, 5  ;;  %v4244_v1 = vrot.slane %v9577_v9, 4  ;;  %v6169_v44 = vrot.slane %v6826_v46, 9  ;;  %v8692_v48 = vpop.f32.mrb[26].mxu0  ;;  %v9581_v59 = vld [vmem:[#allocation20_spill] sm:$0xff] }
 0x12b   : > { %v6137_v61 = vcombine.low %v4217_v47, %v4227_v5  ;;  %v4240_v0 = vrot.slane %v4238_v49, 5  ;;  %v4250_v29 = vrot.slane %v4248_v30, 5  ;;  %v4842_v6 = vsel %vm7175_vm7, %v4840_v50, %v4841_v55  ;;  %v8697_v37 = vld [vmem:[%s6948_s6 + $0x88] sm:$0xf]  ;;  %v8702_v58 = vpop.f32.mrb[27].mxu0  ;;  %v1087_v13 = vld [vmem:[#allocation2 + $0x50] sm:$0xff] }
 0x12c   : > { %v4235_v63 = vor.u32 %v4234_v17, %v4231_v7  ;;  %v4845_v27 = vrot.slane %v6827_v39, 5  ;;  %v4848_v62 = vrot.slane %v8614_v28, 5  ;;  %v9579_v54 = vshrl.u32 %v9578_v21, 16  ;;  %v1572_v19 = vld [vmem:[#allocation2 + $0x30] sm:$0xff]  ;;  %v8713_v39 = vpop.f32.mrb[28].mxu1 }
 0x12d   : > { %6684 = vmatmul.mubr.msk.bf16.gmra.mrb[124].mxu1 %vm412_vm1, %v6137_v61  ;;  %v6185_v40 = vcombine.low %v4839_v18, %v4842_v6  ;;  %v4245_v57 = vor.u32 %v4244_v1, %v4240_v0  ;;  %v9580_v47 = vshll.u32 %v9578_v21, 16  ;;  %v4262_v35 = vshll.u32 %v8697_v37, 16  ;;  %v1570_v9 = vld [vmem:[#allocation2 + $0x20] sm:$0xff] }
 0x12e   : > { %v4255_v42 = vrot.slane %v9579_v54, 4  ;;  %v4236_v4 = vrot.slane %v4235_v63, 4  ;;  %v4846_v28 = vsel %vm7175_vm7, %v6169_v44, %v4845_v27  ;;  %v4847_v11 = vrot.slane %v4845_v27, 4  ;;  %v1573_v50 = vld [vmem:[#allocation2 + $0x38] sm:$0xff]  ;;  %v1085_v6 = vld [vmem:[#allocation2 + $0x40] sm:$0xff]  ;;  %v8718_v54 = vpop.f32.mrb[29].mxu1 }
 0x12f   : > { %v4258_v20 = vrot.slane %v9580_v47, 5  ;;  %v9582_v55 = vshrl.u32 %v9581_v59, 16  ;;  %6717 = vmatprep.mubr.msk.bf16.mxu0 %vm412_vm1, %v6185_v40  ;;  %v4246_v8 = vrot.slane %v4245_v57, 4  ;;  %v4272_v49 = vshll.u32 %v8683_v24, 16  ;;  %v1571_v46 = vld [vmem:[#allocation2 + $0x28] sm:$0xff]  ;;  %v9583_v59 = vld [vmem:[#allocation5_spill] sm:$0xff] }
 0x130   : > { %v4241_v7 = vsel %vm7152_vm6, %v4236_v4, %v4240_v0  ;;  %v4849_v1 = vsel %vm7175_vm7, %v4847_v11, %v4848_v62  ;;  %v4264_v30 = vrot.slane %v4262_v35, 5  ;;  %v1866_v5 = vadd.f32 %v8632_v38, %v1572_v19  ;;  %v1088_v62 = vld [vmem:[#allocation2 + $0x58] sm:$0xff]  ;;  %v1086_v57 = vld [vmem:[#allocation2 + $0x48] sm:$0xff] }
 0x131   : > { %v4268_v52 = vrot.slane %v9582_v55, 4  ;;  %v4259_v17 = vor.u32 %v4258_v20, %v4255_v42  ;;  %v1381_v18 = vadd.f32 %v6477_v16, %v1087_v13  ;;  %v4251_v44 = vsel %vm7152_vm6, %v4246_v8, %v4250_v29  ;;  %v8726_v47 = vld [vmem:[%s6948_s6 + $0x98] sm:$0x1]  ;;  %v8728_v20 = vpop.f32.mrb[30].mxu1 }
 0x132   : > { %v6186_v61 = vcombine.low %v4846_v28, %v4849_v1  ;;  %v4274_v0 = vrot.slane %v4272_v49, 5  ;;  %v6138_v27 = vcombine.low %v4241_v7, %v4251_v44  ;;  %1898 = vst.msk [vmem:[#allocation2 + $0x30] sm:$0xff] %vm215_vm8, %v1866_v5  ;;  %v1864_v38 = vadd.f32 %v8636_v2, %v1570_v9  ;;  %v8730_v2 = vpop.f32.mrb[28].mxu0  ;;  %v8737_v28 = vpop.f32.mrb[31].mxu1  ;;  %v9586_v9 = vld [vmem:[#allocation6_spill] sm:$0xff] }
 0x133   : > { %v4260_v63 = vrot.slane %v4259_v17, 4  ;;  %v4269_v21 = vor.u32 %v4268_v52, %v4264_v30  ;;  %1413 = vst.msk [vmem:[#allocation2 + $0x50] sm:$0xff] %vm215_vm8, %v1381_v18  ;;  %v1379_v16 = vadd.f32 %v1276_v36, %v1085_v6  ;;  %v1867_v42 = vadd.f32 %v8639_v43, %v1573_v50  ;;  %v6829_v43 = vld [vmem:[%s6948_s6 + $0x78] sm:$0xf]  ;;  %v8739_v11 = vpop.f32.mrb[29].mxu0 }
 0x134   : > { %6718 = vmatmul.mubr.msk.bf16.gmra.mrb[124].mxu0 %vm412_vm1, %v6186_v61  ;;  %v1382_v40 = vadd.f32 %v6478_v53, %v1088_v62  ;;  %v1865_v4 = vadd.f32 %v8645_v31, %v1571_v46  ;;  %6687 = vmatprep.mubr.msk.bf16.mxu1 %vm412_vm1, %v6138_v27  ;;  %1896 = vst.msk [vmem:[#allocation2 + $0x20] sm:$0xff] %vm215_vm8, %v1864_v38  ;;  %v6170_v53 = vrot.slane %v6829_v43, 9  ;;  %v4852_v31 = vrot.slane %v8665_v56, 5  ;;  %v8750_v56 = vld [vmem:[%s6948_s6 + $0x94] sm:$0xf]  ;;  %v8753_v17 = vpop.f32.mrb[30].mxu0 }
 0x135   : > { %v4265_v29 = vsel %vm7152_vm6, %v4260_v63, %v4264_v30  ;;  %v4270_v36 = vrot.slane %v4269_v21, 4  ;;  %1411 = vst.msk [vmem:[#allocation2 + $0x40] sm:$0xff] %vm215_vm8, %v1379_v16  ;;  %v1380_v19 = vadd.f32 %v1279_v26, %v1086_v57  ;;  %1899 = vst.msk [vmem:[#allocation2 + $0x38] sm:$0xff] %vm215_vm8, %v1867_v42  ;;  %v4855_v35 = vrot.slane %v8643_v51, 5  ;;  %v8762_v5 = vpop.f32.mrb[31].mxu0 }
 0x136   : > { %1414 = vst.msk [vmem:[#allocation2 + $0x58] sm:$0xff] %vm215_vm8, %v1382_v40  ;;  %1897 = vst.msk [vmem:[#allocation2 + $0x28] sm:$0xff] %vm215_vm8, %v1865_v4  ;;  %v9584_v55 = vshrl.u32 %v9583_v59, 16  ;;  %v9585_v26 = vshll.u32 %v9583_v59, 16  ;;  %v4286_v8 = vshll.u32 %v8750_v56, 16  ;;  %v4853_v51 = vsel %vm7175_vm7, %v6170_v53, %v4852_v31 }
 0x137   : > { %v4275_v49 = vsel %vm7152_vm6, %v4270_v36, %v4274_v0  ;;  %1412 = vst.msk [vmem:[#allocation2 + $0x48] sm:$0xff] %vm215_vm8, %v1380_v19  ;;  %v4854_v13 = vrot.slane %v4852_v31, 4  ;;  %v9587_v1 = vshrl.u32 %v9586_v9, 16  ;;  %v4296_v44 = vshll.u32 %v8726_v47, 16  ;;  %v6831_v63 = vld [vmem:[%s6948_s6 + $0x84] sm:$0xf] }
 0x138   : > { %v4279_v52 = vrot.slane %v9584_v55, 4  ;;  %v4282_v7 = vrot.slane %v9585_v26, 5  ;;  %v6139_v18 = vcombine.low %v4265_v29, %v4275_v49  ;;  %v4288_v46 = vrot.slane %v4286_v8, 5  ;;  %v8772_v29 = vld [vmem:[%s6948_s6 + $0xa4] sm:$0x1]  ;;  %v8780_v19 = vpop.f32.mrb[32].mxu1 }
 0x139   : > { %v4292_v30 = vrot.slane %v9587_v1, 4  ;;  %v4856_v61 = vsel %vm7175_vm7, %v4854_v13, %v4855_v35  ;;  %v6171_v0 = vrot.slane %v6831_v63, 9  ;;  %v4859_v6 = vrot.slane %v8697_v37, 5  ;;  %v8786_v31 = vld [vmem:[%s6948_s6 + $0xa0] sm:$0xf]  ;;  %v8791_v26 = vpop.f32.mrb[33].mxu1 }
 0x13a   : > { %v4283_v50 = vor.u32 %v4282_v7, %v4279_v52  ;;  %v4862_v27 = vrot.slane %v8683_v24, 5  ;;  %6688 = vmatmul.mubr.msk.bf16.gmra.mrb[128].mxu1 %vm412_vm1, %v6139_v18  ;;  %v6187_v21 = vcombine.low %v4853_v51, %v4856_v61  ;;  %v4298_v62 = vrot.slane %v4296_v44, 5  ;;  %v1576_v42 = vld [vmem:[#allocation2 + $0x50] sm:$0xff]  ;;  %v8797_v9 = vpop.f32.mrb[34].mxu1  ;;  %v8799_v1 = vpop.f32.mrb[32].mxu0 }
 0x13b   : > { %v4293_v16 = vor.u32 %v4292_v30, %v4288_v46  ;;  %v4860_v40 = vsel %vm7175_vm7, %v6171_v0, %v4859_v6  ;;  %v4861_v4 = vrot.slane %v4859_v6, 4  ;;  %v9588_v57 = vshrl.u32 %v8161_v14, 16  ;;  %v1091_v51 = vld [vmem:[#allocation2 + $0x70] sm:$0xff]  ;;  %v8804_v44 = vpop.f32.mrb[35].mxu1  ;;  %v8806_v61 = vpop.f32.mrb[33].mxu0 }
 0x13c   : > { %v4284_v38 = vrot.slane %v4283_v50, 4  ;;  %v9589_v37 = vshll.u32 %v8161_v14, 16  ;;  %6721 = vmatprep.mubr.msk.bf16.mxu0 %vm412_vm1, %v6187_v21  ;;  %v4310_v35 = vshll.u32 %v8786_v31, 16  ;;  %v9590_v59 = vshrl.u32 %v8169_v3, 16  ;;  %v1574_v52 = vld [vmem:[#allocation2 + $0x40] sm:$0xff]  ;;  %v1092_v21 = vld [vmem:[#allocation2 + $0x78] sm:$0xff] }
 0x13d   : > { %v4303_v36 = vrot.slane %v9588_v57, 4  ;;  %v4294_v53 = vrot.slane %v4293_v16, 4  ;;  %v4863_v14 = vsel %vm7175_vm7, %v4861_v4, %v4862_v27  ;;  %v4320_v8 = vshll.u32 %v8772_v29, 16  ;;  %v1577_v13 = vld [vmem:[#allocation2 + $0x58] sm:$0xff]  ;;  %v1089_v27 = vld [vmem:[#allocation2 + $0x60] sm:$0xff] }
 0x13e   : > { %v4306_v24 = vrot.slane %v9589_v37, 5  ;;  %v4289_v43 = vsel %vm7152_vm6, %v4284_v38, %v4288_v46  ;;  %v4316_v55 = vrot.slane %v9590_v59, 4  ;;  %v1870_v49 = vadd.f32 %v8676_v41, %v1576_v42  ;;  %v1575_v46 = vld [vmem:[#allocation2 + $0x48] sm:$0xff]  ;;  %v8810_v38 = vpop.f32.mrb[34].mxu0  ;;  %v8818_v4 = vld [vmem:[%s6948_s6 + $0xb0] sm:$0x1] }
 0x13f   : > { %v4299_v3 = vsel %vm7152_vm6, %v4294_v53, %v4298_v62  ;;  %v6188_v30 = vcombine.low %v4860_v40, %v4863_v14  ;;  %v4312_v18 = vrot.slane %v4310_v35, 5  ;;  %v1385_v50 = vadd.f32 %v8713_v39, %v1091_v51  ;;  %v1090_v40 = vld [vmem:[#allocation2 + $0x68] sm:$0xff]  ;;  %v8852_v51 = vpop.f32.mrb[36].mxu1 }
 0x140   : > { %v4307_v7 = vor.u32 %v4306_v24, %v4303_v36  ;;  %v6140_v41 = vcombine.low %v4289_v43, %v4299_v3  ;;  %v4322_v0 = vrot.slane %v4320_v8, 5  ;;  %1902 = vst.msk [vmem:[#allocation2 + $0x50] sm:$0xff] %vm215_vm8, %v1870_v49  ;;  %v1868_v6 = vadd.f32 %v8687_v33, %v1574_v52  ;;  %v8820_v33 = vpop.f32.mrb[35].mxu0  ;;  %v8841_v59 = vld [vmem:[%s6948_s6 + $0xac] sm:$0xf] }
 0x141   : > { %6722 = vmatmul.mubr.msk.bf16.gmra.mrb[128].mxu0 %vm412_vm1, %v6188_v30  ;;  %v4317_v39 = vor.u32 %v4316_v55, %v4312_v18  ;;  %1417 = vst.msk [vmem:[#allocation2 + $0x70] sm:$0xff] %vm215_vm8, %v1385_v50  ;;  %v1383_v16 = vadd.f32 %v8718_v54, %v1089_v27  ;;  %v1871_v62 = vadd.f32 %v8692_v48, %v1577_v13  ;;  %v6833_v48 = vld [vmem:[%s6948_s6 + $0x90] sm:$0xf]  ;;  %v4866_v24 = vrot.slane %v8750_v56, 5  ;;  %v6835_v49 = vld [vmem:[%s6948_s6 + $0x9c] sm:$0xf] }
 0x142   : > { %v4308_v63 = vrot.slane %v4307_v7, 4  ;;  %v1386_v42 = vadd.f32 %v8728_v20, %v1092_v21  ;;  %6691 = vmatprep.mubr.msk.bf16.mxu1 %vm412_vm1, %v6140_v41  ;;  %1900 = vst.msk [vmem:[#allocation2 + $0x40] sm:$0xff] %vm215_vm8, %v1868_v6  ;;  %v1869_v36 = vadd.f32 %v8702_v58, %v1575_v46  ;;  %v1384_v54 = vadd.f32 %v8737_v28, %v1090_v40 }
 0x143   : > { %v6172_v37 = vrot.slane %v6833_v48, 9  ;;  %v4318_v20 = vrot.slane %v4317_v39, 4  ;;  %1415 = vst.msk [vmem:[#allocation2 + $0x60] sm:$0xff] %vm215_vm8, %v1383_v16  ;;  %1903 = vst.msk [vmem:[#allocation2 + $0x58] sm:$0xff] %vm215_vm8, %v1871_v62  ;;  %v4869_v43 = vrot.slane %v8726_v47, 5  ;;  %v9591_v53 = vshrl.u32 %v8199_v32, 16 }
 0x144   : > { %v4313_v57 = vsel %vm7152_vm6, %v4308_v63, %v4312_v18  ;;  %1418 = vst.msk [vmem:[#allocation2 + $0x78] sm:$0xff] %vm215_vm8, %v1386_v42  ;;  %1901 = vst.msk [vmem:[#allocation2 + $0x48] sm:$0xff] %vm215_vm8, %v1869_v36  ;;  %v9592_v58 = vshll.u32 %v8199_v32, 16  ;;  %v4334_v55 = vshll.u32 %v8841_v59, 16  ;;  %v9593_v52 = vshrl.u32 %v8209_v10, 16  ;;  %v8854_v10 = vpop.f32.mrb[37].mxu1 }
 0x145   : > { %v4327_v35 = vrot.slane %v9591_v53, 4  ;;  %1416 = vst.msk [vmem:[#allocation2 + $0x68] sm:$0xff] %vm215_vm8, %v1384_v54  ;;  %v4344_v47 = vshll.u32 %v8818_v4, 16  ;;  %v4323_v56 = vsel %vm7152_vm6, %v4318_v20, %v4322_v0  ;;  %v4867_v7 = vsel %vm7175_vm7, %v6172_v37, %v4866_v24  ;;  %v8861_v63 = vld [vmem:[%s6948_s6 + $0xbc] sm:$0x1]  ;;  %v8865_v27 = vpop.f32.mrb[38].mxu1 }
 0x146   : > { %v4330_v28 = vrot.slane %v9592_v58, 5  ;;  %v4340_v14 = vrot.slane %v9593_v52, 4  ;;  %v4868_v8 = vrot.slane %v4866_v24, 4  ;;  %v6173_v32 = vrot.slane %v6835_v49, 9  ;;  %v8877_v54 = vld [vmem:[%s6948_s6 + $0xb8] sm:$0xf] }
 0x147   : > { %v6141_v13 = vcombine.low %v4313_v57, %v4323_v56  ;;  %v4336_v30 = vrot.slane %v4334_v55, 5  ;;  %v4346_v18 = vrot.slane %v4344_v47, 5  ;;  %v4873_v46 = vrot.slane %v8786_v31, 5  ;;  %v8870_v57 = vpop.f32.mrb[39].mxu1  ;;  %v8872_v31 = vpop.f32.mrb[36].mxu0  ;;  %v1095_v58 = vld [vmem:[#allocation2 + $0x90] sm:$0xff] }
 0x148   : > { %v4331_v3 = vor.u32 %v4330_v28, %v4327_v35  ;;  %v4870_v50 = vsel %vm7175_vm7, %v4868_v8, %v4869_v43  ;;  %v4876_v41 = vrot.slane %v8772_v29, 5  ;;  %v9594_v0 = vshrl.u32 %v8219_v12, 16  ;;  %v1580_v40 = vld [vmem:[#allocation2 + $0x70] sm:$0xff]  ;;  %v8882_v24 = vpop.f32.mrb[37].mxu0 }
 0x149   : > { %6692 = vmatmul.mubr.msk.bf16.gmra.mrb[132].mxu1 %vm412_vm1, %v6141_v13  ;;  %v6189_v21 = vcombine.low %v4867_v7, %v4870_v50  ;;  %v4341_v16 = vor.u32 %v4340_v14, %v4336_v30  ;;  %v9595_v62 = vshll.u32 %v8219_v12, 16  ;;  %v4874_v29 = vsel %vm7175_vm7, %v6173_v32, %v4873_v46  ;;  %v8888_v55 = vpop.f32.mrb[38].mxu0 }
 0x14a   : > { %v4351_v6 = vrot.slane %v9594_v0, 4  ;;  %v4332_v39 = vrot.slane %v4331_v3, 4  ;;  %v4875_v36 = vrot.slane %v4873_v46, 4  ;;  %v4358_v48 = vshll.u32 %v8877_v54, 16  ;;  %v1578_v28 = vld [vmem:[#allocation2 + $0x60] sm:$0xff]  ;;  %v8894_v8 = vpop.f32.mrb[39].mxu0 }
 0x14b   : > { %v4354_v42 = vrot.slane %v9595_v62, 5  ;;  %v9596_v37 = vshrl.u32 %v8224_v25, 16  ;;  %6725 = vmatprep.mubr.msk.bf16.mxu0 %vm412_vm1, %v6189_v21  ;;  %v4342_v43 = vrot.slane %v4341_v16, 4  ;;  %v4368_v35 = vshll.u32 %v8861_v63, 16  ;;  %v1581_v56 = vld [vmem:[#allocation2 + $0x78] sm:$0xff] }
 0x14c   : > { %v4337_v12 = vsel %vm7152_vm6, %v4332_v39, %v4336_v30  ;;  %v4877_v52 = vsel %vm7175_vm7, %v4875_v36, %v4876_v41  ;;  %v4360_v25 = vrot.slane %v4358_v48, 5  ;;  %v1874_v14 = vadd.f32 %v8730_v2, %v1580_v40  ;;  %v1579_v7 = vld [vmem:[#allocation2 + $0x68] sm:$0xff]  ;;  %v1093_v30 = vld [vmem:[#allocation2 + $0x80] sm:$0xff]  ;;  %v1096_v41 = vld [vmem:[#allocation2 + $0x98] sm:$0xff] }
 0x14d   : > { %v4364_v20 = vrot.slane %v9596_v37, 4  ;;  %v4355_v53 = vor.u32 %v4354_v42, %v4351_v6  ;;  %v1389_v47 = vadd.f32 %v8780_v19, %v1095_v58  ;;  %v4347_v49 = vsel %vm7152_vm6, %v4342_v43, %v4346_v18  ;;  %v1094_v39 = vld [vmem:[#allocation2 + $0x88] sm:$0xff] }
 0x14e   : > { %v6190_v32 = vcombine.low %v4874_v29, %v4877_v52  ;;  %v4370_v3 = vrot.slane %v4368_v35, 5  ;;  %v6142_v50 = vcombine.low %v4337_v12, %v4347_v49  ;;  %1906 = vst.msk [vmem:[#allocation2 + $0x70] sm:$0xff] %vm215_vm8, %v1874_v14  ;;  %v1872_v2 = vadd.f32 %v8739_v11, %v1578_v28  ;;  %v6837_v16 = vld [vmem:[%s6948_s6 + $0xa8] sm:$0xf]  ;;  %v8950_v49 = vpop.f32.mrb[40].mxu0 }
 0x14f   : > { %v4356_v13 = vrot.slane %v4355_v53, 4  ;;  %v4365_v46 = vor.u32 %v4364_v20, %v4360_v25  ;;  %1421 = vst.msk [vmem:[#allocation2 + $0x90] sm:$0xff] %vm215_vm8, %v1389_v47  ;;  %v1387_v19 = vadd.f32 %v8791_v26, %v1093_v30  ;;  %v1875_v0 = vadd.f32 %v8753_v17, %v1581_v56  ;;  %v8915_v17 = vld [vmem:[%s6948_s6 + $0xc8] sm:$0x1]  ;;  %v6839_v47 = vld [vmem:[%s6948_s6 + $0xb4] sm:$0xf] }
 0x150   : > { %6726 = vmatmul.mubr.msk.bf16.gmra.mrb[132].mxu0 %vm412_vm1, %v6190_v32  ;;  %v1390_v6 = vadd.f32 %v8797_v9, %v1096_v41  ;;  %v1873_v21 = vadd.f32 %v8762_v5, %v1579_v7  ;;  %6695 = vmatprep.mubr.msk.bf16.mxu1 %vm412_vm1, %v6142_v50  ;;  %1904 = vst.msk [vmem:[#allocation2 + $0x60] sm:$0xff] %vm215_vm8, %v1872_v2  ;;  %v6174_v62 = vrot.slane %v6837_v16, 9  ;;  %v4880_v42 = vrot.slane %v8841_v59, 5  ;;  %v8917_v9 = vpop.f32.mrb[40].mxu1  ;;  %v8928_v59 = vld [vmem:[%s6948_s6 + $0xc4] sm:$0xf] }
 0x151   : > { %v4361_v18 = vsel %vm7152_vm6, %v4356_v13, %v4360_v25  ;;  %v4366_v11 = vrot.slane %v4365_v46, 4  ;;  %1419 = vst.msk [vmem:[#allocation2 + $0x80] sm:$0xff] %vm215_vm8, %v1387_v19  ;;  %v1388_v26 = vadd.f32 %v8804_v44, %v1094_v39  ;;  %1907 = vst.msk [vmem:[#allocation2 + $0x78] sm:$0xff] %vm215_vm8, %v1875_v0  ;;  %v4883_v5 = vrot.slane %v8818_v4, 5  ;;  %v8931_v37 = vpop.f32.mrb[41].mxu1  ;;  %v8956_v2 = vpop.f32.mrb[41].mxu0 }
 0x152   : > { %1422 = vst.msk [vmem:[#allocation2 + $0x98] sm:$0xff] %vm215_vm8, %v1390_v6  ;;  %1905 = vst.msk [vmem:[#allocation2 + $0x68] sm:$0xff] %vm215_vm8, %v1873_v21  ;;  %v9597_v40 = vshrl.u32 %v8274_v60, 16  ;;  %v9598_v44 = vshll.u32 %v8274_v60, 16  ;;  %v4382_v48 = vshll.u32 %v8928_v59, 16  ;;  %v4881_v4 = vsel %vm7175_vm7, %v6174_v62, %v4880_v42  ;;  %v8940_v53 = vpop.f32.mrb[42].mxu1 }
 0x153   : > { %v4371_v20 = vsel %vm7152_vm6, %v4366_v11, %v4370_v3  ;;  %1420 = vst.msk [vmem:[#allocation2 + $0x88] sm:$0xff] %vm215_vm8, %v1388_v26  ;;  %v4882_v12 = vrot.slane %v4880_v42, 4  ;;  %v9599_v43 = vshrl.u32 %v8277_v15, 16  ;;  %v4392_v52 = vshll.u32 %v8915_v17, 16  ;;  %v8943_v25 = vpop.f32.mrb[43].mxu1  ;;  %v8964_v6 = vpop.f32.mrb[42].mxu0 }
 0x154   : > { %v4375_v29 = vrot.slane %v9597_v40, 4  ;;  %v4378_v36 = vrot.slane %v9598_v44, 5  ;;  %v6143_v35 = vcombine.low %v4361_v18, %v4371_v20  ;;  %v4384_v28 = vrot.slane %v4382_v48, 5  ;;  %v8954_v50 = vld [vmem:[%s6948_s6 + $0xd4] sm:$0x1] }
 0x155   : > { %v4388_v60 = vrot.slane %v9599_v43, 4  ;;  %v4884_v14 = vsel %vm7175_vm7, %v4882_v12, %v4883_v5  ;;  %v6175_v56 = vrot.slane %v6839_v47, 9  ;;  %v4887_v7 = vrot.slane %v8877_v54, 5  ;;  %v8970_v11 = vld [vmem:[%s6948_s6 + $0xd0] sm:$0xf]  ;;  %v8975_v5 = vpop.f32.mrb[43].mxu0 }
 0x156   : > { %v4379_v58 = vor.u32 %v4378_v36, %v4375_v29  ;;  %v4890_v15 = vrot.slane %v8861_v63, 5  ;;  %6696 = vmatmul.mubr.msk.bf16.gmra.mrb[136].mxu1 %vm412_vm1, %v6143_v35  ;;  %v6191_v32 = vcombine.low %v4881_v4, %v4884_v14  ;;  %v4394_v30 = vrot.slane %v4392_v52, 5  ;;  %v1584_v46 = vld [vmem:[#allocation2 + $0x90] sm:$0xff]  ;;  %v1097_v52 = vld [vmem:[#allocation2 + $0xa0] sm:$0xff] }
 0x157   : > { %v4389_v3 = vor.u32 %v4388_v60, %v4384_v28  ;;  %v4888_v19 = vsel %vm7175_vm7, %v6175_v56, %v4887_v7  ;;  %v4889_v54 = vrot.slane %v4887_v7, 4  ;;  %v9600_v63 = vshrl.u32 %v8289_v22, 16  ;;  %v1099_v36 = vld [vmem:[#allocation2 + $0xb0] sm:$0xff]  ;;  %v1098_v7 = vld [vmem:[#allocation2 + $0xa8] sm:$0xff] }
 0x158   : > { %v4380_v13 = vrot.slane %v4379_v58, 4  ;;  %v9601_v18 = vshll.u32 %v8289_v22, 16  ;;  %6729 = vmatprep.mubr.msk.bf16.mxu0 %vm412_vm1, %v6191_v32  ;;  %v4406_v26 = vshll.u32 %v8970_v11, 16  ;;  %v9602_v16 = vshrl.u32 %v8307_v45, 16  ;;  %v1582_v42 = vld [vmem:[#allocation2 + $0x80] sm:$0xff] }
 0x159   : > { %v4399_v41 = vrot.slane %v9600_v63, 4  ;;  %v4390_v39 = vrot.slane %v4389_v3, 4  ;;  %v4891_v22 = vsel %vm7175_vm7, %v4889_v54, %v4890_v15  ;;  %v4416_v29 = vshll.u32 %v8954_v50, 16  ;;  %v1585_v48 = vld [vmem:[#allocation2 + $0x98] sm:$0xff]  ;;  %v6497_v15 = vpop.f32.mrb[44].mxu1 }
 0x15a   : > { %v4402_v0 = vrot.slane %v9601_v18, 5  ;;  %v4385_v21 = vsel %vm7152_vm6, %v4380_v13, %v4384_v28  ;;  %v4412_v62 = vrot.slane %v9602_v16, 4  ;;  %v1878_v44 = vadd.f32 %v8799_v1, %v1584_v46  ;;  %v1583_v43 = vld [vmem:[#allocation2 + $0x88] sm:$0xff]  ;;  %v1100_v1 = vld [vmem:[#allocation2 + $0xb8] sm:$0xff]  ;;  %v6841_v3 = vld [vmem:[%s6948_s6 + $0xc0] sm:$0xf] }
 0x15b   : > { %v4395_v20 = vsel %vm7152_vm6, %v4390_v39, %v4394_v30  ;;  %v6192_v4 = vcombine.low %v4888_v19, %v4891_v22  ;;  %v4408_v12 = vrot.slane %v4406_v26, 5  ;;  %v1393_v45 = vadd.f32 %v8852_v51, %v1099_v36  ;;  %v1103_v30 = vld [vmem:[#allocation2 + $0xd0] sm:$0xff]  ;;  %v1356_v46 = vpop.f32.mrb[45].mxu1  ;;  %v6842_v63 = vld [vmem:[%s6948_s6 + $0xcc] sm:$0xf]  ;;  %v1105_v36 = vld [vmem:[#allocation2 + $0xe0] sm:$0xff] }
 0x15c   : > { %v4403_v40 = vor.u32 %v4402_v0, %v4399_v41  ;;  %v6144_v60 = vcombine.low %v4385_v21, %v4395_v20  ;;  %v4418_v58 = vrot.slane %v4416_v29, 5  ;;  %1910 = vst.msk [vmem:[#allocation2 + $0x90] sm:$0xff] %vm215_vm8, %v1878_v44  ;;  %v1876_v28 = vadd.f32 %v8806_v61, %v1582_v42  ;;  %v6498_v41 = vpop.f32.mrb[46].mxu1  ;;  %v1107_v44 = vld [vmem:[#allocation2 + $0xf0] sm:$0xff] }
 0x15d   : > { %6730 = vmatmul.mubr.msk.bf16.gmra.mrb[136].mxu0 %vm412_vm1, %v6192_v4  ;;  %v4413_v14 = vor.u32 %v4412_v62, %v4408_v12  ;;  %1425 = vst.msk [vmem:[#allocation2 + $0xb0] sm:$0xff] %vm215_vm8, %v1393_v45  ;;  %v1391_v47 = vadd.f32 %v8854_v10, %v1097_v52  ;;  %v1879_v51 = vadd.f32 %v8810_v38, %v1585_v48  ;;  %v6176_v10 = vrot.slane %v6841_v3, 9  ;;  %v1101_v38 = vld [vmem:[#allocation2 + $0xc0] sm:$0xff]  ;;  %v1359_v16 = vpop.f32.mrb[47].mxu1  ;;  %v1108_v48 = vld [vmem:[#allocation2 + $0xf8] sm:$0xff]  ;;  %v1106_v45 = vld [vmem:[#allocation2 + $0xe8] sm:$0xff] }
 0x15e   : > { %v4404_v35 = vrot.slane %v4403_v40, 4  ;;  %v1394_v56 = vadd.f32 %v8865_v27, %v1100_v1  ;;  %6699 = vmatprep.mubr.msk.bf16.mxu1 %vm412_vm1, %v6144_v60  ;;  %1908 = vst.msk [vmem:[#allocation2 + $0x80] sm:$0xff] %vm215_vm8, %v1876_v28  ;;  %v1877_v32 = vadd.f32 %v8820_v33, %v1583_v43  ;;  %v1392_v13 = vadd.f32 %v8870_v57, %v1098_v7  ;;  %v8998_v27 = vpop.f32.mrb[44].mxu0  ;;  %v1978_v52 = vld [vmem:[#allocation2 + $0x10] sm:$0xff]  ;;  %v6537_v1 = vpop.f32.mrb[48].mxu1 }
 0x15f   : > { %v4414_v19 = vrot.slane %v4413_v14, 4  ;;  %1423 = vst.msk [vmem:[#allocation2 + $0xa0] sm:$0xff] %vm215_vm8, %v1391_v47  ;;  %1911 = vst.msk [vmem:[#allocation2 + $0x98] sm:$0xff] %vm215_vm8, %v1879_v51  ;;  %v4894_v54 = vrot.slane %v8928_v59, 5  ;;  %v4897_v33 = vrot.slane %v8915_v17, 5  ;;  %v6177_v57 = vrot.slane %v6842_v63, 9 }
 0x160   : > { %v4409_v61 = vsel %vm7152_vm6, %v4404_v35, %v4408_v12  ;;  %1426 = vst.msk [vmem:[#allocation2 + $0xb8] sm:$0xff] %vm215_vm8, %v1394_v56  ;;  %v9006_v18 = vpop.f32.mrb[45].mxu0  ;;  %1909 = vst.msk [vmem:[#allocation2 + $0x88] sm:$0xff] %vm215_vm8, %v1877_v32  ;;  %v4901_v0 = vrot.slane %v8970_v11, 5  ;;  %v4904_v21 = vrot.slane %v8954_v50, 5  ;;  %v1397_v39 = vadd.f32 %v8917_v9, %v1103_v30  ;;  %v1104_v59 = vld [vmem:[#allocation2 + $0xd8] sm:$0xff] }
 0x161   : > { %1424 = vst.msk [vmem:[#allocation2 + $0xa8] sm:$0xff] %vm215_vm8, %v1392_v13  ;;  %v1395_v26 = vadd.f32 %v8931_v37, %v1101_v38  ;;  %v9014_v17 = vpop.f32.mrb[46].mxu0  ;;  %v4419_v62 = vsel %vm7152_vm6, %v4414_v19, %v4418_v58  ;;  %v4895_v42 = vsel %vm7175_vm7, %v6176_v10, %v4894_v54  ;;  %v4896_v22 = vrot.slane %v4894_v54, 4  ;;  %v1102_v11 = vld [vmem:[#allocation2 + $0xc8] sm:$0xff]  ;;  %v1976_v51 = vld [vmem:[#allocation2] sm:$0xff]  ;;  %v2175_v56 = vpop.f32.mrb[49].mxu1 }
 0x162   : > { %v1398_v40 = vadd.f32 %v8940_v53, %v1104_v59  ;;  %v9021_v29 = vpop.f32.mrb[47].mxu0  ;;  %v6145_v50 = vcombine.low %v4409_v61, %v4419_v62  ;;  %v4902_v9 = vsel %vm7175_vm7, %v6177_v57, %v4901_v0  ;;  %v4903_v37 = vrot.slane %v4901_v0, 4  ;;  %1429 = vst.msk [vmem:[#allocation2 + $0xd0] sm:$0xff] %vm215_vm8, %v1397_v39  ;;  %v1979_v32 = vld [vmem:[#allocation2 + $0x18] sm:$0xff]  ;;  %v6538_v13 = vpop.f32.mrb[50].mxu1  ;;  %v1977_v30 = vld [vmem:[#allocation2 + $0x8] sm:$0xff] }
 0x163   : > { %1427 = vst.msk [vmem:[#allocation2 + $0xc0] sm:$0xff] %vm215_vm8, %v1395_v26  ;;  %v1396_v23 = vadd.f32 %v8943_v25, %v1102_v11  ;;  %v4898_v53 = vsel %vm7175_vm7, %v4896_v22, %v4897_v33  ;;  %v1401_v20 = vadd.f32 %v6497_v15, %v1107_v44  ;;  %v1399_v4 = vadd.f32 %v1356_v46, %v1105_v36  ;;  %v2178_v38 = vpop.f32.mrb[51].mxu1  ;;  %v6571_v33 = vpop.f32.mrb[48].mxu0  ;;  %v1982_v62 = vld [vmem:[#allocation2 + $0x30] sm:$0xff]  ;;  %v1980_v11 = vld [vmem:[#allocation2 + $0x20] sm:$0xff]  ;;  %v1981_v44 = vld [vmem:[#allocation2 + $0x28] sm:$0xff] }
 0x164   : > { %1430 = vst.msk [vmem:[#allocation2 + $0xd8] sm:$0xff] %vm215_vm8, %v1398_v40  ;;  %v1402_v12 = vadd.f32 %v6498_v41, %v1108_v48  ;;  %6700 = vmatmul.mubr.msk.bf16.gmra.mrb[140].mxu1 %vm412_vm1, %v6145_v50  ;;  %v6193_v43 = vcombine.low %v4895_v42, %v4898_v53  ;;  %v4905_v60 = vsel %vm7175_vm7, %v4903_v37, %v4904_v21  ;;  %v1588_v35 = vld [vmem:[#allocation2 + $0xb0] sm:$0xff]  ;;  %v2917_v41 = vpop.f32.mrb[49].mxu0  ;;  %v6541_v42 = vpop.f32.mrb[52].mxu1 }
 0x165   : > { %1428 = vst.msk [vmem:[#allocation2 + $0xc8] sm:$0xff] %vm215_vm8, %v1396_v23  ;;  %v1400_v25 = vadd.f32 %v1359_v16, %v1106_v45  ;;  %v6194_v58 = vcombine.low %v4902_v9, %v4905_v60  ;;  %v1882_v28 = vadd.f32 %v8872_v31, %v1588_v35  ;;  %1433 = vst.msk [vmem:[#allocation2 + $0xf0] sm:$0xff] %vm215_vm8, %v1401_v20  ;;  %v2191_v50 = vpop.f32.mrb[53].mxu1  ;;  %v1986_v60 = vld [vmem:[#allocation2 + $0x50] sm:$0xff] }
 0x166   : > { %1431 = vst.msk [vmem:[#allocation2 + $0xe0] sm:$0xff] %vm215_vm8, %v1399_v4  ;;  %1434 = vst.msk [vmem:[#allocation2 + $0xf8] sm:$0xff] %vm215_vm8, %v1402_v12  ;;  %6733 = vmatprep.mubr.msk.bf16.mxu0 %vm412_vm1, %v6193_v43  ;;  %v1586_v14 = vld [vmem:[#allocation2 + $0xa0] sm:$0xff]  ;;  %v2304_v47 = vadd.f32 %v6537_v1, %v1978_v52  ;;  %v2302_v61 = vadd.f32 %v2175_v56, %v1976_v51  ;;  %v2305_v10 = vadd.f32 %v6538_v13, %v1979_v32  ;;  %v6542_v9 = vpop.f32.mrb[54].mxu1 }
 0x167   : > { %v1589_v34 = vld [vmem:[#allocation2 + $0xb8] sm:$0xff]  ;;  %1432 = vst.msk [vmem:[#allocation2 + $0xe8] sm:$0xff] %vm215_vm8, %v1400_v25  ;;  %6734 = vmatmul.mubr.msk.bf16.gmra.mrb[140].mxu0 %vm412_vm1, %v6194_v58  ;;  %1914 = vst.msk [vmem:[#allocation2 + $0xb0] sm:$0xff] %vm215_vm8, %v1882_v28  ;;  %v1880_v31 = vadd.f32 %v8882_v24, %v1586_v14  ;;  %v2303_v24 = vadd.f32 %v2178_v38, %v1977_v30  ;;  %v2308_v40 = vadd.f32 %v6541_v42, %v1982_v62  ;;  %v2194_v36 = vpop.f32.mrb[55].mxu1  ;;  %v1984_v28 = vld [vmem:[#allocation2 + $0x40] sm:$0xff] }
 0x168   : > { %v1883_v7 = vadd.f32 %v8888_v55, %v1589_v34  ;;  %v1587_v15 = vld [vmem:[#allocation2 + $0xa8] sm:$0xff]  ;;  %2336 = vst.msk [vmem:[#allocation2 + $0x10] sm:$0xff] %vm215_vm8, %v2304_v47  ;;  %2334 = vst.msk [vmem:[#allocation2] sm:$0xff] %vm215_vm8, %v2302_v61  ;;  %v2307_v20 = vadd.f32 %v2194_v36, %v1981_v44  ;;  %v1987_v47 = vld [vmem:[#allocation2 + $0x58] sm:$0xff] }
 0x169   : > { %v1881_v3 = vadd.f32 %v8894_v8, %v1587_v15  ;;  %1912 = vst.msk [vmem:[#allocation2 + $0xa0] sm:$0xff] %vm215_vm8, %v1880_v31  ;;  %v1592_v46 = vld [vmem:[#allocation2 + $0xd0] sm:$0xff]  ;;  %2337 = vst.msk [vmem:[#allocation2 + $0x18] sm:$0xff] %vm215_vm8, %v2305_v10  ;;  %v1985_v61 = vld [vmem:[#allocation2 + $0x48] sm:$0xff] }
 0x16a   : > { %1915 = vst.msk [vmem:[#allocation2 + $0xb8] sm:$0xff] %vm215_vm8, %v1883_v7  ;;  %v1590_v19 = vld [vmem:[#allocation2 + $0xc0] sm:$0xff]  ;;  %v1886_v55 = vadd.f32 %v8950_v49, %v1592_v46  ;;  %2335 = vst.msk [vmem:[#allocation2 + $0x8] sm:$0xff] %vm215_vm8, %v2303_v24  ;;  %v6545_v35 = vpop.f32.mrb[56].mxu1  ;;  %v1990_v24 = vld [vmem:[#allocation2 + $0x70] sm:$0xff] }
 0x16b   : > { %1913 = vst.msk [vmem:[#allocation2 + $0xa8] sm:$0xff] %vm215_vm8, %v1881_v3  ;;  %v1884_v8 = vadd.f32 %v8956_v2, %v1590_v19  ;;  %v1593_v54 = vld [vmem:[#allocation2 + $0xd8] sm:$0xff]  ;;  %v6572_v2 = vpop.f32.mrb[50].mxu0  ;;  %2340 = vst.msk [vmem:[#allocation2 + $0x30] sm:$0xff] %vm215_vm8, %v2308_v40  ;;  %v2312_v58 = vadd.f32 %v6545_v35, %v1986_v60  ;;  %v2207_v52 = vpop.f32.mrb[57].mxu1 }
 0x16c   : > { %v1887_v63 = vadd.f32 %v8964_v6, %v1593_v54  ;;  %v1591_v57 = vld [vmem:[#allocation2 + $0xc8] sm:$0xff]  ;;  %1918 = vst.msk [vmem:[#allocation2 + $0xd0] sm:$0xff] %vm215_vm8, %v1886_v55  ;;  %v1596_v21 = vld [vmem:[#allocation2 + $0xf0] sm:$0xff]  ;;  %v2920_v22 = vpop.f32.mrb[51].mxu0  ;;  %2339 = vst.msk [vmem:[#allocation2 + $0x28] sm:$0xff] %vm215_vm8, %v2307_v20  ;;  %v2310_v34 = vadd.f32 %v2207_v52, %v1984_v28  ;;  %v6546_v51 = vpop.f32.mrb[58].mxu1 }
 0x16d   : > { %1916 = vst.msk [vmem:[#allocation2 + $0xc0] sm:$0xff] %vm215_vm8, %v1884_v8  ;;  %v1885_v0 = vadd.f32 %v8975_v5, %v1591_v57  ;;  %v1594_v49 = vld [vmem:[#allocation2 + $0xe0] sm:$0xff]  ;;  %v1597_v39 = vld [vmem:[#allocation2 + $0xf8] sm:$0xff]  ;;  %v1890_v26 = vadd.f32 %v8998_v27, %v1596_v21  ;;  %v6575_v43 = vpop.f32.mrb[52].mxu0  ;;  %2344 = vst.msk [vmem:[#allocation2 + $0x50] sm:$0xff] %vm215_vm8, %v2312_v58  ;;  %v2313_v15 = vadd.f32 %v6546_v51, %v1987_v47  ;;  %v2210_v32 = vpop.f32.mrb[59].mxu1 }
 0x16e   : > { %1919 = vst.msk [vmem:[#allocation2 + $0xd8] sm:$0xff] %vm215_vm8, %v1887_v63  ;;  %v1888_v6 = vadd.f32 %v9006_v18, %v1594_v49  ;;  %v1891_v59 = vadd.f32 %v9014_v17, %v1597_v39  ;;  %v1595_v16 = vld [vmem:[#allocation2 + $0xe8] sm:$0xff]  ;;  %v2306_v18 = vadd.f32 %v2191_v50, %v1980_v11  ;;  %v1983_v17 = vld [vmem:[#allocation2 + $0x38] sm:$0xff]  ;;  %v2933_v25 = vpop.f32.mrb[53].mxu0  ;;  %2342 = vst.msk [vmem:[#allocation2 + $0x40] sm:$0xff] %vm215_vm8, %v2310_v34 }
 0x16f   : > { %1917 = vst.msk [vmem:[#allocation2 + $0xc8] sm:$0xff] %vm215_vm8, %v1885_v0  ;;  %v1889_v5 = vadd.f32 %v9021_v29, %v1595_v16  ;;  %1922 = vst.msk [vmem:[#allocation2 + $0xf0] sm:$0xff] %vm215_vm8, %v1890_v26  ;;  %v2752_v27 = vld [vmem:[#allocation2 + $0x10] sm:$0xff]  ;;  %v2750_v23 = vld [vmem:[#allocation2] sm:$0xff]  ;;  %v2309_v29 = vadd.f32 %v6542_v9, %v1983_v17  ;;  %v6576_v1 = vpop.f32.mrb[54].mxu0  ;;  %v2311_v10 = vadd.f32 %v2210_v32, %v1985_v61 }
 0x170   : > { %1920 = vst.msk [vmem:[#allocation2 + $0xe0] sm:$0xff] %vm215_vm8, %v1888_v6  ;;  %1923 = vst.msk [vmem:[#allocation2 + $0xf8] sm:$0xff] %vm215_vm8, %v1891_v59  ;;  %v3046_v37 = vadd.f32 %v6571_v33, %v2752_v27  ;;  %v3044_v48 = vadd.f32 %v2917_v41, %v2750_v23  ;;  %v2753_v53 = vld [vmem:[#allocation2 + $0x18] sm:$0xff]  ;;  %v2936_v56 = vpop.f32.mrb[55].mxu0  ;;  %v1988_v33 = vld [vmem:[#allocation2 + $0x60] sm:$0xff] }
 0x171   : > { %1921 = vst.msk [vmem:[#allocation2 + $0xe8] sm:$0xff] %vm215_vm8, %v1889_v5  ;;  %2338 = vst.msk [vmem:[#allocation2 + $0x20] sm:$0xff] %vm215_vm8, %v2306_v18  ;;  %v3047_v4 = vadd.f32 %v6572_v2, %v2753_v53  ;;  %v2751_v12 = vld [vmem:[#allocation2 + $0x8] sm:$0xff]  ;;  %v1991_v21 = vld [vmem:[#allocation2 + $0x78] sm:$0xff] }
 0x172   : > { %3078 = vst.msk [vmem:[#allocation2 + $0x10] sm:$0xff] %vm215_vm8, %v3046_v37  ;;  %2341 = vst.msk [vmem:[#allocation2 + $0x38] sm:$0xff] %vm215_vm8, %v2309_v29  ;;  %v3045_v45 = vadd.f32 %v2920_v22, %v2751_v12  ;;  %v2756_v14 = vld [vmem:[#allocation2 + $0x30] sm:$0xff]  ;;  %v6579_v19 = vpop.f32.mrb[56].mxu0  ;;  %v6549_v55 = vpop.f32.mrb[60].mxu1  ;;  %v1989_v59 = vld [vmem:[#allocation2 + $0x68] sm:$0xff] }
 0x173   : > { %3076 = vst.msk [vmem:[#allocation2] sm:$0xff] %vm215_vm8, %v3044_v48  ;;  %3079 = vst.msk [vmem:[#allocation2 + $0x18] sm:$0xff] %vm215_vm8, %v3047_v4  ;;  %v3050_v31 = vadd.f32 %v6575_v43, %v2756_v14  ;;  %v2755_v38 = vld [vmem:[#allocation2 + $0x28] sm:$0xff]  ;;  %v2949_v8 = vpop.f32.mrb[57].mxu0  ;;  %v2316_v54 = vadd.f32 %v6549_v55, %v1990_v24  ;;  %v2223_v63 = vpop.f32.mrb[61].mxu1  ;;  %v1994_v50 = vld [vmem:[#allocation2 + $0x90] sm:$0xff] }
 0x174   : > { %3077 = vst.msk [vmem:[#allocation2 + $0x8] sm:$0xff] %vm215_vm8, %v3045_v45  ;;  %2345 = vst.msk [vmem:[#allocation2 + $0x58] sm:$0xff] %vm215_vm8, %v2313_v15  ;;  %v3049_v46 = vadd.f32 %v2936_v56, %v2755_v38  ;;  %v6580_v57 = vpop.f32.mrb[58].mxu0  ;;  %v2760_v41 = vld [vmem:[#allocation2 + $0x50] sm:$0xff]  ;;  %v2314_v0 = vadd.f32 %v2223_v63, %v1988_v33  ;;  %v6550_v49 = vpop.f32.mrb[62].mxu1  ;;  %v1992_v9 = vld [vmem:[#allocation2 + $0x80] sm:$0xff] }
 0x175   : > { %3082 = vst.msk [vmem:[#allocation2 + $0x30] sm:$0xff] %vm215_vm8, %v3050_v31  ;;  %2343 = vst.msk [vmem:[#allocation2 + $0x48] sm:$0xff] %vm215_vm8, %v2311_v10  ;;  %v2952_v39 = vpop.f32.mrb[59].mxu0  ;;  %v3054_v2 = vadd.f32 %v6579_v19, %v2760_v41  ;;  %v2758_v26 = vld [vmem:[#allocation2 + $0x40] sm:$0xff]  ;;  %v2317_v6 = vadd.f32 %v6550_v49, %v1991_v21  ;;  %v2226_v16 = vpop.f32.mrb[63].mxu1  ;;  %v1995_v36 = vld [vmem:[#allocation2 + $0x98] sm:$0xff] }
 0x176   : > { %3081 = vst.msk [vmem:[#allocation2 + $0x28] sm:$0xff] %vm215_vm8, %v3049_v46  ;;  %2348 = vst.msk [vmem:[#allocation2 + $0x70] sm:$0xff] %vm215_vm8, %v2316_v54  ;;  %v3052_v62 = vadd.f32 %v2949_v8, %v2758_v26  ;;  %v2315_v22 = vadd.f32 %v2226_v16, %v1989_v59  ;;  %v1993_v45 = vld [vmem:[#allocation2 + $0x88] sm:$0xff]  ;;  %v1998_v14 = vld [vmem:[#allocation2 + $0xb0] sm:$0xff] }
 0x177   : > { %2346 = vst.msk [vmem:[#allocation2 + $0x60] sm:$0xff] %vm215_vm8, %v2314_v0  ;;  %3086 = vst.msk [vmem:[#allocation2 + $0x50] sm:$0xff] %vm215_vm8, %v3054_v2  ;;  %v1996_v56 = vld [vmem:[#allocation2 + $0xa0] sm:$0xff]  ;;  %v1999_v32 = vld [vmem:[#allocation2 + $0xb8] sm:$0xff] }
 0x178   : > { %v2754_v7 = vld [vmem:[#allocation2 + $0x20] sm:$0xff]  ;;  %2349 = vst.msk [vmem:[#allocation2 + $0x78] sm:$0xff] %vm215_vm8, %v2317_v6  ;;  %3084 = vst.msk [vmem:[#allocation2 + $0x40] sm:$0xff] %vm215_vm8, %v3052_v62  ;;  %v1997_v46 = vld [vmem:[#allocation2 + $0xa8] sm:$0xff] }
 0x179   : > { %v3048_v13 = vadd.f32 %v2933_v25, %v2754_v7  ;;  %v2757_v3 = vld [vmem:[#allocation2 + $0x38] sm:$0xff]  ;;  %2347 = vst.msk [vmem:[#allocation2 + $0x68] sm:$0xff] %vm215_vm8, %v2315_v22  ;;  %v2002_v41 = vld [vmem:[#allocation2 + $0xd0] sm:$0xff]  ;;  %v2000_v49 = vld [vmem:[#allocation2 + $0xc0] sm:$0xff] }
 0x17a   : > { %v3051_v30 = vadd.f32 %v6576_v1, %v2757_v3  ;;  %v6553_v27 = vpop.f32.mrb[64].mxu1  ;;  %v2003_v6 = vld [vmem:[#allocation2 + $0xd8] sm:$0xff]  ;;  %v2001_v22 = vld [vmem:[#allocation2 + $0xc8] sm:$0xff] }
 0x17b   : > { %3080 = vst.msk [vmem:[#allocation2 + $0x20] sm:$0xff] %vm215_vm8, %v3048_v13  ;;  %v2761_v42 = vld [vmem:[#allocation2 + $0x58] sm:$0xff]  ;;  %v6583_v18 = vpop.f32.mrb[60].mxu0  ;;  %v2320_v17 = vadd.f32 %v6553_v27, %v1994_v50  ;;  %v2239_v37 = vpop.f32.mrb[65].mxu1 }
 0x17c   : > { %3083 = vst.msk [vmem:[#allocation2 + $0x38] sm:$0xff] %vm215_vm8, %v3051_v30  ;;  %v3055_v5 = vadd.f32 %v6580_v57, %v2761_v42  ;;  %v2759_v40 = vld [vmem:[#allocation2 + $0x48] sm:$0xff]  ;;  %v2965_v29 = vpop.f32.mrb[61].mxu0  ;;  %v2318_v44 = vadd.f32 %v2239_v37, %v1992_v9  ;;  %v6554_v48 = vpop.f32.mrb[66].mxu1 }
 0x17d   : > { %v3053_v11 = vadd.f32 %v2952_v39, %v2759_v40  ;;  %v2764_v23 = vld [vmem:[#allocation2 + $0x70] sm:$0xff]  ;;  %2352 = vst.msk [vmem:[#allocation2 + $0x90] sm:$0xff] %vm215_vm8, %v2320_v17  ;;  %v6584_v4 = vpop.f32.mrb[62].mxu0  ;;  %v2321_v12 = vadd.f32 %v6554_v48, %v1995_v36  ;;  %v2242_v43 = vpop.f32.mrb[67].mxu1 }
 0x17e   : > { %3087 = vst.msk [vmem:[#allocation2 + $0x58] sm:$0xff] %vm215_vm8, %v3055_v5  ;;  %v3058_v53 = vadd.f32 %v6583_v18, %v2764_v23  ;;  %v2762_v20 = vld [vmem:[#allocation2 + $0x60] sm:$0xff]  ;;  %2350 = vst.msk [vmem:[#allocation2 + $0x80] sm:$0xff] %vm215_vm8, %v2318_v44  ;;  %v2968_v25 = vpop.f32.mrb[63].mxu0  ;;  %v2319_v58 = vadd.f32 %v2242_v43, %v1993_v45  ;;  %v2006_v44 = vld [vmem:[#allocation2 + $0xf0] sm:$0xff] }
 0x17f   : > { %3085 = vst.msk [vmem:[#allocation2 + $0x48] sm:$0xff] %vm215_vm8, %v3053_v11  ;;  %v3056_v60 = vadd.f32 %v2965_v29, %v2762_v20  ;;  %v2765_v35 = vld [vmem:[#allocation2 + $0x78] sm:$0xff]  ;;  %2353 = vst.msk [vmem:[#allocation2 + $0x98] sm:$0xff] %vm215_vm8, %v2321_v12 }
 0x180   : > { %3090 = vst.msk [vmem:[#allocation2 + $0x70] sm:$0xff] %vm215_vm8, %v3058_v53  ;;  %v3059_v28 = vadd.f32 %v6584_v4, %v2765_v35  ;;  %v2763_v52 = vld [vmem:[#allocation2 + $0x68] sm:$0xff]  ;;  %2351 = vst.msk [vmem:[#allocation2 + $0x88] sm:$0xff] %vm215_vm8, %v2319_v58  ;;  %v2004_v53 = vld [vmem:[#allocation2 + $0xe0] sm:$0xff] }
 0x181   : > { %3088 = vst.msk [vmem:[#allocation2 + $0x60] sm:$0xff] %vm215_vm8, %v3056_v60  ;;  %v3057_v1 = vadd.f32 %v2968_v25, %v2763_v52  ;;  %v2007_v45 = vld [vmem:[#allocation2 + $0xf8] sm:$0xff]  ;;  %v2005_v58 = vld [vmem:[#allocation2 + $0xe8] sm:$0xff] }
 0x182   : > { %3091 = vst.msk [vmem:[#allocation2 + $0x78] sm:$0xff] %vm215_vm8, %v3059_v28  ;;  %v6557_v34 = vpop.f32.mrb[68].mxu1 }
 0x183   : > { %3089 = vst.msk [vmem:[#allocation2 + $0x68] sm:$0xff] %vm215_vm8, %v3057_v1  ;;  %v2324_v51 = vadd.f32 %v6557_v34, %v1998_v14  ;;  %v2255_v31 = vpop.f32.mrb[69].mxu1 }
 0x184   : > { %v6587_v47 = vpop.f32.mrb[64].mxu0  ;;  %v2768_v7 = vld [vmem:[#allocation2 + $0x90] sm:$0xff]  ;;  %v2322_v61 = vadd.f32 %v2255_v31, %v1996_v56  ;;  %v6558_v13 = vpop.f32.mrb[70].mxu1 }
 0x185   : > { %v2981_v15 = vpop.f32.mrb[65].mxu0  ;;  %v3062_v3 = vadd.f32 %v6587_v47, %v2768_v7  ;;  %2356 = vst.msk [vmem:[#allocation2 + $0xb0] sm:$0xff] %vm215_vm8, %v2324_v51  ;;  %v2766_v10 = vld [vmem:[#allocation2 + $0x80] sm:$0xff]  ;;  %v2325_v38 = vadd.f32 %v6558_v13, %v1999_v32  ;;  %v2258_v19 = vpop.f32.mrb[71].mxu1 }
 0x186   : > { %v6588_v30 = vpop.f32.mrb[66].mxu0  ;;  %v3060_v24 = vadd.f32 %v2981_v15, %v2766_v10  ;;  %2354 = vst.msk [vmem:[#allocation2 + $0xa0] sm:$0xff] %vm215_vm8, %v2322_v61  ;;  %v2769_v55 = vld [vmem:[#allocation2 + $0x98] sm:$0xff]  ;;  %v2323_v54 = vadd.f32 %v2258_v19, %v1997_v46 }
 0x187   : > { %v2984_v8 = vpop.f32.mrb[67].mxu0  ;;  %3094 = vst.msk [vmem:[#allocation2 + $0x90] sm:$0xff] %vm215_vm8, %v3062_v3  ;;  %v3063_v33 = vadd.f32 %v6588_v30, %v2769_v55  ;;  %2357 = vst.msk [vmem:[#allocation2 + $0xb8] sm:$0xff] %vm215_vm8, %v2325_v38  ;;  %v2767_v63 = vld [vmem:[#allocation2 + $0x88] sm:$0xff]  ;;  %v3238_v30 = vld [vmem:[#allocation2 + $0x10] sm:$0xff] }
 0x188   : > { %3092 = vst.msk [vmem:[#allocation2 + $0x80] sm:$0xff] %vm215_vm8, %v3060_v24  ;;  %v3061_v57 = vadd.f32 %v2984_v8, %v2767_v63  ;;  %2355 = vst.msk [vmem:[#allocation2 + $0xa8] sm:$0xff] %vm215_vm8, %v2323_v54  ;;  %v3236_v8 = vld [vmem:[#allocation2] sm:$0xff] }
 0x189   : > { %3095 = vst.msk [vmem:[#allocation2 + $0x98] sm:$0xff] %vm215_vm8, %v3063_v33 }
 0x18a   : > { %3093 = vst.msk [vmem:[#allocation2 + $0x88] sm:$0xff] %vm215_vm8, %v3061_v57  ;;  %v6561_v0 = vpop.f32.mrb[72].mxu1 }
 0x18b   : > { %v2328_v21 = vadd.f32 %v6561_v0, %v2002_v41  ;;  %v2271_v39 = vpop.f32.mrb[73].mxu1  ;;  %v3239_v0 = vld [vmem:[#allocation2 + $0x18] sm:$0xff] }
 0x18c   : > { %v2772_v2 = vld [vmem:[#allocation2 + $0xb0] sm:$0xff]  ;;  %v2326_v26 = vadd.f32 %v2271_v39, %v2000_v49  ;;  %v6562_v59 = vpop.f32.mrb[74].mxu1 }
 0x18d   : > { %v6591_v16 = vpop.f32.mrb[68].mxu0  ;;  %2360 = vst.msk [vmem:[#allocation2 + $0xd0] sm:$0xff] %vm215_vm8, %v2328_v21  ;;  %v2770_v62 = vld [vmem:[#allocation2 + $0xa0] sm:$0xff]  ;;  %v2329_v42 = vadd.f32 %v6562_v59, %v2003_v6  ;;  %v2274_v5 = vpop.f32.mrb[75].mxu1 }
 0x18e   : > { %v3066_v40 = vadd.f32 %v6591_v16, %v2772_v2  ;;  %v2997_v11 = vpop.f32.mrb[69].mxu0  ;;  %2358 = vst.msk [vmem:[#allocation2 + $0xc0] sm:$0xff] %vm215_vm8, %v2326_v26  ;;  %v2773_v50 = vld [vmem:[#allocation2 + $0xb8] sm:$0xff]  ;;  %v2327_v27 = vadd.f32 %v2274_v5, %v2001_v22  ;;  %v3237_v2 = vld [vmem:[#allocation2 + $0x8] sm:$0xff]  ;;  %v3242_v16 = vld [vmem:[#allocation2 + $0x30] sm:$0xff] }
 0x18f   : > { %v3064_v18 = vadd.f32 %v2997_v11, %v2770_v62  ;;  %v6592_v17 = vpop.f32.mrb[70].mxu0  ;;  %2361 = vst.msk [vmem:[#allocation2 + $0xd8] sm:$0xff] %vm215_vm8, %v2329_v42  ;;  %v2771_v9 = vld [vmem:[#allocation2 + $0xa8] sm:$0xff]  ;;  %v3240_v5 = vld [vmem:[#allocation2 + $0x20] sm:$0xff] }
 0x190   : > { %3098 = vst.msk [vmem:[#allocation2 + $0xb0] sm:$0xff] %vm215_vm8, %v3066_v40  ;;  %v3067_v37 = vadd.f32 %v6592_v17, %v2773_v50  ;;  %v3000_v23 = vpop.f32.mrb[71].mxu0  ;;  %2359 = vst.msk [vmem:[#allocation2 + $0xc8] sm:$0xff] %vm215_vm8, %v2327_v27 }
 0x191   : > { %3096 = vst.msk [vmem:[#allocation2 + $0xa0] sm:$0xff] %vm215_vm8, %v3064_v18  ;;  %v3065_v29 = vadd.f32 %v3000_v23, %v2771_v9  ;;  %v3243_v18 = vld [vmem:[#allocation2 + $0x38] sm:$0xff] }
 0x192   : > { %3099 = vst.msk [vmem:[#allocation2 + $0xb8] sm:$0xff] %vm215_vm8, %v3067_v37  ;;  %v6565_v36 = vpop.f32.mrb[76].mxu1 }
 0x193   : > { %3097 = vst.msk [vmem:[#allocation2 + $0xa8] sm:$0xff] %vm215_vm8, %v3065_v29  ;;  %v2332_v48 = vadd.f32 %v6565_v36, %v2006_v44  ;;  %v2287_v20 = vpop.f32.mrb[77].mxu1  ;;  %v3241_v44 = vld [vmem:[#allocation2 + $0x28] sm:$0xff] }
 0x194   : > { %v2776_v4 = vld [vmem:[#allocation2 + $0xd0] sm:$0xff]  ;;  %v2330_v12 = vadd.f32 %v2287_v20, %v2004_v53  ;;  %v6566_v43 = vpop.f32.mrb[78].mxu1 }
 0x195   : > { %2364 = vst.msk [vmem:[#allocation2 + $0xf0] sm:$0xff] %vm215_vm8, %v2332_v48  ;;  %v2774_v35 = vld [vmem:[#allocation2 + $0xc0] sm:$0xff]  ;;  %v2333_v25 = vadd.f32 %v6566_v43, %v2007_v45  ;;  %v2290_v28 = vpop.f32.mrb[79].mxu1 }
 0x196   : > { %v6595_v60 = vpop.f32.mrb[72].mxu0  ;;  %2362 = vst.msk [vmem:[#allocation2 + $0xe0] sm:$0xff] %vm215_vm8, %v2330_v12  ;;  %v2777_v14 = vld [vmem:[#allocation2 + $0xd8] sm:$0xff]  ;;  %v2331_v34 = vadd.f32 %v2290_v28, %v2005_v58  ;;  %v3244_v28 = vld [vmem:[#allocation2 + $0x40] sm:$0xff] }
 0x197   : > { %v3070_v52 = vadd.f32 %v6595_v60, %v2776_v4  ;;  %v3013_v1 = vpop.f32.mrb[73].mxu0  ;;  %2365 = vst.msk [vmem:[#allocation2 + $0xf8] sm:$0xff] %vm215_vm8, %v2333_v25  ;;  %v2775_v56 = vld [vmem:[#allocation2 + $0xc8] sm:$0xff]  ;;  %v3246_v60 = vld [vmem:[#allocation2 + $0x50] sm:$0xff] }
 0x198   : > { %v3068_v47 = vadd.f32 %v3013_v1, %v2774_v35  ;;  %v6596_v51 = vpop.f32.mrb[74].mxu0  ;;  %2363 = vst.msk [vmem:[#allocation2 + $0xe8] sm:$0xff] %vm215_vm8, %v2331_v34 }
 0x199   : > { %3102 = vst.msk [vmem:[#allocation2 + $0xd0] sm:$0xff] %vm215_vm8, %v3070_v52  ;;  %v3071_v31 = vadd.f32 %v6596_v51, %v2777_v14  ;;  %v3016_v7 = vpop.f32.mrb[75].mxu0 }
 0x19a   : > { %3100 = vst.msk [vmem:[#allocation2 + $0xc0] sm:$0xff] %vm215_vm8, %v3068_v47  ;;  %v3069_v15 = vadd.f32 %v3016_v7, %v2775_v56  ;;  %v3247_v47 = vld [vmem:[#allocation2 + $0x58] sm:$0xff] }
 0x19b   : > { %3103 = vst.msk [vmem:[#allocation2 + $0xd8] sm:$0xff] %vm215_vm8, %v3071_v31 }
 0x19c   : > { %3101 = vst.msk [vmem:[#allocation2 + $0xc8] sm:$0xff] %vm215_vm8, %v3069_v15  ;;  %v2780_v61 = vld [vmem:[#allocation2 + $0xf0] sm:$0xff] }
 0x19d   : > { %v2778_v13 = vld [vmem:[#allocation2 + $0xe0] sm:$0xff] }
 0x19e   : > { %v6599_v32 = vpop.f32.mrb[76].mxu0  ;;  %v6605_v38 = vpop.f32.mrb[80].mxu1  ;;  %v2781_v46 = vld [vmem:[#allocation2 + $0xf8] sm:$0xff] }
 0x19f   : > { %v3074_v3 = vadd.f32 %v6599_v32, %v2780_v61  ;;  %v3029_v10 = vpop.f32.mrb[77].mxu0  ;;  %v3532_v24 = vadd.f32 %v6605_v38, %v3238_v30  ;;  %v3403_v54 = vpop.f32.mrb[81].mxu1  ;;  %v2779_v33 = vld [vmem:[#allocation2 + $0xe8] sm:$0xff] }
 0x1a0   : > { %v3072_v19 = vadd.f32 %v3029_v10, %v2778_v13  ;;  %v6600_v55 = vpop.f32.mrb[78].mxu0  ;;  %v3530_v57 = vadd.f32 %v3403_v54, %v3236_v8  ;;  %v6606_v21 = vpop.f32.mrb[82].mxu1  ;;  %v3245_v61 = vld [vmem:[#allocation2 + $0x48] sm:$0xff] }
 0x1a1   : > { %3106 = vst.msk [vmem:[#allocation2 + $0xf0] sm:$0xff] %vm215_vm8, %v3074_v3  ;;  %v3075_v63 = vadd.f32 %v6600_v55, %v2781_v46  ;;  %v3032_v41 = vpop.f32.mrb[79].mxu0  ;;  %3564 = vst.msk [vmem:[#allocation2 + $0x10] sm:$0xff] %vm215_vm8, %v3532_v24  ;;  %v3533_v39 = vadd.f32 %v6606_v21, %v3239_v0  ;;  %v3406_v26 = vpop.f32.mrb[83].mxu1  ;;  %v3250_v24 = vld [vmem:[#allocation2 + $0x70] sm:$0xff]  ;;  %v3251_v21 = vld [vmem:[#allocation2 + $0x78] sm:$0xff] }
 0x1a2   : > { %3104 = vst.msk [vmem:[#allocation2 + $0xe0] sm:$0xff] %vm215_vm8, %v3072_v19  ;;  %v3073_v49 = vadd.f32 %v3032_v41, %v2779_v33  ;;  %3562 = vst.msk [vmem:[#allocation2] sm:$0xff] %vm215_vm8, %v3530_v57  ;;  %v3531_v6 = vadd.f32 %v3406_v26, %v3237_v2  ;;  %v3248_v33 = vld [vmem:[#allocation2 + $0x60] sm:$0xff] }
 0x1a3   : > { %3107 = vst.msk [vmem:[#allocation2 + $0xf8] sm:$0xff] %vm215_vm8, %v3075_v63  ;;  %3565 = vst.msk [vmem:[#allocation2 + $0x18] sm:$0xff] %vm215_vm8, %v3533_v39 }
 0x1a4   : > { %3105 = vst.msk [vmem:[#allocation2 + $0xe8] sm:$0xff] %vm215_vm8, %v3073_v49  ;;  %3563 = vst.msk [vmem:[#allocation2 + $0x8] sm:$0xff] %vm215_vm8, %v3531_v6 }
 0x1a6   : > { %v6639_v59 = vpop.f32.mrb[80].mxu0  ;;  %v6609_v62 = vpop.f32.mrb[84].mxu1 }
 0x1a7   : > { %v3845_v42 = vpop.f32.mrb[81].mxu0  ;;  %v3536_v22 = vadd.f32 %v6609_v62, %v3242_v16  ;;  %v3419_v40 = vpop.f32.mrb[85].mxu1 }
 0x1a8   : > { %v6640_v11 = vpop.f32.mrb[82].mxu0  ;;  %v3648_v50 = vld [vmem:[#allocation2 + $0x10] sm:$0xff]  ;;  %v3534_v27 = vadd.f32 %v3419_v40, %v3240_v5  ;;  %v6610_v17 = vpop.f32.mrb[86].mxu1 }
 0x1a9   : > { %v3848_v9 = vpop.f32.mrb[83].mxu0  ;;  %v3974_v37 = vadd.f32 %v6639_v59, %v3648_v50  ;;  %3568 = vst.msk [vmem:[#allocation2 + $0x30] sm:$0xff] %vm215_vm8, %v3536_v22  ;;  %v3646_v23 = vld [vmem:[#allocation2] sm:$0xff]  ;;  %v3537_v29 = vadd.f32 %v6610_v17, %v3243_v18  ;;  %v3422_v36 = vpop.f32.mrb[87].mxu1  ;;  %v3249_v59 = vld [vmem:[#allocation2 + $0x68] sm:$0xff] }
 0x1aa   : > { %v3972_v48 = vadd.f32 %v3845_v42, %v3646_v23  ;;  %3566 = vst.msk [vmem:[#allocation2 + $0x20] sm:$0xff] %vm215_vm8, %v3534_v27  ;;  %v3649_v53 = vld [vmem:[#allocation2 + $0x18] sm:$0xff]  ;;  %v3535_v20 = vadd.f32 %v3422_v36, %v3241_v44  ;;  %v3254_v27 = vld [vmem:[#allocation2 + $0x90] sm:$0xff] }
 0x1ab   : > { %4006 = vst.msk [vmem:[#allocation2 + $0x10] sm:$0xff] %vm215_vm8, %v3974_v37  ;;  %v3975_v4 = vadd.f32 %v6640_v11, %v3649_v53  ;;  %3569 = vst.msk [vmem:[#allocation2 + $0x38] sm:$0xff] %vm215_vm8, %v3537_v29  ;;  %v3647_v12 = vld [vmem:[#allocation2 + $0x8] sm:$0xff]  ;;  %v3252_v37 = vld [vmem:[#allocation2 + $0x80] sm:$0xff] }
 0x1ac   : > { %4004 = vst.msk [vmem:[#allocation2] sm:$0xff] %vm215_vm8, %v3972_v48  ;;  %v3973_v45 = vadd.f32 %v3848_v9, %v3647_v12  ;;  %3567 = vst.msk [vmem:[#allocation2 + $0x28] sm:$0xff] %vm215_vm8, %v3535_v20  ;;  %v3255_v48 = vld [vmem:[#allocation2 + $0x98] sm:$0xff] }
 0x1ad   : > { %4007 = vst.msk [vmem:[#allocation2 + $0x18] sm:$0xff] %vm215_vm8, %v3975_v4 }
 0x1ae   : > { %v6643_v43 = vpop.f32.mrb[84].mxu0  ;;  %4005 = vst.msk [vmem:[#allocation2 + $0x8] sm:$0xff] %vm215_vm8, %v3973_v45  ;;  %v6613_v35 = vpop.f32.mrb[88].mxu1 }
 0x1af   : > { %v3861_v25 = vpop.f32.mrb[85].mxu0  ;;  %v3540_v58 = vadd.f32 %v6613_v35, %v3246_v60  ;;  %v3435_v52 = vpop.f32.mrb[89].mxu1 }
 0x1b0   : > { %v6644_v1 = vpop.f32.mrb[86].mxu0  ;;  %v3652_v14 = vld [vmem:[#allocation2 + $0x30] sm:$0xff]  ;;  %v3538_v34 = vadd.f32 %v3435_v52, %v3244_v28  ;;  %v6614_v51 = vpop.f32.mrb[90].mxu1 }
 0x1b1   : > { %v3864_v56 = vpop.f32.mrb[87].mxu0  ;;  %v3978_v31 = vadd.f32 %v6643_v43, %v3652_v14  ;;  %3572 = vst.msk [vmem:[#allocation2 + $0x50] sm:$0xff] %vm215_vm8, %v3540_v58  ;;  %v3650_v7 = vld [vmem:[#allocation2 + $0x20] sm:$0xff]  ;;  %v3541_v15 = vadd.f32 %v6614_v51, %v3247_v47  ;;  %v3438_v32 = vpop.f32.mrb[91].mxu1  ;;  %v3253_v43 = vld [vmem:[#allocation2 + $0x88] sm:$0xff] }
 0x1b2   : > { %v3976_v13 = vadd.f32 %v3861_v25, %v3650_v7  ;;  %3570 = vst.msk [vmem:[#allocation2 + $0x40] sm:$0xff] %vm215_vm8, %v3538_v34  ;;  %v3653_v3 = vld [vmem:[#allocation2 + $0x38] sm:$0xff]  ;;  %v3539_v10 = vadd.f32 %v3438_v32, %v3245_v61  ;;  %v3258_v34 = vld [vmem:[#allocation2 + $0xb0] sm:$0xff] }
 0x1b3   : > { %4010 = vst.msk [vmem:[#allocation2 + $0x30] sm:$0xff] %vm215_vm8, %v3978_v31  ;;  %v3979_v30 = vadd.f32 %v6644_v1, %v3653_v3  ;;  %3573 = vst.msk [vmem:[#allocation2 + $0x58] sm:$0xff] %vm215_vm8, %v3541_v15  ;;  %v3651_v38 = vld [vmem:[#allocation2 + $0x28] sm:$0xff]  ;;  %v3256_v31 = vld [vmem:[#allocation2 + $0xa0] sm:$0xff] }
 0x1b4   : > { %4008 = vst.msk [vmem:[#allocation2 + $0x20] sm:$0xff] %vm215_vm8, %v3976_v13  ;;  %v3977_v46 = vadd.f32 %v3864_v56, %v3651_v38  ;;  %3571 = vst.msk [vmem:[#allocation2 + $0x48] sm:$0xff] %vm215_vm8, %v3539_v10  ;;  %v3259_v13 = vld [vmem:[#allocation2 + $0xb8] sm:$0xff] }
 0x1b5   : > { %4011 = vst.msk [vmem:[#allocation2 + $0x38] sm:$0xff] %vm215_vm8, %v3979_v30 }
 0x1b6   : > { %v6647_v19 = vpop.f32.mrb[88].mxu0  ;;  %4009 = vst.msk [vmem:[#allocation2 + $0x28] sm:$0xff] %vm215_vm8, %v3977_v46  ;;  %v6617_v55 = vpop.f32.mrb[92].mxu1 }
 0x1b7   : > { %v3877_v8 = vpop.f32.mrb[89].mxu0  ;;  %v3544_v54 = vadd.f32 %v6617_v55, %v3250_v24  ;;  %v3451_v63 = vpop.f32.mrb[93].mxu1 }
 0x1b8   : > { %v6648_v57 = vpop.f32.mrb[90].mxu0  ;;  %v3656_v41 = vld [vmem:[#allocation2 + $0x50] sm:$0xff]  ;;  %v3542_v0 = vadd.f32 %v3451_v63, %v3248_v33  ;;  %v6618_v49 = vpop.f32.mrb[94].mxu1 }
 0x1b9   : > { %v3880_v39 = vpop.f32.mrb[91].mxu0  ;;  %v3982_v2 = vadd.f32 %v6647_v19, %v3656_v41  ;;  %3576 = vst.msk [vmem:[#allocation2 + $0x70] sm:$0xff] %vm215_vm8, %v3544_v54  ;;  %v3654_v26 = vld [vmem:[#allocation2 + $0x40] sm:$0xff]  ;;  %v3545_v6 = vadd.f32 %v6618_v49, %v3251_v21  ;;  %v3454_v16 = vpop.f32.mrb[95].mxu1  ;;  %v3257_v19 = vld [vmem:[#allocation2 + $0xa8] sm:$0xff] }
 0x1ba   : > { %v3980_v62 = vadd.f32 %v3877_v8, %v3654_v26  ;;  %3574 = vst.msk [vmem:[#allocation2 + $0x60] sm:$0xff] %vm215_vm8, %v3542_v0  ;;  %v3657_v42 = vld [vmem:[#allocation2 + $0x58] sm:$0xff]  ;;  %v3543_v22 = vadd.f32 %v3454_v16, %v3249_v59  ;;  %v3262_v0 = vld [vmem:[#allocation2 + $0xd0] sm:$0xff] }
 0x1bb   : > { %4014 = vst.msk [vmem:[#allocation2 + $0x50] sm:$0xff] %vm215_vm8, %v3982_v2  ;;  %v3983_v5 = vadd.f32 %v6648_v57, %v3657_v42  ;;  %3577 = vst.msk [vmem:[#allocation2 + $0x78] sm:$0xff] %vm215_vm8, %v3545_v6  ;;  %v3655_v40 = vld [vmem:[#allocation2 + $0x48] sm:$0xff]  ;;  %v3260_v2 = vld [vmem:[#allocation2 + $0xc0] sm:$0xff] }
 0x1bc   : > { %4012 = vst.msk [vmem:[#allocation2 + $0x40] sm:$0xff] %vm215_vm8, %v3980_v62  ;;  %v3981_v11 = vadd.f32 %v3880_v39, %v3655_v40  ;;  %3575 = vst.msk [vmem:[#allocation2 + $0x68] sm:$0xff] %vm215_vm8, %v3543_v22  ;;  %v3263_v62 = vld [vmem:[#allocation2 + $0xd8] sm:$0xff] }
 0x1bd   : > { %4015 = vst.msk [vmem:[#allocation2 + $0x58] sm:$0xff] %vm215_vm8, %v3983_v5 }
 0x1be   : > { %v6651_v50 = vpop.f32.mrb[92].mxu0  ;;  %4013 = vst.msk [vmem:[#allocation2 + $0x48] sm:$0xff] %vm215_vm8, %v3981_v11  ;;  %v6621_v18 = vpop.f32.mrb[96].mxu1 }
 0x1bf   : > { %v3893_v17 = vpop.f32.mrb[93].mxu0  ;;  %v3548_v9 = vadd.f32 %v6621_v18, %v3254_v27  ;;  %v3467_v23 = vpop.f32.mrb[97].mxu1 }
 0x1c0   : > { %v6652_v29 = vpop.f32.mrb[94].mxu0  ;;  %v3660_v44 = vld [vmem:[#allocation2 + $0x70] sm:$0xff]  ;;  %v3546_v36 = vadd.f32 %v3467_v23, %v3252_v37  ;;  %v6622_v53 = vpop.f32.mrb[98].mxu1 }
 0x1c1   : > { %v3896_v20 = vpop.f32.mrb[95].mxu0  ;;  %v3986_v4 = vadd.f32 %v6651_v50, %v3660_v44  ;;  %3580 = vst.msk [vmem:[#allocation2 + $0x90] sm:$0xff] %vm215_vm8, %v3548_v9  ;;  %v3658_v12 = vld [vmem:[#allocation2 + $0x60] sm:$0xff]  ;;  %v3549_v45 = vadd.f32 %v6622_v53, %v3255_v48  ;;  %v3470_v60 = vpop.f32.mrb[99].mxu1  ;;  %v3261_v50 = vld [vmem:[#allocation2 + $0xc8] sm:$0xff] }
 0x1c2   : > { %v3984_v35 = vadd.f32 %v3893_v17, %v3658_v12  ;;  %3578 = vst.msk [vmem:[#allocation2 + $0x80] sm:$0xff] %vm215_vm8, %v3546_v36  ;;  %v3661_v25 = vld [vmem:[#allocation2 + $0x78] sm:$0xff]  ;;  %v3547_v58 = vadd.f32 %v3470_v60, %v3253_v43  ;;  %v3266_v36 = vld [vmem:[#allocation2 + $0xf0] sm:$0xff] }
 0x1c3   : > { %4018 = vst.msk [vmem:[#allocation2 + $0x70] sm:$0xff] %vm215_vm8, %v3986_v4  ;;  %v3987_v28 = vadd.f32 %v6652_v29, %v3661_v25  ;;  %3581 = vst.msk [vmem:[#allocation2 + $0x98] sm:$0xff] %vm215_vm8, %v3549_v45  ;;  %v3659_v52 = vld [vmem:[#allocation2 + $0x68] sm:$0xff]  ;;  %v3264_v4 = vld [vmem:[#allocation2 + $0xe0] sm:$0xff] }
 0x1c4   : > { %4016 = vst.msk [vmem:[#allocation2 + $0x60] sm:$0xff] %vm215_vm8, %v3984_v35  ;;  %v3985_v1 = vadd.f32 %v3896_v20, %v3659_v52  ;;  %3579 = vst.msk [vmem:[#allocation2 + $0x88] sm:$0xff] %vm215_vm8, %v3547_v58  ;;  %v3267_v35 = vld [vmem:[#allocation2 + $0xf8] sm:$0xff] }
 0x1c5   : > { %4019 = vst.msk [vmem:[#allocation2 + $0x78] sm:$0xff] %vm215_vm8, %v3987_v28 }
 0x1c6   : > { %v6655_v14 = vpop.f32.mrb[96].mxu0  ;;  %4017 = vst.msk [vmem:[#allocation2 + $0x68] sm:$0xff] %vm215_vm8, %v3985_v1  ;;  %v6625_v47 = vpop.f32.mrb[100].mxu1 }
 0x1c7   : > { %v3909_v51 = vpop.f32.mrb[97].mxu0  ;;  %v3552_v56 = vadd.f32 %v6625_v47, %v3258_v34  ;;  %v3483_v7 = vpop.f32.mrb[101].mxu1 }
 0x1c8   : > { %v6656_v15 = vpop.f32.mrb[98].mxu0  ;;  %v3664_v61 = vld [vmem:[#allocation2 + $0x90] sm:$0xff]  ;;  %v3550_v32 = vadd.f32 %v3483_v7, %v3256_v31  ;;  %v6626_v3 = vpop.f32.mrb[102].mxu1 }
 0x1c9   : > { %v3912_v10 = vpop.f32.mrb[99].mxu0  ;;  %v3990_v30 = vadd.f32 %v6655_v14, %v3664_v61  ;;  %3584 = vst.msk [vmem:[#allocation2 + $0xb0] sm:$0xff] %vm215_vm8, %v3552_v56  ;;  %v3662_v38 = vld [vmem:[#allocation2 + $0x80] sm:$0xff]  ;;  %v3553_v46 = vadd.f32 %v6626_v3, %v3259_v13  ;;  %v3486_v24 = vpop.f32.mrb[103].mxu1  ;;  %v3265_v14 = vld [vmem:[#allocation2 + $0xe8] sm:$0xff]  ;;  %v4422_v13 = vld [vmem:[#allocation2 + $0x10] sm:$0xff] }
 0x1ca   : > { %v3988_v55 = vadd.f32 %v3909_v51, %v3662_v38  ;;  %3582 = vst.msk [vmem:[#allocation2 + $0xa0] sm:$0xff] %vm215_vm8, %v3550_v32  ;;  %v3665_v8 = vld [vmem:[#allocation2 + $0x98] sm:$0xff]  ;;  %v3551_v54 = vadd.f32 %v3486_v24, %v3257_v19  ;;  %v4420_v38 = vld [vmem:[#allocation2] sm:$0xff] }
 0x1cb   : > { %4022 = vst.msk [vmem:[#allocation2 + $0x90] sm:$0xff] %vm215_vm8, %v3990_v30  ;;  %v3991_v33 = vadd.f32 %v6656_v15, %v3665_v8  ;;  %3585 = vst.msk [vmem:[#allocation2 + $0xb8] sm:$0xff] %vm215_vm8, %v3553_v46  ;;  %v3663_v63 = vld [vmem:[#allocation2 + $0x88] sm:$0xff]  ;;  %v4423_v8 = vld [vmem:[#allocation2 + $0x18] sm:$0xff] }
 0x1cc   : > { %4020 = vst.msk [vmem:[#allocation2 + $0x80] sm:$0xff] %vm215_vm8, %v3988_v55  ;;  %v3989_v57 = vadd.f32 %v3912_v10, %v3663_v63  ;;  %3583 = vst.msk [vmem:[#allocation2 + $0xa8] sm:$0xff] %vm215_vm8, %v3551_v54 }
 0x1cd   : > { %4023 = vst.msk [vmem:[#allocation2 + $0x98] sm:$0xff] %vm215_vm8, %v3991_v33 }
 0x1ce   : > { %v6659_v41 = vpop.f32.mrb[100].mxu0  ;;  %4021 = vst.msk [vmem:[#allocation2 + $0x88] sm:$0xff] %vm215_vm8, %v3989_v57  ;;  %v6629_v21 = vpop.f32.mrb[104].mxu1 }
 0x1cf   : > { %v3925_v49 = vpop.f32.mrb[101].mxu0  ;;  %v3556_v39 = vadd.f32 %v6629_v21, %v3262_v0  ;;  %v3499_v26 = vpop.f32.mrb[105].mxu1 }
 0x1d0   : > { %v6660_v6 = vpop.f32.mrb[102].mxu0  ;;  %v3668_v59 = vld [vmem:[#allocation2 + $0xb0] sm:$0xff]  ;;  %v3554_v16 = vadd.f32 %v3499_v26, %v3260_v2  ;;  %v6630_v42 = vpop.f32.mrb[106].mxu1 }
 0x1d1   : > { %v3928_v22 = vpop.f32.mrb[103].mxu0  ;;  %v3994_v5 = vadd.f32 %v6659_v41, %v3668_v59  ;;  %3588 = vst.msk [vmem:[#allocation2 + $0xd0] sm:$0xff] %vm215_vm8, %v3556_v39  ;;  %v3666_v40 = vld [vmem:[#allocation2 + $0xa0] sm:$0xff]  ;;  %v3557_v11 = vadd.f32 %v6630_v42, %v3263_v62  ;;  %v3502_v27 = vpop.f32.mrb[107].mxu1  ;;  %v4421_v41 = vld [vmem:[#allocation2 + $0x8] sm:$0xff] }
 0x1d2   : > { %v3992_v18 = vadd.f32 %v3925_v49, %v3666_v40  ;;  %3586 = vst.msk [vmem:[#allocation2 + $0xc0] sm:$0xff] %vm215_vm8, %v3554_v16  ;;  %v3669_v17 = vld [vmem:[#allocation2 + $0xb8] sm:$0xff]  ;;  %v3555_v9 = vadd.f32 %v3502_v27, %v3261_v50  ;;  %v4426_v16 = vld [vmem:[#allocation2 + $0x30] sm:$0xff] }
 0x1d3   : > { %4026 = vst.msk [vmem:[#allocation2 + $0xb0] sm:$0xff] %vm215_vm8, %v3994_v5  ;;  %v3995_v37 = vadd.f32 %v6660_v6, %v3669_v17  ;;  %3589 = vst.msk [vmem:[#allocation2 + $0xd8] sm:$0xff] %vm215_vm8, %v3557_v11  ;;  %v3667_v23 = vld [vmem:[#allocation2 + $0xa8] sm:$0xff]  ;;  %v4424_v5 = vld [vmem:[#allocation2 + $0x20] sm:$0xff] }
 0x1d4   : > { %4024 = vst.msk [vmem:[#allocation2 + $0xa0] sm:$0xff] %vm215_vm8, %v3992_v18  ;;  %v3993_v29 = vadd.f32 %v3928_v22, %v3667_v23  ;;  %3587 = vst.msk [vmem:[#allocation2 + $0xc8] sm:$0xff] %vm215_vm8, %v3555_v9  ;;  %v4427_v18 = vld [vmem:[#allocation2 + $0x38] sm:$0xff] }
 0x1d5   : > { %4027 = vst.msk [vmem:[#allocation2 + $0xb8] sm:$0xff] %vm215_vm8, %v3995_v37 }
 0x1d6   : > { %4025 = vst.msk [vmem:[#allocation2 + $0xa8] sm:$0xff] %vm215_vm8, %v3993_v29 }
 0x1d7   : > { %v6663_v44 = vpop.f32.mrb[104].mxu0 }
 0x1d8   : > { %v6633_v48 = vpop.f32.mrb[108].mxu1  ;;  %v3941_v53 = vpop.f32.mrb[105].mxu0  ;;  %v3672_v43 = vld [vmem:[#allocation2 + $0xd0] sm:$0xff] }
 0x1d9   : > { %v3560_v20 = vadd.f32 %v6633_v48, %v3266_v36  ;;  %v3515_v12 = vpop.f32.mrb[109].mxu1  ;;  %v6664_v45 = vpop.f32.mrb[106].mxu0  ;;  %v3998_v28 = vadd.f32 %v6663_v44, %v3672_v43  ;;  %v3670_v52 = vld [vmem:[#allocation2 + $0xc0] sm:$0xff]  ;;  %v4425_v44 = vld [vmem:[#allocation2 + $0x28] sm:$0xff] }
 0x1da   : > { %v3558_v60 = vadd.f32 %v3515_v12, %v3264_v4  ;;  %v6634_v25 = vpop.f32.mrb[110].mxu1  ;;  %v3944_v58 = vpop.f32.mrb[107].mxu0  ;;  %v3996_v47 = vadd.f32 %v3941_v53, %v3670_v52  ;;  %v3673_v51 = vld [vmem:[#allocation2 + $0xd8] sm:$0xff] }
 0x1db   : > { %3592 = vst.msk [vmem:[#allocation2 + $0xf0] sm:$0xff] %vm215_vm8, %v3560_v20  ;;  %v3561_v1 = vadd.f32 %v6634_v25, %v3267_v35  ;;  %v3518_v34 = vpop.f32.mrb[111].mxu1  ;;  %4030 = vst.msk [vmem:[#allocation2 + $0xd0] sm:$0xff] %vm215_vm8, %v3998_v28  ;;  %v3999_v31 = vadd.f32 %v6664_v45, %v3673_v51  ;;  %v3671_v7 = vld [vmem:[#allocation2 + $0xc8] sm:$0xff]  ;;  %v4428_v28 = vld [vmem:[#allocation2 + $0x40] sm:$0xff] }
 0x1dc   : > { %3590 = vst.msk [vmem:[#allocation2 + $0xe0] sm:$0xff] %vm215_vm8, %v3558_v60  ;;  %v3559_v56 = vadd.f32 %v3518_v34, %v3265_v14  ;;  %4028 = vst.msk [vmem:[#allocation2 + $0xc0] sm:$0xff] %vm215_vm8, %v3996_v47  ;;  %v3997_v15 = vadd.f32 %v3944_v58, %v3671_v7  ;;  %v4430_v60 = vld [vmem:[#allocation2 + $0x50] sm:$0xff]  ;;  %v4431_v47 = vld [vmem:[#allocation2 + $0x58] sm:$0xff] }
 0x1dd   : > { %3593 = vst.msk [vmem:[#allocation2 + $0xf8] sm:$0xff] %vm215_vm8, %v3561_v1  ;;  %4031 = vst.msk [vmem:[#allocation2 + $0xd8] sm:$0xff] %vm215_vm8, %v3999_v31 }
 0x1de   : > { %3591 = vst.msk [vmem:[#allocation2 + $0xe8] sm:$0xff] %vm215_vm8, %v3559_v56  ;;  %4029 = vst.msk [vmem:[#allocation2 + $0xc8] sm:$0xff] %vm215_vm8, %v3997_v15 }
 0x1e0   : > { %v6673_v3 = vpop.f32.mrb[112].mxu1 }
 0x1e1   : > { %v6667_v61 = vpop.f32.mrb[108].mxu0  ;;  %v4716_v10 = vadd.f32 %v6673_v3, %v4422_v13  ;;  %v4587_v46 = vpop.f32.mrb[113].mxu1 }
 0x1e2   : > { %v3957_v32 = vpop.f32.mrb[109].mxu0  ;;  %v3676_v19 = vld [vmem:[#allocation2 + $0xf0] sm:$0xff]  ;;  %v4714_v24 = vadd.f32 %v4587_v46, %v4420_v38  ;;  %v6674_v54 = vpop.f32.mrb[114].mxu1 }
 0x1e3   : > { %v6668_v30 = vpop.f32.mrb[110].mxu0  ;;  %v4002_v33 = vadd.f32 %v6667_v61, %v3676_v19  ;;  %v3674_v63 = vld [vmem:[#allocation2 + $0xe0] sm:$0xff]  ;;  %4748 = vst.msk [vmem:[#allocation2 + $0x10] sm:$0xff] %vm215_vm8, %v4716_v10  ;;  %v4717_v57 = vadd.f32 %v6674_v54, %v4423_v8  ;;  %v4590_v0 = vpop.f32.mrb[115].mxu1  ;;  %v4429_v61 = vld [vmem:[#allocation2 + $0x48] sm:$0xff] }
 0x1e4   : > { %v3960_v55 = vpop.f32.mrb[111].mxu0  ;;  %v4000_v21 = vadd.f32 %v3957_v32, %v3674_v63  ;;  %v3677_v49 = vld [vmem:[#allocation2 + $0xf8] sm:$0xff]  ;;  %4746 = vst.msk [vmem:[#allocation2] sm:$0xff] %vm215_vm8, %v4714_v24  ;;  %v4715_v39 = vadd.f32 %v4590_v0, %v4421_v41 }
 0x1e5   : > { %4034 = vst.msk [vmem:[#allocation2 + $0xf0] sm:$0xff] %vm215_vm8, %v4002_v33  ;;  %v4003_v2 = vadd.f32 %v6668_v30, %v3677_v49  ;;  %v3675_v26 = vld [vmem:[#allocation2 + $0xe8] sm:$0xff]  ;;  %4749 = vst.msk [vmem:[#allocation2 + $0x18] sm:$0xff] %vm215_vm8, %v4717_v57 }
 0x1e6   : > { %4032 = vst.msk [vmem:[#allocation2 + $0xe0] sm:$0xff] %vm215_vm8, %v4000_v21  ;;  %v4001_v6 = vadd.f32 %v3960_v55, %v3675_v26  ;;  %4747 = vst.msk [vmem:[#allocation2 + $0x8] sm:$0xff] %vm215_vm8, %v4715_v39 }
 0x1e7   : > { %4035 = vst.msk [vmem:[#allocation2 + $0xf8] sm:$0xff] %vm215_vm8, %v4003_v2 }
 0x1e8   : > { %4033 = vst.msk [vmem:[#allocation2 + $0xe8] sm:$0xff] %vm215_vm8, %v4001_v6  ;;  %v6677_v62 = vpop.f32.mrb[116].mxu1 }
 0x1e9   : > { %v6707_v59 = vpop.f32.mrb[112].mxu0  ;;  %v4720_v22 = vadd.f32 %v6677_v62, %v4426_v16  ;;  %v4603_v40 = vpop.f32.mrb[117].mxu1 }
 0x1ea   : > { %v5073_v42 = vpop.f32.mrb[113].mxu0  ;;  %v4908_v50 = vld [vmem:[#allocation2 + $0x10] sm:$0xff]  ;;  %v4718_v27 = vadd.f32 %v4603_v40, %v4424_v5  ;;  %v6678_v17 = vpop.f32.mrb[118].mxu1 }
 0x1eb   : > { %v6708_v11 = vpop.f32.mrb[114].mxu0  ;;  %v5202_v37 = vadd.f32 %v6707_v59, %v4908_v50  ;;  %4752 = vst.msk [vmem:[#allocation2 + $0x30] sm:$0xff] %vm215_vm8, %v4720_v22  ;;  %v4906_v23 = vld [vmem:[#allocation2] sm:$0xff]  ;;  %v4721_v29 = vadd.f32 %v6678_v17, %v4427_v18  ;;  %v4606_v36 = vpop.f32.mrb[119].mxu1 }
 0x1ec   : > { %v5076_v9 = vpop.f32.mrb[115].mxu0  ;;  %v5200_v48 = vadd.f32 %v5073_v42, %v4906_v23  ;;  %4750 = vst.msk [vmem:[#allocation2 + $0x20] sm:$0xff] %vm215_vm8, %v4718_v27  ;;  %v4909_v53 = vld [vmem:[#allocation2 + $0x18] sm:$0xff]  ;;  %v4719_v20 = vadd.f32 %v4606_v36, %v4425_v44 }
 0x1ed   : > { %5234 = vst.msk [vmem:[#allocation2 + $0x10] sm:$0xff] %vm215_vm8, %v5202_v37  ;;  %v5203_v4 = vadd.f32 %v6708_v11, %v4909_v53  ;;  %4753 = vst.msk [vmem:[#allocation2 + $0x38] sm:$0xff] %vm215_vm8, %v4721_v29  ;;  %v4907_v12 = vld [vmem:[#allocation2 + $0x8] sm:$0xff] }
 0x1ee   : > { %5232 = vst.msk [vmem:[#allocation2] sm:$0xff] %vm215_vm8, %v5200_v48  ;;  %v5201_v45 = vadd.f32 %v5076_v9, %v4907_v12  ;;  %4751 = vst.msk [vmem:[#allocation2 + $0x28] sm:$0xff] %vm215_vm8, %v4719_v20 }
 0x1ef   : > { %5235 = vst.msk [vmem:[#allocation2 + $0x18] sm:$0xff] %vm215_vm8, %v5203_v4 }
 0x1f0   : > { %5233 = vst.msk [vmem:[#allocation2 + $0x8] sm:$0xff] %vm215_vm8, %v5201_v45  ;;  %v6681_v35 = vpop.f32.mrb[120].mxu1 }
 0x1f1   : > { %v6711_v43 = vpop.f32.mrb[116].mxu0  ;;  %v4724_v58 = vadd.f32 %v6681_v35, %v4430_v60  ;;  %v4619_v52 = vpop.f32.mrb[121].mxu1 }
 0x1f2   : > { %v5089_v25 = vpop.f32.mrb[117].mxu0  ;;  %v4912_v14 = vld [vmem:[#allocation2 + $0x30] sm:$0xff]  ;;  %v4722_v34 = vadd.f32 %v4619_v52, %v4428_v28  ;;  %v6682_v51 = vpop.f32.mrb[122].mxu1 }
 0x1f3   : > { %v6712_v1 = vpop.f32.mrb[118].mxu0  ;;  %v5206_v31 = vadd.f32 %v6711_v43, %v4912_v14  ;;  %4756 = vst.msk [vmem:[#allocation2 + $0x50] sm:$0xff] %vm215_vm8, %v4724_v58  ;;  %v4910_v7 = vld [vmem:[#allocation2 + $0x20] sm:$0xff]  ;;  %v4725_v15 = vadd.f32 %v6682_v51, %v4431_v47  ;;  %v4622_v32 = vpop.f32.mrb[123].mxu1 }
 0x1f4   : > { %v5092_v56 = vpop.f32.mrb[119].mxu0  ;;  %v5266_v13 = vld [vmem:[#allocation2 + $0x10] sm:$0xff]  ;;  %v5204_v3 = vadd.f32 %v5089_v25, %v4910_v7  ;;  %4754 = vst.msk [vmem:[#allocation2 + $0x40] sm:$0xff] %vm215_vm8, %v4722_v34  ;;  %v4913_v10 = vld [vmem:[#allocation2 + $0x38] sm:$0xff]  ;;  %v4723_v30 = vadd.f32 %v4622_v32, %v4429_v61 }
 0x1f5   : > { %v6248_v38 = vpack.c.bf16 %v5266_v13, %v5266_v13  ;;  %v5264_v46 = vld [vmem:[#allocation2] sm:$0xff]  ;;  %5238 = vst.msk [vmem:[#allocation2 + $0x30] sm:$0xff] %vm215_vm8, %v5206_v31  ;;  %v5207_v19 = vadd.f32 %v6712_v1, %v4913_v10  ;;  %4757 = vst.msk [vmem:[#allocation2 + $0x58] sm:$0xff] %vm215_vm8, %v4725_v15  ;;  %v4911_v24 = vld [vmem:[#allocation2 + $0x28] sm:$0xff]  ;;  %v5530_v63 = vmul.f32 %v5266_v13, %v5266_v13  ;;  %v5460_v62 = vsel %vm215_vm8, %v5266_v13, 0.0 }
 0x1f6   : > { %v6246_v55 = vpack.c.bf16 %v5264_v46, %v5264_v46  ;;  %v5528_v8 = vmul.f32 %v5264_v46, %v5264_v46  ;;  %v5267_v54 = vld [vmem:[#allocation2 + $0x18] sm:$0xff]  ;;  %5236 = vst.msk [vmem:[#allocation2 + $0x20] sm:$0xff] %vm215_vm8, %v5204_v3  ;;  %v5205_v33 = vadd.f32 %v5092_v56, %v4911_v24  ;;  %4755 = vst.msk [vmem:[#allocation2 + $0x48] sm:$0xff] %vm215_vm8, %v4723_v30  ;;  %v5457_v21 = vsel %vm215_vm8, %v5264_v46, 0.0  ;;  %v4434_v31 = vld [vmem:[#allocation2 + $0x70] sm:$0xff] }
 0x1f7   : > { %5427 = vst.msk [vmem:[%s9210_s18 + $0x8] sm:$0xf] %vm5424_vm9, %v6248_v38  ;;  %v6249_v57 = vpack.c.bf16 %v5267_v54, %v5267_v54  ;;  %v5265_v41 = vld [vmem:[#allocation2 + $0x8] sm:$0xff]  ;;  %v5531_v6 = vmul.f32 %v5267_v54, %v5267_v54  ;;  %v5563_v17 = vsel %vm215_vm8, %v5530_v63, 0.0  ;;  %v5462_v29 = vsel %vm215_vm8, %v5267_v54, 0.0  ;;  %v4432_v3 = vld [vmem:[#allocation2 + $0x60] sm:$0xff] }
 0x1f8   : > { %5239 = vst.msk [vmem:[#allocation2 + $0x38] sm:$0xff] %vm215_vm8, %v5207_v19  ;;  %v6247_v49 = vpack.c.bf16 %v5265_v41, %v5265_v41  ;;  %v5458_v39 = vsel %vm215_vm8, %v5265_v41, 0.0  ;;  %v5529_v2 = vmul.f32 %v5265_v41, %v5265_v41  ;;  %5237 = vst.msk [vmem:[#allocation2 + $0x28] sm:$0xff] %vm215_vm8, %v5205_v33  ;;  %v5560_v42 = vsel %vm215_vm8, %v5528_v8, 0.0  ;;  %v4435_v19 = vld [vmem:[#allocation2 + $0x78] sm:$0xff]  ;;  %v4433_v24 = vld [vmem:[#allocation2 + $0x68] sm:$0xff] }
 0x1f9   : > { %v6715_v0 = vpop.f32.mrb[120].mxu0  ;;  %5425 = vst.msk [vmem:[%s9210_s18] sm:$0xf] %vm5424_vm9, %v6246_v55  ;;  %5428 = vst.msk [vmem:[%s9210_s18 + $0xc] sm:$0xf] %vm5424_vm9, %v6249_v57  ;;  %v5459_v59 = vadd.f32 %v5458_v39, %v5457_v21  ;;  %v5565_v44 = vsel %vm215_vm8, %v5531_v6, 0.0 }
 0x1fa   : > { %v5105_v26 = vpop.f32.mrb[121].mxu0  ;;  %5426 = vst.msk [vmem:[%s9210_s18 + $0x4] sm:$0xf] %vm5424_vm9, %v6247_v49  ;;  %v5561_v22 = vsel %vm215_vm8, %v5529_v2, 0.0  ;;  %v4916_v5 = vld [vmem:[#allocation2 + $0x50] sm:$0xff] }
 0x1fb   : > { %v6716_v16 = vpop.f32.mrb[122].mxu0  ;;  %v5461_v11 = vadd.f32 %v5460_v62, %v5459_v59  ;;  %v5562_v50 = vadd.f32 %v5561_v22, %v5560_v42  ;;  %v5210_v27 = vadd.f32 %v6715_v0, %v4916_v5  ;;  %v4914_v18 = vld [vmem:[#allocation2 + $0x40] sm:$0xff] }
 0x1fc   : > { %v5108_v40 = vpop.f32.mrb[123].mxu0  ;;  %v5270_v9 = vld [vmem:[#allocation2 + $0x30] sm:$0xff]  ;;  %v5208_v23 = vadd.f32 %v5105_v26, %v4914_v18  ;;  %v4917_v1 = vld [vmem:[#allocation2 + $0x58] sm:$0xff] }
 0x1fd   : > { %v5564_v36 = vadd.f32 %v5563_v17, %v5562_v50  ;;  %v6252_v48 = vpack.c.bf16 %v5270_v9, %v5270_v9  ;;  %v5268_v53 = vld [vmem:[#allocation2 + $0x20] sm:$0xff]  ;;  %5242 = vst.msk [vmem:[#allocation2 + $0x50] sm:$0xff] %vm215_vm8, %v5210_v27  ;;  %v5463_v12 = vadd.f32 %v5462_v29, %v5461_v11  ;;  %v5468_v25 = vsel %vm215_vm8, %v5270_v9, 0.0  ;;  %v4915_v7 = vld [vmem:[#allocation2 + $0x48] sm:$0xff]  ;;  %v4438_v50 = vld [vmem:[#allocation2 + $0x90] sm:$0xff] }
 0x1fe   : > { %v6250_v4 = vpack.c.bf16 %v5268_v53, %v5268_v53  ;;  %v5464_v45 = vsel %vm215_vm8, %v5268_v53, 0.0  ;;  %v5532_v43 = vmul.f32 %v5268_v53, %v5268_v53  ;;  %5240 = vst.msk [vmem:[#allocation2 + $0x40] sm:$0xff] %vm215_vm8, %v5208_v23  ;;  %v5534_v34 = vmul.f32 %v5270_v9, %v5270_v9  ;;  %v4436_v9 = vld [vmem:[#allocation2 + $0x80] sm:$0xff] }
 0x1ff   : > { %v5271_v60 = vld [vmem:[#allocation2 + $0x38] sm:$0xff]  ;;  %5431 = vst.msk [vmem:[%s9210_s18 + $0x18] sm:$0xf] %vm5424_vm9, %v6252_v48  ;;  %v5566_v58 = vadd.f32 %v5565_v44, %v5564_v36  ;;  %v5269_v52 = vld [vmem:[#allocation2 + $0x28] sm:$0xff]  ;;  %v5465_v47 = vadd.f32 %v5464_v45, %v5463_v12  ;;  %v5211_v46 = vadd.f32 %v6716_v16, %v4917_v1  ;;  %v5209_v33 = vadd.f32 %v5108_v40, %v4915_v7 }
 0x200   : > { %v6685_v37 = vpop.f32.mrb[124].mxu1  ;;  %v6253_v28 = vpack.c.bf16 %v5271_v60, %v5271_v60  ;;  %5429 = vst.msk [vmem:[%s9210_s18 + $0x10] sm:$0xf] %vm5424_vm9, %v6250_v4  ;;  %v5567_v51 = vsel %vm215_vm8, %v5532_v43, 0.0  ;;  %v6251_v56 = vpack.c.bf16 %v5269_v52, %v5269_v52  ;;  %v5466_v61 = vsel %vm215_vm8, %v5269_v52, 0.0  ;;  %v4439_v36 = vld [vmem:[#allocation2 + $0x98] sm:$0xff] }
 0x201   : > { %v4635_v20 = vpop.f32.mrb[125].mxu1  ;;  %v5568_v15 = vadd.f32 %v5567_v51, %v5566_v58  ;;  %v5533_v32 = vmul.f32 %v5269_v52, %v5269_v52  ;;  %v4728_v13 = vadd.f32 %v6685_v37, %v4434_v31  ;;  %v5535_v10 = vmul.f32 %v5271_v60, %v5271_v60  ;;  %5243 = vst.msk [vmem:[#allocation2 + $0x58] sm:$0xff] %vm215_vm8, %v5211_v46  ;;  %v4437_v51 = vld [vmem:[#allocation2 + $0x88] sm:$0xff] }
 0x202   : > { %v6686_v35 = vpop.f32.mrb[126].mxu1  ;;  %5432 = vst.msk [vmem:[%s9210_s18 + $0x1c] sm:$0xf] %vm5424_vm9, %v6253_v28  ;;  %5430 = vst.msk [vmem:[%s9210_s18 + $0x14] sm:$0xf] %vm5424_vm9, %v6251_v56  ;;  %v5467_v30 = vadd.f32 %v5466_v61, %v5465_v47  ;;  %v4726_v38 = vadd.f32 %v4635_v20, %v4432_v3  ;;  %v5571_v39 = vsel %vm215_vm8, %v5534_v34, 0.0 }
 0x203   : > { %v4638_v14 = vpop.f32.mrb[127].mxu1  ;;  %v5569_v8 = vsel %vm215_vm8, %v5533_v32, 0.0  ;;  %4760 = vst.msk [vmem:[#allocation2 + $0x70] sm:$0xff] %vm215_vm8, %v4728_v13  ;;  %v4729_v54 = vadd.f32 %v6686_v35, %v4435_v19  ;;  %v5470_v2 = vsel %vm215_vm8, %v5271_v60, 0.0  ;;  %5241 = vst.msk [vmem:[#allocation2 + $0x48] sm:$0xff] %vm215_vm8, %v5209_v33  ;;  %v5573_v22 = vsel %vm215_vm8, %v5535_v10, 0.0 }
 0x204   : > { %v4727_v63 = vadd.f32 %v4638_v14, %v4433_v24  ;;  %v5469_v41 = vadd.f32 %v5468_v25, %v5467_v30  ;;  %v5570_v0 = vadd.f32 %v5569_v8, %v5568_v15  ;;  %v5274_v21 = vld [vmem:[#allocation2 + $0x50] sm:$0xff]  ;;  %4758 = vst.msk [vmem:[#allocation2 + $0x60] sm:$0xff] %vm215_vm8, %v4726_v38 }
 0x205   : > { %v6256_v26 = vpack.c.bf16 %v5274_v21, %v5274_v21  ;;  %v5272_v6 = vld [vmem:[#allocation2 + $0x40] sm:$0xff]  ;;  %4761 = vst.msk [vmem:[#allocation2 + $0x78] sm:$0xff] %vm215_vm8, %v4729_v54  ;;  %v5538_v43 = vmul.f32 %v5274_v21, %v5274_v21  ;;  %v5476_v61 = vsel %vm215_vm8, %v5274_v21, 0.0 }
 0x206   : > { %4759 = vst.msk [vmem:[#allocation2 + $0x68] sm:$0xff] %vm215_vm8, %v4727_v63  ;;  %v5572_v16 = vadd.f32 %v5571_v39, %v5570_v0  ;;  %v6254_v62 = vpack.c.bf16 %v5272_v6, %v5272_v6  ;;  %v5471_v42 = vadd.f32 %v5470_v2, %v5469_v41  ;;  %v5472_v5 = vsel %vm215_vm8, %v5272_v6, 0.0 }
 0x207   : > { %v6719_v55 = vpop.f32.mrb[124].mxu0  ;;  %5435 = vst.msk [vmem:[%s9210_s18 + $0x28] sm:$0xf] %vm5424_vm9, %v6256_v26  ;;  %v5536_v40 = vmul.f32 %v5272_v6, %v5272_v6  ;;  %v5579_v46 = vsel %vm215_vm8, %v5538_v43, 0.0  ;;  %v4442_v26 = vld [vmem:[#allocation2 + $0xb0] sm:$0xff] }
 0x208   : > { %v5121_v57 = vpop.f32.mrb[125].mxu0  ;;  %5433 = vst.msk [vmem:[%s9210_s18 + $0x20] sm:$0xf] %vm5424_vm9, %v6254_v62  ;;  %v5574_v11 = vadd.f32 %v5573_v22, %v5572_v16  ;;  %v5473_v23 = vadd.f32 %v5472_v5, %v5471_v42  ;;  %v5275_v53 = vld [vmem:[#allocation2 + $0x58] sm:$0xff] }
 0x209   : > { %v6720_v49 = vpop.f32.mrb[126].mxu0  ;;  %v5575_v18 = vsel %vm215_vm8, %v5536_v40, 0.0  ;;  %v6257_v35 = vpack.c.bf16 %v5275_v53, %v5275_v53  ;;  %v5539_v3 = vmul.f32 %v5275_v53, %v5275_v53  ;;  %v5478_v24 = vsel %vm215_vm8, %v5275_v53, 0.0 }
 0x20a   : > { %v5124_v59 = vpop.f32.mrb[127].mxu0  ;;  %v4920_v29 = vld [vmem:[#allocation2 + $0x70] sm:$0xff]  ;;  %v5576_v60 = vadd.f32 %v5575_v18, %v5574_v11  ;;  %v5273_v25 = vld [vmem:[#allocation2 + $0x48] sm:$0xff] }
 0x20b   : > { %v5214_v20 = vadd.f32 %v6719_v55, %v4920_v29  ;;  %v4918_v4 = vld [vmem:[#allocation2 + $0x60] sm:$0xff]  ;;  %v6255_v1 = vpack.c.bf16 %v5273_v25, %v5273_v25  ;;  %v5474_v14 = vsel %vm215_vm8, %v5273_v25, 0.0  ;;  %v5537_v34 = vmul.f32 %v5273_v25, %v5273_v25  ;;  %5436 = vst.msk [vmem:[%s9210_s18 + $0x2c] sm:$0xf] %vm5424_vm9, %v6257_v35 }
 0x20c   : > { %v5212_v58 = vadd.f32 %v5121_v57, %v4918_v4  ;;  %v4921_v28 = vld [vmem:[#allocation2 + $0x78] sm:$0xff]  ;;  %v5475_v56 = vadd.f32 %v5474_v14, %v5473_v23  ;;  %v5581_v57 = vsel %vm215_vm8, %v5539_v3, 0.0 }
 0x20d   : > { %v6689_v27 = vpop.f32.mrb[128].mxu1  ;;  %v4919_v52 = vld [vmem:[#allocation2 + $0x68] sm:$0xff]  ;;  %5246 = vst.msk [vmem:[#allocation2 + $0x70] sm:$0xff] %vm215_vm8, %v5214_v20  ;;  %v5215_v47 = vadd.f32 %v6720_v49, %v4921_v28  ;;  %v5577_v32 = vsel %vm215_vm8, %v5537_v34, 0.0 }
 0x20e   : > { %v4732_v17 = vadd.f32 %v6689_v27, %v4438_v50  ;;  %v4651_v37 = vpop.f32.mrb[129].mxu1  ;;  %5244 = vst.msk [vmem:[#allocation2 + $0x60] sm:$0xff] %vm215_vm8, %v5212_v58  ;;  %v5213_v31 = vadd.f32 %v5124_v59, %v4919_v52  ;;  %v5477_v10 = vadd.f32 %v5476_v61, %v5475_v56  ;;  %v5578_v30 = vadd.f32 %v5577_v32, %v5576_v60 }
 0x20f   : > { %v4730_v44 = vadd.f32 %v4651_v37, %v4436_v9  ;;  %v6690_v48 = vpop.f32.mrb[130].mxu1  ;;  %5434 = vst.msk [vmem:[%s9210_s18 + $0x24] sm:$0xf] %vm5424_vm9, %v6255_v1 }
 0x210   : > { %4764 = vst.msk [vmem:[#allocation2 + $0x90] sm:$0xff] %vm215_vm8, %v4732_v17  ;;  %v4733_v12 = vadd.f32 %v6690_v48, %v4439_v36  ;;  %v4654_v45 = vpop.f32.mrb[131].mxu1  ;;  %5247 = vst.msk [vmem:[#allocation2 + $0x78] sm:$0xff] %vm215_vm8, %v5215_v47  ;;  %v5580_v55 = vadd.f32 %v5579_v46, %v5578_v30  ;;  %v5479_v54 = vadd.f32 %v5478_v24, %v5477_v10 }
 0x211   : > { %4762 = vst.msk [vmem:[#allocation2 + $0x80] sm:$0xff] %vm215_vm8, %v4730_v44  ;;  %v4731_v7 = vadd.f32 %v4654_v45, %v4437_v51  ;;  %5245 = vst.msk [vmem:[#allocation2 + $0x68] sm:$0xff] %vm215_vm8, %v5213_v31  ;;  %v4440_v44 = vld [vmem:[#allocation2 + $0xa0] sm:$0xff]  ;;  %v4441_v45 = vld [vmem:[#allocation2 + $0xa8] sm:$0xff] }
 0x212   : > { %4765 = vst.msk [vmem:[#allocation2 + $0x98] sm:$0xff] %vm215_vm8, %v4733_v12  ;;  %v5582_v2 = vadd.f32 %v5581_v57, %v5580_v55  ;;  %v4443_v12 = vld [vmem:[#allocation2 + $0xb8] sm:$0xff] }
 0x213   : > { %4763 = vst.msk [vmem:[#allocation2 + $0x88] sm:$0xff] %vm215_vm8, %v4731_v7 }
 0x214   : > { %v6723_v15 = vpop.f32.mrb[128].mxu0  ;;  %v5278_v41 = vld [vmem:[#allocation2 + $0x70] sm:$0xff] }
 0x215   : > { %v5137_v13 = vpop.f32.mrb[129].mxu0  ;;  %v6260_v49 = vpack.c.bf16 %v5278_v41, %v5278_v41  ;;  %v5276_v39 = vld [vmem:[#allocation2 + $0x60] sm:$0xff]  ;;  %v5542_v9 = vmul.f32 %v5278_v41, %v5278_v41  ;;  %v5484_v43 = vsel %vm215_vm8, %v5278_v41, 0.0 }
 0x216   : > { %v6724_v38 = vpop.f32.mrb[130].mxu0  ;;  %v6258_v16 = vpack.c.bf16 %v5276_v39, %v5276_v39  ;;  %v5480_v62 = vsel %vm215_vm8, %v5276_v39, 0.0  ;;  %v5540_v42 = vmul.f32 %v5276_v39, %v5276_v39 }
 0x217   : > { %v5140_v19 = vpop.f32.mrb[131].mxu0  ;;  %v4924_v8 = vld [vmem:[#allocation2 + $0x90] sm:$0xff]  ;;  %v5279_v22 = vld [vmem:[#allocation2 + $0x78] sm:$0xff]  ;;  %5439 = vst.msk [vmem:[%s9210_s18 + $0x38] sm:$0xf] %vm5424_vm9, %v6260_v49  ;;  %v5481_v11 = vadd.f32 %v5480_v62, %v5479_v54  ;;  %v5587_v56 = vsel %vm215_vm8, %v5542_v9, 0.0 }
 0x218   : > { %v5218_v33 = vadd.f32 %v6723_v15, %v4924_v8  ;;  %v4922_v63 = vld [vmem:[#allocation2 + $0x80] sm:$0xff]  ;;  %v6261_v50 = vpack.c.bf16 %v5279_v22, %v5279_v22  ;;  %v5277_v27 = vld [vmem:[#allocation2 + $0x68] sm:$0xff]  ;;  %5437 = vst.msk [vmem:[%s9210_s18 + $0x30] sm:$0xf] %vm5424_vm9, %v6258_v16  ;;  %v5583_v37 = vsel %vm215_vm8, %v5540_v42, 0.0  ;;  %v5543_v58 = vmul.f32 %v5279_v22, %v5279_v22 }
 0x219   : > { %v5216_v0 = vadd.f32 %v5137_v13, %v4922_v63  ;;  %v4925_v21 = vld [vmem:[#allocation2 + $0x98] sm:$0xff]  ;;  %v6259_v23 = vpack.c.bf16 %v5277_v27, %v5277_v27  ;;  %v5482_v29 = vsel %vm215_vm8, %v5277_v27, 0.0  ;;  %v5584_v48 = vadd.f32 %v5583_v37, %v5582_v2  ;;  %v4446_v63 = vld [vmem:[#allocation2 + $0xd0] sm:$0xff] }
 0x21a   : > { %5250 = vst.msk [vmem:[#allocation2 + $0x90] sm:$0xff] %vm215_vm8, %v5218_v33  ;;  %v5219_v59 = vadd.f32 %v6724_v38, %v4925_v21  ;;  %v4923_v17 = vld [vmem:[#allocation2 + $0x88] sm:$0xff]  ;;  %v5483_v53 = vadd.f32 %v5482_v29, %v5481_v11  ;;  %v5541_v20 = vmul.f32 %v5277_v27, %v5277_v27  ;;  %v5486_v14 = vsel %vm215_vm8, %v5279_v22, 0.0  ;;  %v4444_v21 = vld [vmem:[#allocation2 + $0xc0] sm:$0xff] }
 0x21b   : > { %5248 = vst.msk [vmem:[#allocation2 + $0x80] sm:$0xff] %vm215_vm8, %v5216_v0  ;;  %v5217_v35 = vadd.f32 %v5140_v19, %v4923_v17  ;;  %v5589_v46 = vsel %vm215_vm8, %v5543_v58, 0.0  ;;  %v4445_v27 = vld [vmem:[#allocation2 + $0xc8] sm:$0xff] }
 0x21c   : > { %v6693_v6 = vpop.f32.mrb[132].mxu1  ;;  %5251 = vst.msk [vmem:[#allocation2 + $0x98] sm:$0xff] %vm215_vm8, %v5219_v59  ;;  %v5485_v28 = vadd.f32 %v5484_v43, %v5483_v53  ;;  %v5585_v52 = vsel %vm215_vm8, %v5541_v20, 0.0 }
 0x21d   : > { %v4736_v5 = vadd.f32 %v6693_v6, %v4442_v26  ;;  %v4667_v40 = vpop.f32.mrb[133].mxu1  ;;  %5440 = vst.msk [vmem:[%s9210_s18 + $0x3c] sm:$0xf] %vm5424_vm9, %v6261_v50  ;;  %5438 = vst.msk [vmem:[%s9210_s18 + $0x34] sm:$0xf] %vm5424_vm9, %v6259_v23  ;;  %v5586_v34 = vadd.f32 %v5585_v52, %v5584_v48  ;;  %v4447_v50 = vld [vmem:[#allocation2 + $0xd8] sm:$0xff] }
 0x21e   : > { %v6694_v18 = vpop.f32.mrb[134].mxu1  ;;  %v4734_v4 = vadd.f32 %v4667_v40, %v4440_v44  ;;  %5249 = vst.msk [vmem:[#allocation2 + $0x88] sm:$0xff] %vm215_vm8, %v5217_v35  ;;  %v5487_v15 = vadd.f32 %v5486_v14, %v5485_v28 }
 0x21f   : > { %4768 = vst.msk [vmem:[#allocation2 + $0xb0] sm:$0xff] %vm215_vm8, %v4736_v5  ;;  %v4670_v36 = vpop.f32.mrb[135].mxu1  ;;  %v4737_v60 = vadd.f32 %v6694_v18, %v4443_v12  ;;  %v5588_v32 = vadd.f32 %v5587_v56, %v5586_v34 }
 0x220   : > { %v4735_v25 = vadd.f32 %v4670_v36, %v4441_v45  ;;  %4766 = vst.msk [vmem:[#allocation2 + $0xa0] sm:$0xff] %vm215_vm8, %v4734_v4 }
 0x221   : > { %v5282_v47 = vld [vmem:[#allocation2 + $0x90] sm:$0xff]  ;;  %4769 = vst.msk [vmem:[#allocation2 + $0xb8] sm:$0xff] %vm215_vm8, %v4737_v60  ;;  %v5590_v55 = vadd.f32 %v5589_v46, %v5588_v32 }
 0x222   : > { %4767 = vst.msk [vmem:[#allocation2 + $0xa8] sm:$0xff] %vm215_vm8, %v4735_v25  ;;  %v6264_v31 = vpack.c.bf16 %v5282_v47, %v5282_v47  ;;  %v5280_v7 = vld [vmem:[#allocation2 + $0x80] sm:$0xff]  ;;  %v5546_v39 = vmul.f32 %v5282_v47, %v5282_v47  ;;  %v5492_v29 = vsel %vm215_vm8, %v5282_v47, 0.0 }
 0x223   : > { %v6727_v1 = vpop.f32.mrb[132].mxu0  ;;  %v6262_v13 = vpack.c.bf16 %v5280_v7, %v5280_v7  ;;  %v5488_v3 = vsel %vm215_vm8, %v5280_v7, 0.0  ;;  %v5544_v10 = vmul.f32 %v5280_v7, %v5280_v7  ;;  %v5283_v30 = vld [vmem:[#allocation2 + $0x98] sm:$0xff] }
 0x224   : > { %v5153_v51 = vpop.f32.mrb[133].mxu0  ;;  %5443 = vst.msk [vmem:[%s9210_s18 + $0x48] sm:$0xf] %vm5424_vm9, %v6264_v31  ;;  %v6265_v19 = vpack.c.bf16 %v5283_v30, %v5283_v30  ;;  %v5489_v33 = vadd.f32 %v5488_v3, %v5487_v15  ;;  %v5547_v36 = vmul.f32 %v5283_v30, %v5283_v30  ;;  %v5595_v4 = vsel %vm215_vm8, %v5546_v39, 0.0  ;;  %v4451_v39 = vld [vmem:[#allocation2 + $0xf8] sm:$0xff] }
 0x225   : > { %v6728_v61 = vpop.f32.mrb[134].mxu0  ;;  %5441 = vst.msk [vmem:[%s9210_s18 + $0x40] sm:$0xf] %vm5424_vm9, %v6262_v13  ;;  %v5591_v8 = vsel %vm215_vm8, %v5544_v10, 0.0  ;;  %v5281_v26 = vld [vmem:[#allocation2 + $0x88] sm:$0xff]  ;;  %v5494_v45 = vsel %vm215_vm8, %v5283_v30, 0.0 }
 0x226   : > { %v5156_v38 = vpop.f32.mrb[135].mxu0  ;;  %v4928_v24 = vld [vmem:[#allocation2 + $0xb0] sm:$0xff]  ;;  %5444 = vst.msk [vmem:[%s9210_s18 + $0x4c] sm:$0xf] %vm5424_vm9, %v6265_v19  ;;  %v5592_v2 = vadd.f32 %v5591_v8, %v5590_v55  ;;  %v6263_v22 = vpack.c.bf16 %v5281_v26, %v5281_v26  ;;  %v5490_v5 = vsel %vm215_vm8, %v5281_v26, 0.0  ;;  %v5545_v40 = vmul.f32 %v5281_v26, %v5281_v26 }
 0x227   : > { %v5222_v54 = vadd.f32 %v6727_v1, %v4928_v24  ;;  %v4926_v0 = vld [vmem:[#allocation2 + $0xa0] sm:$0xff]  ;;  %v5491_v17 = vadd.f32 %v5490_v5, %v5489_v33  ;;  %v5597_v52 = vsel %vm215_vm8, %v5547_v36, 0.0 }
 0x228   : > { %v5220_v6 = vadd.f32 %v5153_v51, %v4926_v0  ;;  %v4929_v16 = vld [vmem:[#allocation2 + $0xb8] sm:$0xff]  ;;  %5442 = vst.msk [vmem:[%s9210_s18 + $0x44] sm:$0xf] %vm5424_vm9, %v6263_v22  ;;  %v5593_v44 = vsel %vm215_vm8, %v5545_v40, 0.0 }
 0x229   : > { %v6697_v57 = vpop.f32.mrb[136].mxu1  ;;  %5254 = vst.msk [vmem:[#allocation2 + $0xb0] sm:$0xff] %vm215_vm8, %v5222_v54  ;;  %v4927_v42 = vld [vmem:[#allocation2 + $0xa8] sm:$0xff]  ;;  %v5223_v11 = vadd.f32 %v6728_v61, %v4929_v16  ;;  %v5493_v48 = vadd.f32 %v5492_v29, %v5491_v17  ;;  %v5594_v53 = vadd.f32 %v5593_v44, %v5592_v2  ;;  %v4450_v54 = vld [vmem:[#allocation2 + $0xf0] sm:$0xff] }
 0x22a   : > { %v4740_v41 = vadd.f32 %v6697_v57, %v4446_v63  ;;  %v4683_v49 = vpop.f32.mrb[137].mxu1  ;;  %5252 = vst.msk [vmem:[#allocation2 + $0xa0] sm:$0xff] %vm215_vm8, %v5220_v6  ;;  %v5221_v37 = vadd.f32 %v5156_v38, %v4927_v42 }
 0x22b   : > { %v4738_v59 = vadd.f32 %v4683_v49, %v4444_v21  ;;  %v6698_v62 = vpop.f32.mrb[138].mxu1  ;;  %5255 = vst.msk [vmem:[#allocation2 + $0xb8] sm:$0xff] %vm215_vm8, %v5223_v11  ;;  %v5596_v43 = vadd.f32 %v5595_v4, %v5594_v53  ;;  %v5495_v58 = vadd.f32 %v5494_v45, %v5493_v48  ;;  %v4448_v49 = vld [vmem:[#allocation2 + $0xe0] sm:$0xff] }
 0x22c   : > { %4772 = vst.msk [vmem:[#allocation2 + $0xd0] sm:$0xff] %vm215_vm8, %v4740_v41  ;;  %v4686_v18 = vpop.f32.mrb[139].mxu1  ;;  %v4741_v9 = vadd.f32 %v6698_v62, %v4447_v50  ;;  %5253 = vst.msk [vmem:[#allocation2 + $0xa8] sm:$0xff] %vm215_vm8, %v5221_v37  ;;  %v4449_v62 = vld [vmem:[#allocation2 + $0xe8] sm:$0xff] }
 0x22d   : > { %4770 = vst.msk [vmem:[#allocation2 + $0xc0] sm:$0xff] %vm215_vm8, %v4738_v59  ;;  %v4739_v23 = vadd.f32 %v4686_v18, %v4445_v27  ;;  %v5598_v34 = vadd.f32 %v5597_v52, %v5596_v43 }
 0x22e   : > { %4773 = vst.msk [vmem:[#allocation2 + $0xd8] sm:$0xff] %vm215_vm8, %v4741_v9 }
 0x22f   : > { %4771 = vst.msk [vmem:[#allocation2 + $0xc8] sm:$0xff] %vm215_vm8, %v4739_v23 }
 0x230   : > { %v6731_v20 = vpop.f32.mrb[136].mxu0  ;;  %v5286_v60 = vld [vmem:[#allocation2 + $0xb0] sm:$0xff] }
 0x231   : > { %v5169_v12 = vpop.f32.mrb[137].mxu0  ;;  %v6268_v25 = vpack.c.bf16 %v5286_v60, %v5286_v60  ;;  %v5284_v14 = vld [vmem:[#allocation2 + $0xa0] sm:$0xff]  ;;  %v5500_v32 = vsel %vm215_vm8, %v5286_v60, 0.0  ;;  %v5550_v13 = vmul.f32 %v5286_v60, %v5286_v60 }
 0x232   : > { %v6732_v35 = vpop.f32.mrb[138].mxu0  ;;  %v6266_v56 = vpack.c.bf16 %v5284_v14, %v5284_v14  ;;  %v5496_v31 = vsel %vm215_vm8, %v5284_v14, 0.0  ;;  %v5548_v7 = vmul.f32 %v5284_v14, %v5284_v14  ;;  %v5287_v15 = vld [vmem:[#allocation2 + $0xb8] sm:$0xff] }
 0x233   : > { %v5172_v28 = vpop.f32.mrb[139].mxu0  ;;  %v4932_v1 = vld [vmem:[#allocation2 + $0xd0] sm:$0xff]  ;;  %5447 = vst.msk [vmem:[%s9210_s18 + $0x58] sm:$0xf] %vm5424_vm9, %v6268_v25  ;;  %v5497_v3 = vadd.f32 %v5496_v31, %v5495_v58  ;;  %v6269_v10 = vpack.c.bf16 %v5287_v15, %v5287_v15  ;;  %v5285_v30 = vld [vmem:[#allocation2 + $0xa8] sm:$0xff]  ;;  %v5551_v41 = vmul.f32 %v5287_v15, %v5287_v15  ;;  %v5603_v18 = vsel %vm215_vm8, %v5550_v13, 0.0 }
 0x234   : > { %v5226_v47 = vadd.f32 %v6731_v20, %v4932_v1  ;;  %v4930_v51 = vld [vmem:[#allocation2 + $0xc0] sm:$0xff]  ;;  %5445 = vst.msk [vmem:[%s9210_s18 + $0x50] sm:$0xf] %vm5424_vm9, %v6266_v56  ;;  %v5599_v19 = vsel %vm215_vm8, %v5548_v7, 0.0  ;;  %v6267_v24 = vpack.c.bf16 %v5285_v30, %v5285_v30  ;;  %v5498_v55 = vsel %vm215_vm8, %v5285_v30, 0.0 }
 0x235   : > { %v5224_v61 = vadd.f32 %v5169_v12, %v4930_v51  ;;  %v4933_v46 = vld [vmem:[#allocation2 + $0xd8] sm:$0xff]  ;;  %v5549_v8 = vmul.f32 %v5285_v30, %v5285_v30  ;;  %v5600_v57 = vadd.f32 %v5599_v19, %v5598_v34  ;;  %5448 = vst.msk [vmem:[%s9210_s18 + $0x5c] sm:$0xf] %vm5424_vm9, %v6269_v10  ;;  %v5499_v0 = vadd.f32 %v5498_v55, %v5497_v3 }
 0x236   : > { %5258 = vst.msk [vmem:[#allocation2 + $0xd0] sm:$0xff] %vm215_vm8, %v5226_v47  ;;  %v4931_v63 = vld [vmem:[#allocation2 + $0xc8] sm:$0xff]  ;;  %v5227_v59 = vadd.f32 %v6732_v35, %v4933_v46  ;;  %v5502_v9 = vsel %vm215_vm8, %v5287_v15, 0.0  ;;  %v5605_v36 = vsel %vm215_vm8, %v5551_v41, 0.0 }
 0x237   : > { %v6701_v38 = vpop.f32.mrb[140].mxu1  ;;  %5256 = vst.msk [vmem:[#allocation2 + $0xc0] sm:$0xff] %vm215_vm8, %v5224_v61  ;;  %v5601_v26 = vsel %vm215_vm8, %v5549_v8, 0.0  ;;  %v5501_v5 = vadd.f32 %v5500_v32, %v5499_v0  ;;  %v5225_v11 = vadd.f32 %v5172_v28, %v4931_v63 }
 0x238   : > { %v4699_v33 = vpop.f32.mrb[141].mxu1  ;;  %v4744_v21 = vadd.f32 %v6701_v38, %v4450_v54  ;;  %5446 = vst.msk [vmem:[%s9210_s18 + $0x54] sm:$0xf] %vm5424_vm9, %v6267_v24  ;;  %v5602_v40 = vadd.f32 %v5601_v26, %v5600_v57 }
 0x239   : > { %v6702_v2 = vpop.f32.mrb[142].mxu1  ;;  %v4742_v6 = vadd.f32 %v4699_v33, %v4448_v49  ;;  %5259 = vst.msk [vmem:[#allocation2 + $0xd8] sm:$0xff] %vm215_vm8, %v5227_v59  ;;  %5257 = vst.msk [vmem:[#allocation2 + $0xc8] sm:$0xff] %vm215_vm8, %v5225_v11  ;;  %v5503_v44 = vadd.f32 %v5502_v9, %v5501_v5 }
 0x23a   : > { %v4745_v16 = vadd.f32 %v6702_v2, %v4451_v39  ;;  %v4702_v42 = vpop.f32.mrb[143].mxu1  ;;  %v6735_v22 = vpop.f32.mrb[140].mxu0  ;;  %4776 = vst.msk [vmem:[#allocation2 + $0xf0] sm:$0xff] %vm215_vm8, %v4744_v21  ;;  %v5604_v37 = vadd.f32 %v5603_v18, %v5602_v40 }
 0x23b   : > { %v4743_v50 = vadd.f32 %v4702_v42, %v4449_v62  ;;  %v5185_v27 = vpop.f32.mrb[141].mxu0  ;;  %4774 = vst.msk [vmem:[#allocation2 + $0xe0] sm:$0xff] %vm215_vm8, %v4742_v6 }
 0x23c   : > { %4777 = vst.msk [vmem:[#allocation2 + $0xf8] sm:$0xff] %vm215_vm8, %v4745_v16  ;;  %v6736_v17 = vpop.f32.mrb[142].mxu0  ;;  %v5606_v45 = vadd.f32 %v5605_v36, %v5604_v37 }
 0x23d   : > { %4775 = vst.msk [vmem:[#allocation2 + $0xe8] sm:$0xff] %vm215_vm8, %v4743_v50  ;;  %v5188_v23 = vpop.f32.mrb[143].mxu0  ;;  %v5290_v29 = vld [vmem:[#allocation2 + $0xd0] sm:$0xff] }
 0x23e   : > { %v6272_v48 = vpack.c.bf16 %v5290_v29, %v5290_v29  ;;  %v5288_v53 = vld [vmem:[#allocation2 + $0xc0] sm:$0xff]  ;;  %v5554_v1 = vmul.f32 %v5290_v29, %v5290_v29  ;;  %v5508_v3 = vsel %vm215_vm8, %v5290_v29, 0.0 }
 0x23f   : > { %v6270_v20 = vpack.c.bf16 %v5288_v53, %v5288_v53  ;;  %v5504_v4 = vsel %vm215_vm8, %v5288_v53, 0.0  ;;  %v5552_v12 = vmul.f32 %v5288_v53, %v5288_v53 }
 0x240   : > { %5451 = vst.msk [vmem:[%s9210_s18 + $0x68] sm:$0xf] %vm5424_vm9, %v6272_v48  ;;  %v5505_v43 = vadd.f32 %v5504_v4, %v5503_v44  ;;  %v5291_v25 = vld [vmem:[#allocation2 + $0xd8] sm:$0xff]  ;;  %v5289_v47 = vld [vmem:[#allocation2 + $0xc8] sm:$0xff]  ;;  %v5611_v19 = vsel %vm215_vm8, %v5554_v1, 0.0 }
 0x241   : > { %5449 = vst.msk [vmem:[%s9210_s18 + $0x60] sm:$0xf] %vm5424_vm9, %v6270_v20  ;;  %v5607_v60 = vsel %vm215_vm8, %v5552_v12, 0.0  ;;  %v4936_v35 = vld [vmem:[#allocation2 + $0xf0] sm:$0xff]  ;;  %v6273_v34 = vpack.c.bf16 %v5291_v25, %v5291_v25  ;;  %v6271_v31 = vpack.c.bf16 %v5289_v47, %v5289_v47  ;;  %v5506_v7 = vsel %vm215_vm8, %v5289_v47, 0.0 }
 0x242   : > { %v5230_v58 = vadd.f32 %v6735_v22, %v4936_v35  ;;  %v4934_v28 = vld [vmem:[#allocation2 + $0xe0] sm:$0xff]  ;;  %v5608_v14 = vadd.f32 %v5607_v60, %v5606_v45  ;;  %v5553_v15 = vmul.f32 %v5289_v47, %v5289_v47  ;;  %v5507_v32 = vadd.f32 %v5506_v7, %v5505_v43 }
 0x243   : > { %v4937_v52 = vld [vmem:[#allocation2 + $0xf8] sm:$0xff]  ;;  %v5228_v51 = vadd.f32 %v5185_v27, %v4934_v28  ;;  %5452 = vst.msk [vmem:[%s9210_s18 + $0x6c] sm:$0xf] %vm5424_vm9, %v6273_v34  ;;  %5450 = vst.msk [vmem:[%s9210_s18 + $0x64] sm:$0xf] %vm5424_vm9, %v6271_v31  ;;  %v5555_v30 = vmul.f32 %v5291_v25, %v5291_v25  ;;  %v5510_v24 = vsel %vm215_vm8, %v5291_v25, 0.0 }
 0x244   : > { %v4935_v56 = vld [vmem:[#allocation2 + $0xe8] sm:$0xff]  ;;  %5262 = vst.msk [vmem:[#allocation2 + $0xf0] sm:$0xff] %vm215_vm8, %v5230_v58  ;;  %v5231_v61 = vadd.f32 %v6736_v17, %v4937_v52  ;;  %v5609_v10 = vsel %vm215_vm8, %v5553_v15, 0.0  ;;  %v5509_v38 = vadd.f32 %v5508_v3, %v5507_v32 }
 0x245   : > { %5260 = vst.msk [vmem:[#allocation2 + $0xe0] sm:$0xff] %vm215_vm8, %v5228_v51  ;;  %v5229_v13 = vadd.f32 %v5188_v23, %v4935_v56  ;;  %v5610_v46 = vadd.f32 %v5609_v10, %v5608_v14  ;;  %v5613_v54 = vsel %vm215_vm8, %v5555_v30, 0.0 }
 0x246   : > { %5263 = vst.msk [vmem:[#allocation2 + $0xf8] sm:$0xff] %vm215_vm8, %v5231_v61  ;;  %v5511_v8 = vadd.f32 %v5510_v24, %v5509_v38 }
 0x247   : > { %5261 = vst.msk [vmem:[#allocation2 + $0xe8] sm:$0xff] %vm215_vm8, %v5229_v13  ;;  %v5612_v55 = vadd.f32 %v5611_v19, %v5610_v46 }
 0x249   : > { %v5614_v41 = vadd.f32 %v5613_v54, %v5612_v55 }
 0x24b   : > { %v5294_v33 = vld [vmem:[#allocation2 + $0xf0] sm:$0xff] }
 0x24c   : > { %v6276_v63 = vpack.c.bf16 %v5294_v33, %v5294_v33  ;;  %v5292_v57 = vld [vmem:[#allocation2 + $0xe0] sm:$0xff]  ;;  %v5558_v42 = vmul.f32 %v5294_v33, %v5294_v33  ;;  %v5516_v11 = vsel %vm215_vm8, %v5294_v33, 0.0 }
 0x24d   : > { %v6274_v0 = vpack.c.bf16 %v5292_v57, %v5292_v57  ;;  %v5512_v21 = vsel %vm215_vm8, %v5292_v57, 0.0  ;;  %v5556_v49 = vmul.f32 %v5292_v57, %v5292_v57  ;;  %v5295_v39 = vld [vmem:[#allocation2 + $0xf8] sm:$0xff] }
 0x24e   : > { %5455 = vst.msk [vmem:[%s9210_s18 + $0x78] sm:$0xf] %vm5424_vm9, %v6276_v63  ;;  %v5513_v2 = vadd.f32 %v5512_v21, %v5511_v8  ;;  %v6277_v26 = vpack.c.bf16 %v5295_v39, %v5295_v39  ;;  %v5293_v6 = vld [vmem:[#allocation2 + $0xe8] sm:$0xff]  ;;  %v5559_v50 = vmul.f32 %v5295_v39, %v5295_v39  ;;  %v5518_v17 = vsel %vm215_vm8, %v5295_v39, 0.0 }
 0x24f   : > { %5453 = vst.msk [vmem:[%s9210_s18 + $0x70] sm:$0xf] %vm5424_vm9, %v6274_v0  ;;  %v5615_v59 = vsel %vm215_vm8, %v5556_v49, 0.0  ;;  %v6275_v16 = vpack.c.bf16 %v5293_v6, %v5293_v6  ;;  %v5514_v62 = vsel %vm215_vm8, %v5293_v6, 0.0  ;;  %v5557_v40 = vmul.f32 %v5293_v6, %v5293_v6 }
 0x250   : > { %v5616_v22 = vadd.f32 %v5615_v59, %v5614_v41  ;;  %5456 = vst.msk [vmem:[%s9210_s18 + $0x7c] sm:$0xf] %vm5424_vm9, %v6277_v26  ;;  %v5515_v5 = vadd.f32 %v5514_v62, %v5513_v2  ;;  %v5619_v37 = vsel %vm215_vm8, %v5558_v42, 0.0  ;;  %v5621_v44 = vsel %vm215_vm8, %v5559_v50, 0.0 }
 0x251   : > { %5454 = vst.msk [vmem:[%s9210_s18 + $0x74] sm:$0xf] %vm5424_vm9, %v6275_v16  ;;  %v5617_v18 = vsel %vm215_vm8, %v5557_v40, 0.0 }
 0x252   : > { %v5517_v27 = vadd.f32 %v5516_v11, %v5515_v5  ;;  %v5618_v9 = vadd.f32 %v5617_v18, %v5616_v22 }
 0x254   : > { %v5519_v23 = vadd.f32 %v5518_v17, %v5517_v27  ;;  %v5620_v29 = vadd.f32 %v5619_v37, %v5618_v9 }
 0x256   : > { %v5520_v36 = vrot.slane %v5519_v23, 4  ;;  %v5622_v48 = vadd.f32 %v5621_v44, %v5620_v29 }
 0x258   : > { %v5521_v53 = vadd.f32 %v5520_v36, %v5519_v23  ;;  %v5623_v20 = vrot.slane %v5622_v48, 4 }
 0x25a   : > { %v5522_v4 = vrot.slane %v5521_v53, 2  ;;  %v5624_v12 = vadd.f32 %v5623_v20, %v5622_v48 }
 0x25c   : > { %v5523_v45 = vadd.f32 %v5522_v4, %v5521_v53  ;;  %v5625_v43 = vrot.slane %v5624_v12, 2 }
 0x25e   : > { %v5524_v60 = vrot.slane %v5523_v45, 1  ;;  %v5626_v35 = vadd.f32 %v5625_v43, %v5624_v12 }
 0x260   : > { %v5525_v25 = vadd.f32 %v5524_v60, %v5523_v45  ;;  %v5627_v58 = vrot.slane %v5626_v35, 1 }
 0x262   : > { %5527 = vst.msk [vmem:[%s212_s22] sm:$0x1] %vm5526_vm10, %v5525_v25  ;;  %v5628_v28 = vadd.f32 %v5627_v58, %v5626_v35 }
 0x264   : > { %5629 = vst.msk [vmem:[%s212_s22 + $0x1] sm:$0x1] %vm5526_vm10, %v5628_v28 }
 0x265 PF: > { %s14_s14 = sadd.s32 1, %s6865_s14   ;;  %s9603_s12 = smov %s6861_s13 }
 0x266   : > { %p11_p5 = scmp.ge.s32.totalorder %s14_s14, 4   ;;  %s9604_s13 = smov %s9606_s15 }
 0x268   :  { %13 = sbr.rel (!%p11_p5) target bundleno = 2 (0x2), region = 81 }

</bundles_post_ra>
